<compile_context>
chip_gen: v7x
topology: tpu7x:2x2x1
jax: 0.10.0
libtpu: 0.0.40
codegen_flags: <defaults>
</compile_context>

<pallas_src>
import functools
import math

import jax
import jax.numpy as jnp
from jax.experimental import pallas as pl
from jax.experimental.pallas import tpu as pltpu

LANE = 128
SUBLANE = 8


def _ceil_to(x, m):
    return ((x + m - 1) // m) * m


# ----------------------------------------------------------------------------
# In-kernel helpers (traced inside the kernel bodies)
# ----------------------------------------------------------------------------

def _pw(x2d, w_ref, sb_ref, relu):
    """1x1 conv (single MXU matmul) + folded BN (+ ReLU).  x2d: (R, Cin) f32."""
    y = jnp.dot(x2d.astype(jnp.bfloat16), w_ref[...],
                preferred_element_type=jnp.float32)
    y = y * sb_ref[0] + sb_ref[1]
    if relu:
        y = jnp.maximum(y, 0.0)
    return y


def _dw3x3(slab, dw_ref, sb_ref, *, stride, Ho, Wo_pad, Hc):
    """Depthwise 3x3 (+ folded BN) over a stride-phase-decomposed slab.

    slab: (s*s*Hc, Wc_pad, C).  Phase (p, q) occupies rows
    [(p*s+q)*Hc, (p*s+q)*Hc + Hc).  Tap (ky, kx) of output (i, j) is
    slab[((ky%s)*s + (kx%s))*Hc + i + ky//s, j + kx//s, :], i.e. a contiguous
    static slice -> no strided loads, no HBM tap copies.
    """
    s = stride
    acc = None
    for ky in range(3):
        for kx in range(3):
            pidx = (ky % s) * s + (kx % s)
            r0 = pidx * Hc + ky // s
            c0 = kx // s
            tap = slab[r0:r0 + Ho, c0:c0 + Wo_pad, :]
            term = tap * dw_ref[ky * 3 + kx]
            acc = term if acc is None else acc + term
    return acc * sb_ref[0] + sb_ref[1]


def _branch2_body(ph3, mask_ref, w1_ref, sb1_ref, dw_ref, sb2_ref,
                  w2_ref, sb3_ref, *, stride, Ho, Wo_pad, Hc, Wc_pad):
    """pw1+BN+ReLU -> dw3x3+BN -> pw2+BN+ReLU, all in VMEM."""
    cbp = w1_ref.shape[1]
    rows = ph3.shape[0]                      # s*s*Hc
    cin = ph3.shape[-1]
    y1 = _pw(ph3.reshape(rows * Wc_pad, cin), w1_ref, sb1_ref, relu=True)
    # zero the positions that are spatial zero-padding of the dw input
    # (pw1(0) != 0 because of the folded BN bias / ReLU).
    y1 = y1.reshape(rows, Wc_pad, cbp) * mask_ref[...]
    y2 = _dw3x3(y1, dw_ref, sb2_ref, stride=stride, Ho=Ho, Wo_pad=Wo_pad, Hc=Hc)
    y3 = _pw(y2.reshape(Ho * Wo_pad, cbp), w2_ref, sb3_ref, relu=True)
    return y3.reshape(Ho, Wo_pad, cbp)


# ----------------------------------------------------------------------------
# Pallas kernels
# ----------------------------------------------------------------------------

def _stride1_kernel(ph_ref, mask_ref, w1_ref, sb1_ref, dw_ref, sb2_ref,
                    w2_ref, sb3_ref, o_ref, *, stride, Ho, Wo_pad, Hc, Wc_pad):
    o_ref[0] = _branch2_body(ph_ref[0], mask_ref, w1_ref, sb1_ref, dw_ref,
                             sb2_ref, w2_ref, sb3_ref, stride=stride, Ho=Ho,
                             Wo_pad=Wo_pad, Hc=Hc, Wc_pad=Wc_pad)


def _strided_kernel(ph_ref, mask_ref,
                    b1_dw_ref, b1_sb1_ref, b1_pw_ref, b1_sb2_ref,
                    b2_w1_ref, b2_sb1_ref, b2_dw_ref, b2_sb2_ref,
                    b2_w2_ref, b2_sb3_ref,
                    o1_ref, o2_ref, *, stride, Ho, Wo_pad, Hc, Wc_pad):
    ph3 = ph_ref[0]                          # (s*s*Hc, Wc_pad, Cin)
    cin = ph3.shape[-1]
    # branch1: dw3x3(x)+BN -> 1x1+BN+ReLU   (x's zero padding is already correct)
    z = _dw3x3(ph3, b1_dw_ref, b1_sb1_ref, stride=stride, Ho=Ho,
               Wo_pad=Wo_pad, Hc=Hc)
    z = _pw(z.reshape(Ho * Wo_pad, cin), b1_pw_ref, b1_sb2_ref, relu=True)
    o1_ref[0] = z.reshape(Ho, Wo_pad, b1_pw_ref.shape[1])
    # branch2
    o2_ref[0] = _branch2_body(ph3, mask_ref, b2_w1_ref, b2_sb1_ref, b2_dw_ref,
                              b2_sb2_ref, b2_w2_ref, b2_sb3_ref, stride=stride,
                              Ho=Ho, Wo_pad=Wo_pad, Hc=Hc, Wc_pad=Wc_pad)


# ----------------------------------------------------------------------------
# JAX glue: geometry, phase decomposition, parameter padding
# ----------------------------------------------------------------------------

def _geometry(H, W, stride):
    s = stride
    Hp, Wp = H + 2, W + 2
    Ho = (Hp - 3) // s + 1
    Wo = (Wp - 3) // s + 1
    Wo_pad = _ceil_to(Wo, SUBLANE)
    Hc = max(Ho + 2 // s, -(-Hp // s))
    Wc_pad = _ceil_to(max(2 // s + Wo_pad, -(-Wp // s)), SUBLANE)
    return Ho, Wo, Wo_pad, Hc, Wc_pad


def _build_phases(x_nhwc, stride, Hc, Wc_pad):
    """Zero-pad (pad=1) and decompose into s*s stride phases, stacked along
    the row axis -> (N, s*s*Hc, Wc_pad, C).  ~1x the input bytes."""
    N, H, W, C = x_nhwc.shape
    s = stride
    xp = jnp.pad(x_nhwc, ((0, 0), (1, 1), (1, 1), (0, 0)))
    parts = []
    for p in range(s):
        for q in range(s):
            ph = xp[:, p::s, q::s, :]
            ph = jnp.pad(ph, ((0, 0), (0, Hc - ph.shape[1]),
                              (0, Wc_pad - ph.shape[2]), (0, 0)))
            parts.append(ph)
    return jnp.concatenate(parts, axis=1)


def _build_mask(H, W, stride, Hc, Wc_pad):
    """1.0 on positions coming from real input pixels, 0.0 on padding/fill."""
    s = stride
    Hp, Wp = H + 2, W + 2
    r = jnp.arange(Hc)
    c = jnp.arange(Wc_pad)
    rows = []
    for p in range(s):
        for q in range(s):
            gr = s * r + p
            gc = s * c + q
            ok = ((gr >= 1) & (gr <= Hp - 2))[:, None] & \
                 ((gc >= 1) & (gc <= Wp - 2))[None, :]
            rows.append(ok.astype(jnp.float32))
    return jnp.concatenate(rows, axis=0)[:, :, None]   # (s*s*Hc, Wc_pad, 1)


def _pad_matmul_w(w, cout_p, cin_p=None):
    """Zero-pad a (Cin, Cout) matmul weight to (cin_p, cout_p) and cast bf16."""
    cin_p = w.shape[0] if cin_p is None else cin_p
    return jnp.pad(w, ((0, cin_p - w.shape[0]),
                       (0, cout_p - w.shape[1]))).astype(jnp.bfloat16)


def _pad_sb(scale, bias, cp):
    sb = jnp.stack([scale, bias], axis=0)
    return jnp.pad(sb, ((0, 0), (0, cp - sb.shape[1])))


def _pad_dw(w, cp):
    w9 = w.reshape(9, w.shape[2])
    return jnp.pad(w9, ((0, 0), (0, cp - w9.shape[1])))


def _const_spec(shape):
    return pl.BlockSpec(shape, lambda n: (0,) * len(shape))


def _cost(flops, args, out_bytes):
    b = sum(int(a.size) * a.dtype.itemsize for a in args) + int(out_bytes)
    return pl.CostEstimate(flops=int(flops), transcendentals=0,
                           bytes_accessed=int(b))


def _channel_shuffle(x, groups):
    N, H, W, C = x.shape
    x = x.reshape(N, H, W, groups, C // groups)
    x = jnp.transpose(x, (0, 1, 2, 4, 3))
    return x.reshape(N, H, W, C)


# ----------------------------------------------------------------------------
# pallas_call wrappers
# ----------------------------------------------------------------------------

def _branch2_call(p, x, stride):
    N, H, W, C = x.shape
    cb = p['pw2_w'].shape[1]
    cb_p = _ceil_to(cb, LANE)
    Ho, Wo, Wo_pad, Hc, Wc_pad = _geometry(H, W, stride)
    rows = stride * stride * Hc

    phases = _build_phases(x, stride, Hc, Wc_pad)
    mask = _build_mask(H, W, stride, Hc, Wc_pad)
    w1 = _pad_matmul_w(p['pw1_w'], cb_p)                 # (Cin, cb_p)
    sb1 = _pad_sb(p['bn1_s'], p['bn1_b'], cb_p)
    dw = _pad_dw(p['dw_w'], cb_p)
    sb2 = _pad_sb(p['bn2_s'], p['bn2_b'], cb_p)
    w2 = _pad_matmul_w(p['pw2_w'], cb_p, cb_p)           # (cb_p, cb_p) !
    sb3 = _pad_sb(p['bn3_s'], p['bn3_b'], cb_p)

    args = (phases, mask, w1, sb1, dw, sb2, w2, sb3)
    flops = 2 * N * (rows * Wc_pad * C * cb_p + Ho * Wo_pad * cb_p * cb_p)
    out_bytes = N * Ho * Wo_pad * cb_p * 4

    kern = functools.partial(_stride1_kernel, stride=stride, Ho=Ho,
                             Wo_pad=Wo_pad, Hc=Hc, Wc_pad=Wc_pad)
    out = pl.pallas_call(
        kern,
        out_shape=jax.ShapeDtypeStruct((N, Ho, Wo_pad, cb_p), jnp.float32),
        grid=(N,),
        in_specs=[
            pl.BlockSpec((1, rows, Wc_pad, C), lambda n: (n, 0, 0, 0)),
            _const_spec(mask.shape), _const_spec(w1.shape),
            _const_spec(sb1.shape), _const_spec(dw.shape),
            _const_spec(sb2.shape), _const_spec(w2.shape),
            _const_spec(sb3.shape),
        ],
        out_specs=pl.BlockSpec((1, Ho, Wo_pad, cb_p), lambda n: (n, 0, 0, 0)),
        compiler_params=pltpu.CompilerParams(dimension_semantics=("parallel",)),
        cost_estimate=_cost(flops, args, out_bytes),
    )(*args)
    return out[:, :Ho, :Wo, :cb]


def _strided_call(params, x, stride):
    N, H, W, C = x.shape
    b1p, b2p = params['branch1'], params['branch2']
    cb = b2p['pw2_w'].shape[1]
    cb_p = _ceil_to(cb, LANE)
    Ho, Wo, Wo_pad, Hc, Wc_pad = _geometry(H, W, stride)
    rows = stride * stride * Hc

    phases = _build_phases(x, stride, Hc, Wc_pad)
    mask = _build_mask(H, W, stride, Hc, Wc_pad)

    b1_dw = _pad_dw(b1p['dw_w'], C)
    b1_sb1 = _pad_sb(b1p['bn1_s'], b1p['bn1_b'], C)
    b1_pw = _pad_matmul_w(b1p['pw_w'], cb_p)             # (C, cb_p)
    b1_sb2 = _pad_sb(b1p['bn2_s'], b1p['bn2_b'], cb_p)

    b2_w1 = _pad_matmul_w(b2p['pw1_w'], cb_p)            # (C, cb_p)
    b2_sb1 = _pad_sb(b2p['bn1_s'], b2p['bn1_b'], cb_p)
    b2_dw = _pad_dw(b2p['dw_w'], cb_p)
    b2_sb2 = _pad_sb(b2p['bn2_s'], b2p['bn2_b'], cb_p)
    b2_w2 = _pad_matmul_w(b2p['pw2_w'], cb_p, cb_p)      # (cb_p, cb_p) !
    b2_sb3 = _pad_sb(b2p['bn3_s'], b2p['bn3_b'], cb_p)

    args = (phases, mask, b1_dw, b1_sb1, b1_pw, b1_sb2,
            b2_w1, b2_sb1, b2_dw, b2_sb2, b2_w2, b2_sb3)
    flops = 2 * N * (rows * Wc_pad * C * cb_p
                     + Ho * Wo_pad * cb_p * cb_p
                     + Ho * Wo_pad * C * cb_p)
    out_bytes = 2 * N * Ho * Wo_pad * cb_p * 4

    kern = functools.partial(_strided_kernel, stride=stride, Ho=Ho,
                             Wo_pad=Wo_pad, Hc=Hc, Wc_pad=Wc_pad)
    out_sd = jax.ShapeDtypeStruct((N, Ho, Wo_pad, cb_p), jnp.float32)
    out_spec = pl.BlockSpec((1, Ho, Wo_pad, cb_p), lambda n: (n, 0, 0, 0))
    o1, o2 = pl.pallas_call(
        kern,
        out_shape=(out_sd, out_sd),
        grid=(N,),
        in_specs=[pl.BlockSpec((1, rows, Wc_pad, C), lambda n: (n, 0, 0, 0))]
                 + [_const_spec(a.shape) for a in args[1:]],
        out_specs=(out_spec, out_spec),
        compiler_params=pltpu.CompilerParams(dimension_semantics=("parallel",)),
        cost_estimate=_cost(flops, args, out_bytes),
    )(*args)
    return o1[:, :Ho, :Wo, :cb], o2[:, :Ho, :Wo, :cb]


# ----------------------------------------------------------------------------
# Module: parameters + forward (matches torch InvertedResidual, eval-mode BN)
# ----------------------------------------------------------------------------

def _fold_bn(key, c):
    eps = 1e-5
    k1, k2, k3, k4 = jax.random.split(key, 4)
    gamma = 1.0 + 0.1 * jax.random.normal(k1, (c,), jnp.float32)
    beta = 0.1 * jax.random.normal(k2, (c,), jnp.float32)
    mean = 0.1 * jax.random.normal(k3, (c,), jnp.float32)
    var = jax.random.uniform(k4, (c,), jnp.float32, minval=0.5, maxval=1.5)
    scale = gamma / jnp.sqrt(var + eps)
    return scale, beta - mean * scale


def build_inverted_residual_params(key, inp, oup, stride):
    if not 1 <= stride <= 3:
        raise ValueError('illegal stride value')
    cb = oup // 2
    assert stride != 1 or inp == cb << 1
    keys = iter(jax.random.split(key, 16))
    params = {'stride': stride, 'branch_features': cb}
    if stride > 1:
        b1 = {
            'dw_w': jax.random.normal(next(keys), (3, 3, inp), jnp.float32)
                    * math.sqrt(2.0 / 9.0),
            'pw_w': jax.random.normal(next(keys), (inp, cb), jnp.float32)
                    * math.sqrt(2.0 / cb),
        }
        b1['bn1_s'], b1['bn1_b'] = _fold_bn(next(keys), inp)
        b1['bn2_s'], b1['bn2_b'] = _fold_bn(next(keys), cb)
        params['branch1'] = b1
    b2_in = inp if stride > 1 else cb
    b2 = {
        'pw1_w': jax.random.normal(next(keys), (b2_in, cb), jnp.float32)
                 * math.sqrt(2.0 / cb),
        'dw_w': jax.random.normal(next(keys), (3, 3, cb), jnp.float32)
                * math.sqrt(2.0 / 9.0),
        'pw2_w': jax.random.normal(next(keys), (cb, cb), jnp.float32)
                 * math.sqrt(2.0 / cb),
    }
    b2['bn1_s'], b2['bn1_b'] = _fold_bn(next(keys), cb)
    b2['bn2_s'], b2['bn2_b'] = _fold_bn(next(keys), cb)
    b2['bn3_s'], b2['bn3_b'] = _fold_bn(next(keys), cb)
    params['branch2'] = b2
    return params


def inverted_residual_forward(params, x_nchw):
    """x_nchw: (N, C, H, W) float32 -> (N, oup, Ho, Wo) float32."""
    stride = params['stride']
    cb = params['branch_features']
    x = jnp.transpose(x_nchw, (0, 2, 3, 1)).astype(jnp.float32)   # NCHW -> NHWC
    if stride == 1:
        x1, x2 = x[..., :cb], x[..., cb:]
        out = jnp.concatenate([x1, _branch2_call(params['branch2'], x2, stride)],
                              axis=-1)
    else:
        b1, b2 = _strided_call(params, x, stride)
        out = jnp.concatenate([b1, b2], axis=-1)
    out = _channel_shuffle(out, 2)
    return jnp.transpose(out, (0, 3, 1, 2))                        # NHWC -> NCHW


# ----------------------------------------------------------------------------
# Pure-JAX reference (same bf16 matmul rounding) for a self-check
# ----------------------------------------------------------------------------

def _ref_pw(x, w, s, b, relu):
    N, H, W, C = x.shape
    y = jnp.dot(x.reshape(-1, C).astype(jnp.bfloat16), w.astype(jnp.bfloat16),
                preferred_element_type=jnp.float32).reshape(N, H, W, -1)
    y = y * s + b
    return jnp.maximum(y, 0.0) if relu else y


def _ref_dw(x, w, s, b, stride):
    xp = jnp.pad(x, ((0, 0), (1, 1), (1, 1), (0, 0)))
    N, Hp, Wp, C = xp.shape
    Ho = (Hp - 3) // stride + 1
    Wo = (Wp - 3) // stride + 1
    acc = jnp.zeros((N, Ho, Wo, C), jnp.float32)
    for ky in range(3):
        for kx in range(3):
            tap = jax.lax.slice(
                xp, (0, ky, kx, 0),
                (N, ky + (Ho - 1) * stride + 1, kx + (Wo - 1) * stride + 1, C),
                (1, stride, stride, 1))
            acc = acc + tap * w[ky, kx]
    return acc * s + b


def inverted_residual_reference(params, x_nchw):
    stride = params['stride']
    cb = params['branch_features']
    x = jnp.transpose(x_nchw, (0, 2, 3, 1)).astype(jnp.float32)

    def branch2(xin):
        p = params['branch2']
        y = _ref_pw(xin, p['pw1_w'], p['bn1_s'], p['bn1_b'], True)
        y = _ref_dw(y, p['dw_w'], p['bn2_s'], p['bn2_b'], stride)
        return _ref_pw(y, p['pw2_w'], p['bn3_s'], p['bn3_b'], True)

    if stride == 1:
        x1, x2 = x[..., :cb], x[..., cb:]
        out = jnp.concatenate([x1, branch2(x2)], axis=-1)
    else:
        p = params['branch1']
        b1 = _ref_dw(x, p['dw_w'], p['bn1_s'], p['bn1_b'], stride)
        b1 = _ref_pw(b1, p['pw_w'], p['bn2_s'], p['bn2_b'], True)
        out = jnp.concatenate([b1, branch2(x)], axis=-1)
    out = _channel_shuffle(out, 2)
    return jnp.transpose(out, (0, 3, 1, 2))


# ----------------------------------------------------------------------------
# main
# ----------------------------------------------------------------------------

if __name__ == "__main__":
    key = jax.random.PRNGKey(0)
    k1, k2, k3, k4 = jax.random.split(key, 4)

    # stride-1 block (stage-internal): inp == oup
    p1 = build_inverted_residual_params(k1, inp=116, oup=116, stride=1)
    x1 = jax.random.normal(k2, (2, 116, 16, 16), jnp.float32)

    # stride-2 block (stage entry / spatial downsample)
    p2 = build_inverted_residual_params(k3, inp=24, oup=116, stride=2)
    x2 = jax.random.normal(k4, (2, 24, 16, 16), jnp.float32)

    fwd1 = jax.jit(functools.partial(inverted_residual_forward, p1))
    fwd2 = jax.jit(functools.partial(inverted_residual_forward, p2))

    y1 = jax.block_until_ready(fwd1(x1))
    y2 = jax.block_until_ready(fwd2(x2))

    assert y1.shape == (2, 116, 16, 16), y1.shape
    assert y2.shape == (2, 116, 8, 8), y2.shape
    assert bool(jnp.all(jnp.isfinite(y1))) and bool(jnp.all(jnp.isfinite(y2)))

    r1 = inverted_residual_reference(p1, x1)
    r2 = inverted_residual_reference(p2, x2)
    assert bool(jnp.allclose(y1, r1, atol=1e-2, rtol=1e-2)), \
        float(jnp.max(jnp.abs(y1 - r1)))
    assert bool(jnp.allclose(y2, r2, atol=1e-2, rtol=1e-2)), \
        float(jnp.max(jnp.abs(y2 - r2)))

    print("KERNEL_OK")
</pallas_src>

<mosaic_0001>
module attributes {stable_mosaic.version = 11 : i64} {
  func.func @_stride1_kernel(%arg0: i32, %arg1: memref<1x18x24x58xf32, #tpu.memory_space<vmem>>, %arg2: memref<18x24x1xf32, #tpu.memory_space<vmem>>, %arg3: memref<58x128xbf16, #tpu.memory_space<vmem>>, %arg4: memref<2x128xf32, #tpu.memory_space<vmem>>, %arg5: memref<9x128xf32, #tpu.memory_space<vmem>>, %arg6: memref<2x128xf32, #tpu.memory_space<vmem>>, %arg7: memref<128x128xbf16, #tpu.memory_space<vmem>>, %arg8: memref<2x128xf32, #tpu.memory_space<vmem>>, %arg9: memref<1x16x16x128xf32, #tpu.memory_space<vmem>>) attributes {dimension_semantics = [#tpu.dimension_semantics<parallel>], iteration_bounds = array<i64: 2>, scalar_prefetch = 0 : i64, scratch_operands = 0 : i64, tpu.core_type = #tpu.core_type<tc>, window_params = [{transform_indices = @transform_0, window_bounds = array<i64: 1, 18, 24, 58>}, {pipeline_mode = #tpu.pipeline_mode<synchronous>, transform_indices = @transform_1, window_bounds = array<i64: 18, 24, 1>}, {pipeline_mode = #tpu.pipeline_mode<synchronous>, transform_indices = @transform_2, window_bounds = array<i64: 58, 128>}, {pipeline_mode = #tpu.pipeline_mode<synchronous>, transform_indices = @transform_3, window_bounds = array<i64: 2, 128>}, {pipeline_mode = #tpu.pipeline_mode<synchronous>, transform_indices = @transform_4, window_bounds = array<i64: 9, 128>}, {pipeline_mode = #tpu.pipeline_mode<synchronous>, transform_indices = @transform_5, window_bounds = array<i64: 2, 128>}, {pipeline_mode = #tpu.pipeline_mode<synchronous>, transform_indices = @transform_6, window_bounds = array<i64: 128, 128>}, {pipeline_mode = #tpu.pipeline_mode<synchronous>, transform_indices = @transform_7, window_bounds = array<i64: 2, 128>}, {transform_indices = @transform_8, window_bounds = array<i64: 1, 16, 16, 128>}]} {
    %c0 = arith.constant 0 : index
    %c0_0 = arith.constant 0 : index
    %c0_1 = arith.constant 0 : index
    %c0_2 = arith.constant 0 : index
    %0 = vector.load %arg1[%c0, %c0_0, %c0_1, %c0_2] : memref<1x18x24x58xf32, #tpu.memory_space<vmem>>, vector<1x18x24x58xf32>
    %1 = vector.shape_cast %0 : vector<1x18x24x58xf32> to vector<18x24x58xf32>
    %2 = vector.shape_cast %1 : vector<18x24x58xf32> to vector<432x58xf32>
    %3 = arith.truncf %2 : vector<432x58xf32> to vector<432x58xbf16>
    %c0_3 = arith.constant 0 : index
    %c0_4 = arith.constant 0 : index
    %4 = vector.load %arg3[%c0_3, %c0_4] : memref<58x128xbf16, #tpu.memory_space<vmem>>, vector<58x128xbf16>
    %cst = arith.constant dense<0.000000e+00> : vector<432x128xf32>
    %5 = tpu.matmul %3, %4, %cst {dimension_numbers = #tpu.dot_dimension_numbers<[1], [0], [0], [1], [0, 0, 1, 1], [], []>} : vector<432x58xbf16>, vector<58x128xbf16>, vector<432x128xf32> -> vector<432x128xf32>
    %c0_5 = arith.constant 0 : index
    %c0_6 = arith.constant 0 : index
    %6 = vector.load %arg4[%c0_5, %c0_6] : memref<2x128xf32, #tpu.memory_space<vmem>>, vector<1x128xf32>
    %7 = vector.shape_cast %6 : vector<1x128xf32> to vector<128xf32>
    %8 = vector.shape_cast %7 : vector<128xf32> to vector<1x128xf32>
    %9 = vector.broadcast %8 : vector<1x128xf32> to vector<432x128xf32>
    %10 = arith.mulf %5, %9 : vector<432x128xf32>
    %c1 = arith.constant 1 : index
    %c0_7 = arith.constant 0 : index
    %11 = vector.load %arg4[%c1, %c0_7] : memref<2x128xf32, #tpu.memory_space<vmem>>, vector<1x128xf32>
    %12 = vector.shape_cast %11 : vector<1x128xf32> to vector<128xf32>
    %13 = vector.shape_cast %12 : vector<128xf32> to vector<1x128xf32>
    %14 = vector.broadcast %13 : vector<1x128xf32> to vector<432x128xf32>
    %15 = arith.addf %10, %14 : vector<432x128xf32>
    %cst_8 = arith.constant 0.000000e+00 : f32
    %16 = vector.broadcast %cst_8 : f32 to vector<432x128xf32>
    %17 = arith.maximumf %15, %16 : vector<432x128xf32>
    %18 = vector.shape_cast %17 : vector<432x128xf32> to vector<18x24x128xf32>
    %c0_9 = arith.constant 0 : index
    %c0_10 = arith.constant 0 : index
    %c0_11 = arith.constant 0 : index
    %19 = vector.load %arg2[%c0_9, %c0_10, %c0_11] : memref<18x24x1xf32, #tpu.memory_space<vmem>>, vector<18x24x1xf32>
    %20 = vector.broadcast %19 : vector<18x24x1xf32> to vector<18x24x128xf32>
    %21 = arith.mulf %18, %20 : vector<18x24x128xf32>
    %22 = vector.extract_strided_slice %21 {offsets = [0, 0, 0], sizes = [16, 16, 128], strides = [1, 1, 1]} : vector<18x24x128xf32> to vector<16x16x128xf32>
    %c0_12 = arith.constant 0 : index
    %c0_13 = arith.constant 0 : index
    %23 = vector.load %arg5[%c0_12, %c0_13] : memref<9x128xf32, #tpu.memory_space<vmem>>, vector<1x128xf32>
    %24 = vector.shape_cast %23 : vector<1x128xf32> to vector<128xf32>
    %25 = vector.shape_cast %24 : vector<128xf32> to vector<1x1x128xf32>
    %26 = vector.broadcast %25 : vector<1x1x128xf32> to vector<16x16x128xf32>
    %27 = arith.mulf %22, %26 : vector<16x16x128xf32>
    %28 = vector.extract_strided_slice %21 {offsets = [0, 1, 0], sizes = [16, 16, 128], strides = [1, 1, 1]} : vector<18x24x128xf32> to vector<16x16x128xf32>
    %c1_14 = arith.constant 1 : index
    %c0_15 = arith.constant 0 : index
    %29 = vector.load %arg5[%c1_14, %c0_15] : memref<9x128xf32, #tpu.memory_space<vmem>>, vector<1x128xf32>
    %30 = vector.shape_cast %29 : vector<1x128xf32> to vector<128xf32>
    %31 = vector.shape_cast %30 : vector<128xf32> to vector<1x1x128xf32>
    %32 = vector.broadcast %31 : vector<1x1x128xf32> to vector<16x16x128xf32>
    %33 = arith.mulf %28, %32 : vector<16x16x128xf32>
    %34 = arith.addf %27, %33 : vector<16x16x128xf32>
    %35 = vector.extract_strided_slice %21 {offsets = [0, 2, 0], sizes = [16, 16, 128], strides = [1, 1, 1]} : vector<18x24x128xf32> to vector<16x16x128xf32>
    %c2 = arith.constant 2 : index
    %c0_16 = arith.constant 0 : index
    %36 = vector.load %arg5[%c2, %c0_16] : memref<9x128xf32, #tpu.memory_space<vmem>>, vector<1x128xf32>
    %37 = vector.shape_cast %36 : vector<1x128xf32> to vector<128xf32>
    %38 = vector.shape_cast %37 : vector<128xf32> to vector<1x1x128xf32>
    %39 = vector.broadcast %38 : vector<1x1x128xf32> to vector<16x16x128xf32>
    %40 = arith.mulf %35, %39 : vector<16x16x128xf32>
    %41 = arith.addf %34, %40 : vector<16x16x128xf32>
    %42 = vector.extract_strided_slice %21 {offsets = [1, 0, 0], sizes = [16, 16, 128], strides = [1, 1, 1]} : vector<18x24x128xf32> to vector<16x16x128xf32>
    %c3 = arith.constant 3 : index
    %c0_17 = arith.constant 0 : index
    %43 = vector.load %arg5[%c3, %c0_17] : memref<9x128xf32, #tpu.memory_space<vmem>>, vector<1x128xf32>
    %44 = vector.shape_cast %43 : vector<1x128xf32> to vector<128xf32>
    %45 = vector.shape_cast %44 : vector<128xf32> to vector<1x1x128xf32>
    %46 = vector.broadcast %45 : vector<1x1x128xf32> to vector<16x16x128xf32>
    %47 = arith.mulf %42, %46 : vector<16x16x128xf32>
    %48 = arith.addf %41, %47 : vector<16x16x128xf32>
    %49 = vector.extract_strided_slice %21 {offsets = [1, 1, 0], sizes = [16, 16, 128], strides = [1, 1, 1]} : vector<18x24x128xf32> to vector<16x16x128xf32>
    %c4 = arith.constant 4 : index
    %c0_18 = arith.constant 0 : index
    %50 = vector.load %arg5[%c4, %c0_18] : memref<9x128xf32, #tpu.memory_space<vmem>>, vector<1x128xf32>
    %51 = vector.shape_cast %50 : vector<1x128xf32> to vector<128xf32>
    %52 = vector.shape_cast %51 : vector<128xf32> to vector<1x1x128xf32>
    %53 = vector.broadcast %52 : vector<1x1x128xf32> to vector<16x16x128xf32>
    %54 = arith.mulf %49, %53 : vector<16x16x128xf32>
    %55 = arith.addf %48, %54 : vector<16x16x128xf32>
    %56 = vector.extract_strided_slice %21 {offsets = [1, 2, 0], sizes = [16, 16, 128], strides = [1, 1, 1]} : vector<18x24x128xf32> to vector<16x16x128xf32>
    %c5 = arith.constant 5 : index
    %c0_19 = arith.constant 0 : index
    %57 = vector.load %arg5[%c5, %c0_19] : memref<9x128xf32, #tpu.memory_space<vmem>>, vector<1x128xf32>
    %58 = vector.shape_cast %57 : vector<1x128xf32> to vector<128xf32>
    %59 = vector.shape_cast %58 : vector<128xf32> to vector<1x1x128xf32>
    %60 = vector.broadcast %59 : vector<1x1x128xf32> to vector<16x16x128xf32>
    %61 = arith.mulf %56, %60 : vector<16x16x128xf32>
    %62 = arith.addf %55, %61 : vector<16x16x128xf32>
    %63 = vector.extract_strided_slice %21 {offsets = [2, 0, 0], sizes = [16, 16, 128], strides = [1, 1, 1]} : vector<18x24x128xf32> to vector<16x16x128xf32>
    %c6 = arith.constant 6 : index
    %c0_20 = arith.constant 0 : index
    %64 = vector.load %arg5[%c6, %c0_20] : memref<9x128xf32, #tpu.memory_space<vmem>>, vector<1x128xf32>
    %65 = vector.shape_cast %64 : vector<1x128xf32> to vector<128xf32>
    %66 = vector.shape_cast %65 : vector<128xf32> to vector<1x1x128xf32>
    %67 = vector.broadcast %66 : vector<1x1x128xf32> to vector<16x16x128xf32>
    %68 = arith.mulf %63, %67 : vector<16x16x128xf32>
    %69 = arith.addf %62, %68 : vector<16x16x128xf32>
    %70 = vector.extract_strided_slice %21 {offsets = [2, 1, 0], sizes = [16, 16, 128], strides = [1, 1, 1]} : vector<18x24x128xf32> to vector<16x16x128xf32>
    %c7 = arith.constant 7 : index
    %c0_21 = arith.constant 0 : index
    %71 = vector.load %arg5[%c7, %c0_21] : memref<9x128xf32, #tpu.memory_space<vmem>>, vector<1x128xf32>
    %72 = vector.shape_cast %71 : vector<1x128xf32> to vector<128xf32>
    %73 = vector.shape_cast %72 : vector<128xf32> to vector<1x1x128xf32>
    %74 = vector.broadcast %73 : vector<1x1x128xf32> to vector<16x16x128xf32>
    %75 = arith.mulf %70, %74 : vector<16x16x128xf32>
    %76 = arith.addf %69, %75 : vector<16x16x128xf32>
    %77 = vector.extract_strided_slice %21 {offsets = [2, 2, 0], sizes = [16, 16, 128], strides = [1, 1, 1]} : vector<18x24x128xf32> to vector<16x16x128xf32>
    %c8 = arith.constant 8 : index
    %c0_22 = arith.constant 0 : index
    %78 = vector.load %arg5[%c8, %c0_22] : memref<9x128xf32, #tpu.memory_space<vmem>>, vector<1x128xf32>
    %79 = vector.shape_cast %78 : vector<1x128xf32> to vector<128xf32>
    %80 = vector.shape_cast %79 : vector<128xf32> to vector<1x1x128xf32>
    %81 = vector.broadcast %80 : vector<1x1x128xf32> to vector<16x16x128xf32>
    %82 = arith.mulf %77, %81 : vector<16x16x128xf32>
    %83 = arith.addf %76, %82 : vector<16x16x128xf32>
    %c0_23 = arith.constant 0 : index
    %c0_24 = arith.constant 0 : index
    %84 = vector.load %arg6[%c0_23, %c0_24] : memref<2x128xf32, #tpu.memory_space<vmem>>, vector<1x128xf32>
    %85 = vector.shape_cast %84 : vector<1x128xf32> to vector<128xf32>
    %86 = vector.shape_cast %85 : vector<128xf32> to vector<1x1x128xf32>
    %87 = vector.broadcast %86 : vector<1x1x128xf32> to vector<16x16x128xf32>
    %88 = arith.mulf %83, %87 : vector<16x16x128xf32>
    %c1_25 = arith.constant 1 : index
    %c0_26 = arith.constant 0 : index
    %89 = vector.load %arg6[%c1_25, %c0_26] : memref<2x128xf32, #tpu.memory_space<vmem>>, vector<1x128xf32>
    %90 = vector.shape_cast %89 : vector<1x128xf32> to vector<128xf32>
    %91 = vector.shape_cast %90 : vector<128xf32> to vector<1x1x128xf32>
    %92 = vector.broadcast %91 : vector<1x1x128xf32> to vector<16x16x128xf32>
    %93 = arith.addf %88, %92 : vector<16x16x128xf32>
    %94 = vector.shape_cast %93 : vector<16x16x128xf32> to vector<256x128xf32>
    %95 = arith.truncf %94 : vector<256x128xf32> to vector<256x128xbf16>
    %c0_27 = arith.constant 0 : index
    %c0_28 = arith.constant 0 : index
    %96 = vector.load %arg7[%c0_27, %c0_28] : memref<128x128xbf16, #tpu.memory_space<vmem>>, vector<128x128xbf16>
    %cst_29 = arith.constant dense<0.000000e+00> : vector<256x128xf32>
    %97 = tpu.matmul %95, %96, %cst_29 {dimension_numbers = #tpu.dot_dimension_numbers<[1], [0], [0], [1], [0, 0, 1, 1], [], []>} : vector<256x128xbf16>, vector<128x128xbf16>, vector<256x128xf32> -> vector<256x128xf32>
    %c0_30 = arith.constant 0 : index
    %c0_31 = arith.constant 0 : index
    %98 = vector.load %arg8[%c0_30, %c0_31] : memref<2x128xf32, #tpu.memory_space<vmem>>, vector<1x128xf32>
    %99 = vector.shape_cast %98 : vector<1x128xf32> to vector<128xf32>
    %100 = vector.shape_cast %99 : vector<128xf32> to vector<1x128xf32>
    %101 = vector.broadcast %100 : vector<1x128xf32> to vector<256x128xf32>
    %102 = arith.mulf %97, %101 : vector<256x128xf32>
    %c1_32 = arith.constant 1 : index
    %c0_33 = arith.constant 0 : index
    %103 = vector.load %arg8[%c1_32, %c0_33] : memref<2x128xf32, #tpu.memory_space<vmem>>, vector<1x128xf32>
    %104 = vector.shape_cast %103 : vector<1x128xf32> to vector<128xf32>
    %105 = vector.shape_cast %104 : vector<128xf32> to vector<1x128xf32>
    %106 = vector.broadcast %105 : vector<1x128xf32> to vector<256x128xf32>
    %107 = arith.addf %102, %106 : vector<256x128xf32>
    %cst_34 = arith.constant 0.000000e+00 : f32
    %108 = vector.broadcast %cst_34 : f32 to vector<256x128xf32>
    %109 = arith.maximumf %107, %108 : vector<256x128xf32>
    %110 = vector.shape_cast %109 : vector<256x128xf32> to vector<16x16x128xf32>
    %c0_35 = arith.constant 0 : index
    %c0_36 = arith.constant 0 : index
    %c0_37 = arith.constant 0 : index
    %c0_38 = arith.constant 0 : index
    %111 = vector.load %arg9[%c0_35, %c0_36, %c0_37, %c0_38] : memref<1x16x16x128xf32, #tpu.memory_space<vmem>>, vector<1x16x16x128xf32>
    %112 = vector.shape_cast %111 : vector<1x16x16x128xf32> to vector<16x16x128xf32>
    %113 = vector.shape_cast %110 : vector<16x16x128xf32> to vector<1x16x16x128xf32>
    tpu.vector_store %arg9[%c0_35, %c0_36, %c0_37, %c0_38], %113 {strides = array<i32>} : memref<1x16x16x128xf32, #tpu.memory_space<vmem>>, vector<1x16x16x128xf32>,
    return
  }
  func.func @transform_0(%arg0: i32) -> (i32, i32, i32, i32) {
    %c0_i32 = arith.constant 0 : i32
    %c0_i32_0 = arith.constant 0 : i32
    %c0_i32_1 = arith.constant 0 : i32
    %c0_i32_2 = arith.constant 0 : i32
    return %arg0, %c0_i32, %c0_i32_0, %c0_i32_1 : i32, i32, i32, i32
  }
  func.func @transform_1(%arg0: i32) -> (i32, i32, i32) {
    %c0_i32 = arith.constant 0 : i32
    %c0_i32_0 = arith.constant 0 : i32
    %c0_i32_1 = arith.constant 0 : i32
    %c0_i32_2 = arith.constant 0 : i32
    return %c0_i32, %c0_i32_0, %c0_i32_1 : i32, i32, i32
  }
  func.func @transform_2(%arg0: i32) -> (i32, i32) {
    %c0_i32 = arith.constant 0 : i32
    %c0_i32_0 = arith.constant 0 : i32
    %c0_i32_1 = arith.constant 0 : i32
    return %c0_i32, %c0_i32_0 : i32, i32
  }
  func.func @transform_3(%arg0: i32) -> (i32, i32) {
    %c0_i32 = arith.constant 0 : i32
    %c0_i32_0 = arith.constant 0 : i32
    %c0_i32_1 = arith.constant 0 : i32
    return %c0_i32, %c0_i32_0 : i32, i32
  }
  func.func @transform_4(%arg0: i32) -> (i32, i32) {
    %c0_i32 = arith.constant 0 : i32
    %c0_i32_0 = arith.constant 0 : i32
    %c0_i32_1 = arith.constant 0 : i32
    return %c0_i32, %c0_i32_0 : i32, i32
  }
  func.func @transform_5(%arg0: i32) -> (i32, i32) {
    %c0_i32 = arith.constant 0 : i32
    %c0_i32_0 = arith.constant 0 : i32
    %c0_i32_1 = arith.constant 0 : i32
    return %c0_i32, %c0_i32_0 : i32, i32
  }
  func.func @transform_6(%arg0: i32) -> (i32, i32) {
    %c0_i32 = arith.constant 0 : i32
    %c0_i32_0 = arith.constant 0 : i32
    %c0_i32_1 = arith.constant 0 : i32
    return %c0_i32, %c0_i32_0 : i32, i32
  }
  func.func @transform_7(%arg0: i32) -> (i32, i32) {
    %c0_i32 = arith.constant 0 : i32
    %c0_i32_0 = arith.constant 0 : i32
    %c0_i32_1 = arith.constant 0 : i32
    return %c0_i32, %c0_i32_0 : i32, i32
  }
  func.func @transform_8(%arg0: i32) -> (i32, i32, i32, i32) {
    %c0_i32 = arith.constant 0 : i32
    %c0_i32_0 = arith.constant 0 : i32
    %c0_i32_1 = arith.constant 0 : i32
    %c0_i32_2 = arith.constant 0 : i32
    return %arg0, %c0_i32, %c0_i32_0, %c0_i32_1 : i32, i32, i32, i32
  }
}

</mosaic_0001>

<bundles_post_ra>
// kernel: inverted_residual_forward.1
= control target key start
LH: loop header
LB: loop body
LE: loop exit
PB: predicated region body
PF: predicated region fallthrough
CT: control target
= control target key end

     0   :  { %s3857_s27 = smov 0   ;;  %s6241_s0 = inlined_call_operand.vmem [shape: f32[2,18,24,58], index: 0, kind: input, shape index: {}]   ;;  %s6242_s1 = inlined_call_operand.vmem [shape: f32[18,24,1], index: 1, kind: input, shape index: {}]   ;;  %s6243_s2 = inlined_call_operand.vmem [shape: bf16[58,128], index: 2, kind: input, shape index: {}]   ;;  %s6244_s3 = inlined_call_operand.vmem [shape: f32[2,128], index: 3, kind: input, shape index: {}]   ;;  %s6245_s4 = inlined_call_operand.vmem [shape: f32[9,128], index: 4, kind: input, shape index: {}]   ;;  %s6246_s5 = inlined_call_operand.vmem [shape: f32[2,128], index: 5, kind: input, shape index: {}]   ;;  %s6247_s6 = inlined_call_operand.vmem [shape: bf16[128,128], index: 6, kind: input, shape index: {}]   ;;  %s6248_s7 = inlined_call_operand.vmem [shape: f32[2,128], index: 7, kind: input, shape index: {}]   ;;  %s6249_s8 = inlined_call_operand.vmem [shape: f32[2,16,16,128], index: 8, kind: output, shape index: {}]  }
   0x1 LB: > { %s3459_s28 = sadd.s32 4294967295, %s3807_s27   ;;  %p3463_p0 = scmp.ge.s32.totalorder %s3807_s27, 1  ;;  %s3807_s27 = sphi %s3857_s27, %s18_s27  }
   0x2   : > { %p262_p1 = scmp.lt.s32.totalorder %s3807_s27, 3 }
   0x4   : > { %p263_p2 = pnand %p3463_p0, %p262_p1 }
   0x6   : > { %266 = sbr.rel (%p263_p2) target bundleno = 838 (0x346), region = 52 }
   0xd   : > { %v3765_v0 = vld [vmem:[%s6243_s2] sm:$0xff]   ;;  %v3809_v1 = vmov 0.0   ;;  %v3766_v2 = vld [vmem:[%s6243_s2 + $0x8] sm:$0xff]   ;;  %vm3810_vm0 = vmmov 0   ;;  %p296_p3 = scmp.lt.s32.totalorder %s3459_s28, 1  ;;  %v3811_v3 = vmov 0  }
   0xe   : > { %3579 = vmatprep.subr.bf16.mxu0 %v3809_v1  ;;  %3743 = vmatprep.subr.bf16.mxu1 %v3809_v1  ;;  %v926_v4 = vld [vmem:[%s6242_s1] sm:$0xff]  ;;  %v928_v5 = vld [vmem:[%s6242_s1 + $0x10] sm:$0xff]  ;;  %v3768_v7 = vld [vmem:[%s6243_s2 + $0x18] sm:$0x1f]   ;;  %vm501_vm1 = vcmask 1044480   ;;  %vm419_vm2 = vcmask 474112  }
   0xf   : > { %3580 = vmatpush3.bf16.msra.mxu0 %v3765_v0  ;;  %3747 = vmatpush3.bf16.msra.mxu1 %v3765_v0  ;;  %v3767_v6 = vld [vmem:[%s6243_s2 + $0x10] sm:$0xff]   ;;  %s6486_s28 = smov (!%p296_p3, %s3459_s28), 1  ;;  %v927_v8 = vld [vmem:[%s6242_s1 + $0x8] sm:$0xff]  ;;  %v929_v9 = vld [vmem:[%s6242_s1 + $0x18] sm:$0xff]  ;;  %v503_v10 = vsel %vm501_vm1, %v3768_v7, 0  ;;  %vm1442_vm3 = vcmask 1046528  }
  0x10   : > { %3581 = vmatprep.subr.bf16.mxu0 %v3809_v1  ;;  %3744 = vmatprep.subr.bf16.mxu1 %v3809_v1  ;;  %s3751_s19 = smul.u32 432, %s6486_s28  ;;  %v930_v17 = vld [vmem:[%s6242_s1 + $0x20] sm:$0xff]  ;;  %v931_v18 = vld [vmem:[%s6242_s1 + $0x28] sm:$0xff]  ;;  %v932_v20 = vld [vmem:[%s6242_s1 + $0x30] sm:$0xff]  ;;  %vm1688_vm4 = vcmask 1045504   ;;  %s3523_s25 = sshll.u32 %s6486_s28, 8 }
  0x11   : > { %3587 = vmatprep.mubr.msk.bf16.mxu0 %vm3810_vm0, %v3809_v1  ;;  %3659 = vmatprep.mubr.msk.bf16.mxu1 %vm3810_vm0, %v3809_v1  ;;  %v933_v21 = vld [vmem:[%s6242_s1 + $0x38] sm:$0xff]  ;;  %v934_v27 = vld [vmem:[%s6242_s1 + $0x40] sm:$0xff]  ;;  %v935_v28 = vld [vmem:[%s6242_s1 + $0x48] sm:$0xff]  ;;  %s6142_s30 = scalar_lea.vmem %s6249_s8, %s3523_s25 }
  0x12   : > { %3763 = vset.pattern.permute.xlu0 %v3811_v3  ;;  %3764 = vset.pattern.permute.xlu1 %v3811_v3  ;;  %s3905_s26 = scalar_lea.vmem %s6241_s0, %s3751_s19  ;;  %v936_v30 = vld [vmem:[%s6242_s1 + $0x50] sm:$0xff]  ;;  %v937_v31 = vld [vmem:[%s6242_s1 + $0x58] sm:$0xff]  ;;  %v938_v37 = vld [vmem:[%s6242_s1 + $0x60] sm:$0xff] }
  0x13   : > { %3582 = vmatpush3.bf16.msra.mxu0 %v3766_v2  ;;  %3748 = vmatpush3.bf16.msra.mxu1 %v3766_v2  ;;  %v307_v11 = vld [vmem:[%s3905_s26] sm:$0xff]  ;;  %v308_v12 = vld [vmem:[%s3905_s26 + $0x8] sm:$0xff]  ;;  %v309_v19 = vld [vmem:[%s3905_s26 + $0x10] sm:$0xff] }
  0x14   : > { %3583 = vmatprep.subr.bf16.mxu0 %v3809_v1  ;;  %3745 = vmatprep.subr.bf16.mxu1 %v3809_v1  ;;  %v343_v13 = vld [vmem:[%s3905_s26 + $0x120] sm:$0xff]  ;;  %v344_v14 = vld [vmem:[%s3905_s26 + $0x128] sm:$0xff]  ;;  %v361_v15 = vpack.c.bf16 %v308_v12, %v307_v11  ;;  %v310_v22 = vld [vmem:[%s3905_s26 + $0x18] sm:$0xff] }
  0x15   : > { %982 = vperm.xlu0 %3763, %v926_v4   ;;  %992 = vperm.xlu1 %3764, %v928_v5   ;;  %v379_v16 = vpack.c.bf16 %v344_v14, %v343_v13  ;;  %v345_v23 = vld [vmem:[%s3905_s26 + $0x130] sm:$0xff]  ;;  %v346_v24 = vld [vmem:[%s3905_s26 + $0x138] sm:$0xff]  ;;  %v362_v25 = vpack.c.bf16 %v310_v22, %v309_v19  ;;  %v311_v29 = vld [vmem:[%s3905_s26 + $0x20] sm:$0xff] }
  0x16   : > { %v380_v26 = vpack.c.bf16 %v346_v24, %v345_v23  ;;  %v312_v32 = vld [vmem:[%s3905_s26 + $0x28] sm:$0xff]  ;;  %v347_v33 = vld [vmem:[%s3905_s26 + $0x140] sm:$0xff]  ;;  %v313_v39 = vld [vmem:[%s3905_s26 + $0x30] sm:$0xff] }
  0x17   : > { %3584 = vmatpush3.bf16.msra.mxu0 %v3767_v6  ;;  %3749 = vmatpush3.bf16.msra.mxu1 %v3767_v6  ;;  %v348_v34 = vld [vmem:[%s3905_s26 + $0x148] sm:$0xff]  ;;  %v363_v35 = vpack.c.bf16 %v312_v32, %v311_v29  ;;  %v940_v40 = vld [vmem:[%s6242_s1 + $0x70] sm:$0xff]  ;;  %v941_v41 = vld [vmem:[%s6242_s1 + $0x78] sm:$0xff] }
  0x18   : > { %3585 = vmatprep.subr.bf16.mxu0 %v3809_v1  ;;  %3746 = vmatprep.subr.bf16.mxu1 %v3809_v1  ;;  %v381_v36 = vpack.c.bf16 %v348_v34, %v347_v33  ;;  %v939_v38 = vld [vmem:[%s6242_s1 + $0x68] sm:$0xff]  ;;  %v314_v42 = vld [vmem:[%s3905_s26 + $0x38] sm:$0xff]  ;;  %v349_v43 = vld [vmem:[%s3905_s26 + $0x150] sm:$0xff] }
  0x19   : > { %987 = vperm.xlu0 %3763, %v927_v8   ;;  %997 = vperm.xlu1 %3764, %v929_v9   ;;  %v350_v44 = vld [vmem:[%s3905_s26 + $0x158] sm:$0xff]  ;;  %v364_v45 = vpack.c.bf16 %v314_v42, %v313_v39  ;;  %v942_v47 = vld [vmem:[%s6242_s1 + $0x80] sm:$0xff]  ;;  %v943_v48 = vld [vmem:[%s6242_s1 + $0x88] sm:$0xff] }
  0x1a   : > { %v382_v46 = vpack.c.bf16 %v350_v44, %v349_v43  ;;  %v944_v49 = vld [vmem:[%s6242_s1 + $0x90] sm:$0xff]  ;;  %v945_v50 = vld [vmem:[%s6242_s1 + $0x98] sm:$0xff]  ;;  %v315_v51 = vld [vmem:[%s3905_s26 + $0x40] sm:$0xff] }
  0x1b   : > { %3586 = vmatpush3.bf16.msra.mxu0 %v503_v10  ;;  %3750 = vmatpush3.bf16.msra.mxu1 %v503_v10  ;;  %v316_v52 = vld [vmem:[%s3905_s26 + $0x48] sm:$0xff]  ;;  %v351_v53 = vld [vmem:[%s3905_s26 + $0x160] sm:$0xff]  ;;  %v317_v59 = vld [vmem:[%s3905_s26 + $0x50] sm:$0xff] }
  0x1c   : > { %v352_v54 = vld [vmem:[%s3905_s26 + $0x168] sm:$0xff]  ;;  %v365_v55 = vpack.c.bf16 %v316_v52, %v315_v51  ;;  %v946_v57 = vld [vmem:[%s6242_s1 + $0xa0] sm:$0xff]  ;;  %v948_v60 = vld [vmem:[%s6242_s1 + $0xb0] sm:$0xff] }
  0x1d   : > { %1002 = vperm.xlu0 %3763, %v930_v17   ;;  %1007 = vperm.xlu1 %3764, %v931_v18   ;;  %v383_v56 = vpack.c.bf16 %v352_v54, %v351_v53  ;;  %v947_v58 = vld [vmem:[%s6242_s1 + $0xa8] sm:$0xff]  ;;  %v949_v61 = vld [vmem:[%s6242_s1 + $0xb8] sm:$0xff]  ;;  %v353_v63 = vld [vmem:[%s3905_s26 + $0x170] sm:$0xff] }
  0x1e   : > { %3588 = vmatmul.mubr.msk.bf16.vlgmr.msra.gmra.mrb[0].mxu0 %vm419_vm2, %v361_v15  ;;  %3660 = vmatmul.mubr.msk.bf16.vlgmr.msra.gmra.mrb[0].mxu1 %vm419_vm2, %v379_v16  ;;  %v318_v62 = vld [vmem:[%s3905_s26 + $0x58] sm:$0xff]  ;;  %v950_v4 = vld [vmem:[%s6242_s1 + $0xc0] sm:$0xff]  ;;  %v951_v5 = vld [vmem:[%s6242_s1 + $0xc8] sm:$0xff] }
  0x1f   : > { %3591 = vmatprep.mubr.msk.bf16.mxu0 %vm3810_vm0, %v3809_v1  ;;  %3663 = vmatprep.mubr.msk.bf16.mxu1 %vm3810_vm0, %v3809_v1  ;;  %v354_v0 = vld [vmem:[%s3905_s26 + $0x178] sm:$0xff]  ;;  %v366_v2 = vpack.c.bf16 %v318_v62, %v317_v59  ;;  %v319_v6 = vld [vmem:[%s3905_s26 + $0x60] sm:$0xff]  ;;  %v952_v7 = vld [vmem:[%s6242_s1 + $0xd0] sm:$0xff] }
  0x20   : > { %v384_v3 = vpack.c.bf16 %v354_v0, %v353_v63  ;;  %v953_v8 = vld [vmem:[%s6242_s1 + $0xd8] sm:$0xff]  ;;  %v320_v9 = vld [vmem:[%s3905_s26 + $0x68] sm:$0xff]  ;;  %v355_v10 = vld [vmem:[%s3905_s26 + $0x180] sm:$0xff] }
  0x21   : > { %1012 = vperm.xlu0 %3763, %v932_v20   ;;  %1017 = vperm.xlu1 %3764, %v933_v21   ;;  %v356_v11 = vld [vmem:[%s3905_s26 + $0x188] sm:$0xff]  ;;  %v367_v12 = vpack.c.bf16 %v320_v9, %v319_v6  ;;  %v954_v14 = vld [vmem:[%s6242_s1 + $0xe0] sm:$0xff]  ;;  %v321_v16 = vld [vmem:[%s3905_s26 + $0x70] sm:$0xff] }
  0x22   : > { %v385_v13 = vpack.c.bf16 %v356_v11, %v355_v10  ;;  %v955_v15 = vld [vmem:[%s6242_s1 + $0xe8] sm:$0xff]  ;;  %v956_v17 = vld [vmem:[%s6242_s1 + $0xf0] sm:$0xff]  ;;  %v957_v18 = vld [vmem:[%s6242_s1 + $0xf8] sm:$0xff] }
  0x23   : > { %v322_v19 = vld [vmem:[%s3905_s26 + $0x78] sm:$0xff]  ;;  %v357_v20 = vld [vmem:[%s3905_s26 + $0x190] sm:$0xff]  ;;  %v958_v24 = vld [vmem:[%s6242_s1 + $0x100] sm:$0xff] }
  0x24   : > { %v358_v21 = vld [vmem:[%s3905_s26 + $0x198] sm:$0xff]  ;;  %v368_v22 = vpack.c.bf16 %v322_v19, %v321_v16  ;;  %v324_v29 = vld [vmem:[%s3905_s26 + $0x88] sm:$0xff]  ;;  %v962_v34 = vld [vmem:[%s6242_s1 + $0x120] sm:$0xff] }
  0x25   : > { %1022 = vperm.xlu0 %3763, %v934_v27   ;;  %1027 = vperm.xlu1 %3764, %v935_v28   ;;  %v386_v23 = vpack.c.bf16 %v358_v21, %v357_v20  ;;  %v960_v27 = vld [vmem:[%s6242_s1 + $0x110] sm:$0xff]  ;;  %v961_v28 = vld [vmem:[%s6242_s1 + $0x118] sm:$0xff]  ;;  %v967_v42 = vld [vmem:[%s6242_s1 + $0x148] sm:$0xff] }
  0x26   : > { %3592 = vmatmul.mubr.msk.bf16.gmra.mrb[4].mxu0 %vm419_vm2, %v362_v25  ;;  %3664 = vmatmul.mubr.msk.bf16.gmra.mrb[4].mxu1 %vm419_vm2, %v380_v26  ;;  %v959_v25 = vld [vmem:[%s6242_s1 + $0x108] sm:$0xff]  ;;  %v323_v26 = vld [vmem:[%s3905_s26 + $0x80] sm:$0xff]  ;;  %v326_v39 = vld [vmem:[%s3905_s26 + $0x98] sm:$0xff] }
  0x27   : > { %3595 = vmatprep.mubr.msk.bf16.mxu0 %vm3810_vm0, %v3809_v1  ;;  %3667 = vmatprep.mubr.msk.bf16.mxu1 %vm3810_vm0, %v3809_v1  ;;  %v369_v32 = vpack.c.bf16 %v324_v29, %v323_v26  ;;  %v968_v43 = vld [vmem:[%s6242_s1 + $0x150] sm:$0xff]  ;;  %v969_v44 = vld [vmem:[%s6242_s1 + $0x158] sm:$0xff]  ;;  %v331_v59 = vld [vmem:[%s3905_s26 + $0xc0] sm:$0xff] }
  0x28   : > { %v973_v51 = vld [vmem:[%s6242_s1 + $0x178] sm:$0xff]  ;;  %v329_v52 = vld [vmem:[%s3905_s26 + $0xb0] sm:$0xff]  ;;  %v978_v62 = vld [vmem:[%s6242_s1 + $0x1a0] sm:$0xff] }
  0x29   : > { %1032 = vperm.xlu0 %3763, %v936_v30   ;;  %1037 = vperm.xlu1 %3764, %v937_v31   ;;  %v359_v30 = vld [vmem:[%s3905_s26 + $0x1a0] sm:$0xff]  ;;  %v360_v31 = vld [vmem:[%s3905_s26 + $0x1a8] sm:$0xff]  ;;  %v330_v53 = vld [vmem:[%s3905_s26 + $0xb8] sm:$0xff] }
  0x2a   : > { %v387_v33 = vpack.c.bf16 %v360_v31, %v359_v30  ;;  %v372_v54 = vpack.c.bf16 %v330_v53, %v329_v52  ;;  %v979_v63 = vld [vmem:[%s6242_s1 + $0x1a8] sm:$0xff]  ;;  %v333_v0 = vld [vmem:[%s3905_s26 + $0xd0] sm:$0xff]  ;;  %v3772_v26 = vld [vmem:[%s6247_s6 + $0x18] sm:$0xff]  }
  0x2b   : > { %v3771_v21 = vld [vmem:[%s6247_s6 + $0x10] sm:$0xff]  }
  0x2d   : > { %1042 = vperm.xlu0 %3763, %v938_v37   ;;  %1047 = vperm.xlu1 %3764, %v939_v38   ;;  %v965_v37 = vld [vmem:[%s6242_s1 + $0x138] sm:$0xff]  ;;  %v325_v38 = vld [vmem:[%s3905_s26 + $0x90] sm:$0xff] }
  0x2e   : > { %3596 = vmatmul.mubr.msk.bf16.gmra.mrb[8].mxu0 %vm419_vm2, %v363_v35  ;;  %3668 = vmatmul.mubr.msk.bf16.gmra.mrb[8].mxu1 %vm419_vm2, %v381_v36  ;;  %v963_v35 = vld [vmem:[%s6242_s1 + $0x128] sm:$0xff]  ;;  %v964_v36 = vld [vmem:[%s6242_s1 + $0x130] sm:$0xff] }
  0x2f   : > { %3599 = vmatprep.mubr.msk.bf16.mxu0 %vm3810_vm0, %v3809_v1  ;;  %3671 = vmatprep.mubr.msk.bf16.mxu1 %vm3810_vm0, %v3809_v1 }
  0x31   : > { %1052 = vperm.xlu0 %3763, %v940_v40   ;;  %1057 = vperm.xlu1 %3764, %v941_v41   ;;  %v370_v40 = vpack.c.bf16 %v326_v39, %v325_v38  ;;  %v966_v41 = vld [vmem:[%s6242_s1 + $0x140] sm:$0xff] }
  0x35   : > { %1062 = vperm.xlu0 %3763, %v942_v47   ;;  %1067 = vperm.xlu1 %3764, %v943_v48   ;;  %v970_v48 = vld [vmem:[%s6242_s1 + $0x160] sm:$0xff] }
  0x36   : > { %3600 = vmatmul.mubr.msk.bf16.gmra.mrb[12].mxu0 %vm419_vm2, %v364_v45  ;;  %3672 = vmatmul.mubr.msk.bf16.gmra.mrb[12].mxu1 %vm419_vm2, %v382_v46  ;;  %v327_v45 = vld [vmem:[%s3905_s26 + $0xa0] sm:$0xff]  ;;  %v328_v46 = vld [vmem:[%s3905_s26 + $0xa8] sm:$0xff] }
  0x37   : > { %3603 = vmatprep.mubr.msk.bf16.mxu0 %vm3810_vm0, %v3809_v1  ;;  %3675 = vmatprep.mubr.msk.bf16.mxu1 %vm3810_vm0, %v3809_v1  ;;  %v371_v47 = vpack.c.bf16 %v328_v46, %v327_v45 }
  0x39   : > { %1072 = vperm.xlu0 %3763, %v944_v49   ;;  %1077 = vperm.xlu1 %3764, %v945_v50   ;;  %v971_v49 = vld [vmem:[%s6242_s1 + $0x168] sm:$0xff]  ;;  %v972_v50 = vld [vmem:[%s6242_s1 + $0x170] sm:$0xff] }
  0x3d   : > { %1082 = vperm.xlu0 %3763, %v946_v57   ;;  %1087 = vperm.xlu1 %3764, %v947_v58   ;;  %v976_v57 = vld [vmem:[%s6242_s1 + $0x190] sm:$0xff]  ;;  %v977_v58 = vld [vmem:[%s6242_s1 + $0x198] sm:$0xff] }
  0x3e   : > { %3604 = vmatmul.mubr.msk.bf16.gmra.mrb[16].mxu0 %vm419_vm2, %v365_v55  ;;  %3676 = vmatmul.mubr.msk.bf16.gmra.mrb[16].mxu1 %vm419_vm2, %v383_v56  ;;  %v974_v55 = vld [vmem:[%s6242_s1 + $0x180] sm:$0xff]  ;;  %v975_v56 = vld [vmem:[%s6242_s1 + $0x188] sm:$0xff] }
  0x3f   : > { %3607 = vmatprep.mubr.msk.bf16.mxu0 %vm3810_vm0, %v3809_v1  ;;  %3679 = vmatprep.mubr.msk.bf16.mxu1 %vm3810_vm0, %v3809_v1 }
  0x41   : > { %1092 = vperm.xlu0 %3763, %v948_v60   ;;  %1097 = vperm.xlu1 %3764, %v949_v61   ;;  %v332_v60 = vld [vmem:[%s3905_s26 + $0xc8] sm:$0xff] }
  0x42   : > { %v373_v61 = vpack.c.bf16 %v332_v60, %v331_v59 }
  0x45   : > { %1102 = vperm.xlu0 %3763, %v950_v4   ;;  %1107 = vperm.xlu1 %3764, %v951_v5   ;;  %v335_v4 = vld [vmem:[%s3905_s26 + $0xe0] sm:$0xff]  ;;  %v336_v5 = vld [vmem:[%s3905_s26 + $0xe8] sm:$0xff] }
  0x46   : > { %3608 = vmatmul.mubr.msk.bf16.gmra.mrb[20].mxu0 %vm419_vm2, %v366_v2  ;;  %3680 = vmatmul.mubr.msk.bf16.gmra.mrb[20].mxu1 %vm419_vm2, %v384_v3  ;;  %v334_v2 = vld [vmem:[%s3905_s26 + $0xd8] sm:$0xff]  ;;  %v375_v6 = vpack.c.bf16 %v336_v5, %v335_v4 }
  0x47   : > { %3611 = vmatprep.mubr.msk.bf16.mxu0 %vm3810_vm0, %v3809_v1  ;;  %3683 = vmatprep.mubr.msk.bf16.mxu1 %vm3810_vm0, %v3809_v1  ;;  %v374_v3 = vpack.c.bf16 %v334_v2, %v333_v0 }
  0x49   : > { %1112 = vperm.xlu0 %3763, %v952_v7   ;;  %1117 = vperm.xlu1 %3764, %v953_v8   ;;  %v337_v7 = vld [vmem:[%s3905_s26 + $0xf0] sm:$0xff]  ;;  %v338_v8 = vld [vmem:[%s3905_s26 + $0xf8] sm:$0xff] }
  0x4a   : > { %v376_v9 = vpack.c.bf16 %v338_v8, %v337_v7 }
  0x4d   : > { %1122 = vperm.xlu0 %3763, %v954_v14   ;;  %1127 = vperm.xlu1 %3764, %v955_v15   ;;  %v340_v14 = vld [vmem:[%s3905_s26 + $0x108] sm:$0xff] }
  0x4e   : > { %3612 = vmatmul.mubr.msk.bf16.gmra.mrb[24].mxu0 %vm419_vm2, %v367_v12  ;;  %3684 = vmatmul.mubr.msk.bf16.gmra.mrb[24].mxu1 %vm419_vm2, %v385_v13  ;;  %v3769_v12 = vld [vmem:[%s6247_s6] sm:$0xff]  }
  0x4f   : > { %3615 = vmatprep.mubr.msk.bf16.mxu0 %vm3810_vm0, %v3809_v1  ;;  %3687 = vmatprep.mubr.msk.bf16.mxu1 %vm3810_vm0, %v3809_v1  ;;  %v339_v13 = vld [vmem:[%s3905_s26 + $0x100] sm:$0xff] }
  0x50   : > { %3695 = vmatprep.subr.bf16.mxu1 %v3769_v12 }
  0x51   : > { %1132 = vperm.xlu0 %3763, %v956_v17   ;;  %1137 = vperm.xlu1 %3764, %v957_v18   ;;  %v3770_v17 = vld [vmem:[%s6247_s6 + $0x8] sm:$0xff]   ;;  %v377_v18 = vpack.c.bf16 %v340_v14, %v339_v13 }
  0x52   : > { %3696 = vmatpush3.bf16.msra.mxu1 %v3769_v12 }
  0x53   : > { %3697 = vmatprep.subr.bf16.mxu1 %v3770_v17 }
  0x55   : > { %1142 = vperm.xlu0 %3763, %v958_v24   ;;  %1147 = vperm.xlu1 %3764, %v959_v25  }
  0x56   : > { %3616 = vmatmul.mubr.msk.bf16.gmra.mrb[28].mxu0 %vm419_vm2, %v368_v22  ;;  %3688 = vmatmul.mubr.msk.bf16.gmra.mrb[28].mxu1 %vm419_vm2, %v386_v23  ;;  %v341_v22 = vld [vmem:[%s3905_s26 + $0x110] sm:$0xff]  ;;  %v342_v23 = vld [vmem:[%s3905_s26 + $0x118] sm:$0xff] }
  0x57   : > { %3619 = vmatprep.mubr.msk.bf16.mxu0 %vm3810_vm0, %v3809_v1  ;;  %3691 = vmatprep.mubr.msk.bf16.mxu1 %vm3810_vm0, %v3809_v1 }
  0x58   : > { %3698 = vmatpush3.bf16.msra.mxu1 %v3770_v17 }
  0x59   : > { %1152 = vperm.xlu0 %3763, %v960_v27   ;;  %1157 = vperm.xlu1 %3764, %v961_v28   ;;  %v378_v27 = vpack.c.bf16 %v342_v23, %v341_v22  ;;  %v4312_v22 = vld [vmem:[%s6245_s4 + $0x2] ss:$0 sm:$0xff] }
  0x5a   : > { %3699 = vmatprep.subr.bf16.mxu1 %v3771_v21 }
  0x5c   : > { %3700 = vmatpush3.bf16.msra.mxu1 %v3771_v21  ;;  %v4307_v21 = vld [vmem:[%s6245_s4 + $0x1] ss:$0 sm:$0xff] }
  0x5d   : > { %1162 = vperm.xlu0 %3763, %v962_v34   ;;  %1167 = vperm.xlu1 %3764, %v963_v35  }
  0x5e   : > { %3620 = vmatmul.mubr.msk.bf16.gmra.mrb[32].mxu0 %vm419_vm2, %v369_v32  ;;  %3692 = vmatmul.mubr.msk.bf16.gmra.mrb[32].mxu1 %vm419_vm2, %v387_v33  ;;  %v3774_v32 = vld [vmem:[%s6247_s6 + $0x28] sm:$0xff]  }
  0x5f   : > { %3623 = vmatprep.mubr.msk.bf16.mxu0 %vm3810_vm0, %v3809_v1  ;;  %3701 = vmatprep.subr.bf16.mxu1 %v3772_v26 }
  0x60   : > { %3702 = vmatpush3.bf16.msra.mxu1 %v3772_v26 }
  0x61   : > { %1172 = vperm.xlu0 %3763, %v964_v36   ;;  %1177 = vperm.xlu1 %3764, %v965_v37  }
  0x65   : > { %1182 = vperm.xlu0 %3763, %v966_v41   ;;  %1187 = vperm.xlu1 %3764, %v967_v42   ;;  %v3775_v41 = vld [vmem:[%s6247_s6 + $0x30] sm:$0xff]   ;;  %v3776_v42 = vld [vmem:[%s6247_s6 + $0x38] sm:$0xff]  }
  0x66   : > { %3624 = vmatmul.mubr.msk.bf16.gmra.mrb[36].mxu0 %vm419_vm2, %v370_v40 }
  0x67   : > { %3627 = vmatprep.mubr.msk.bf16.mxu0 %vm3810_vm0, %v3809_v1 }
  0x69   : > { %1192 = vperm.xlu0 %3763, %v968_v43   ;;  %1197 = vperm.xlu1 %3764, %v969_v44  }
  0x6d   : > { %1202 = vperm.xlu0 %3763, %v970_v48   ;;  %1207 = vperm.xlu1 %3764, %v971_v49  }
  0x6e   : > { %3628 = vmatmul.mubr.msk.bf16.gmra.mrb[40].mxu0 %vm419_vm2, %v371_v47 }
  0x6f   : > { %3631 = vmatprep.mubr.msk.bf16.mxu0 %vm3810_vm0, %v3809_v1 }
  0x71   : > { %1212 = vperm.xlu0 %3763, %v972_v50   ;;  %1217 = vperm.xlu1 %3764, %v973_v51  }
  0x75   : > { %1222 = vperm.xlu0 %3763, %v974_v55   ;;  %1227 = vperm.xlu1 %3764, %v975_v56  }
  0x76   : > { %3632 = vmatmul.mubr.msk.bf16.gmra.mrb[44].mxu0 %vm419_vm2, %v372_v54 }
  0x77   : > { %3635 = vmatprep.mubr.msk.bf16.mxu0 %vm3810_vm0, %v3809_v1 }
  0x79   : > { %1232 = vperm.xlu0 %3763, %v976_v57   ;;  %1237 = vperm.xlu1 %3764, %v977_v58   ;;  %v4285_v57 = vld [vmem:[%s6244_s3] ss:$0 sm:$0xff] }
  0x7d   : > { %1242 = vperm.xlu0 %3763, %v978_v62   ;;  %1247 = vperm.xlu1 %3764, %v979_v63  }
  0x7e   : > { %3636 = vmatmul.mubr.msk.bf16.gmra.mrb[48].mxu0 %vm419_vm2, %v373_v61  ;;  %v4294_v61 = vld [vmem:[%s6244_s3 + $0x1] ss:$0 sm:$0xff] }
  0x7f   : > { %3639 = vmatprep.mubr.msk.bf16.mxu0 %vm3810_vm0, %v3809_v1 }
  0x86   : > { %3640 = vmatmul.mubr.msk.bf16.gmra.mrb[52].mxu0 %vm419_vm2, %v374_v3 }
  0x87   : > { %3643 = vmatprep.mubr.msk.bf16.mxu0 %vm3810_vm0, %v3809_v1 }
  0x8e   : > { %3644 = vmatmul.mubr.msk.bf16.gmra.mrb[56].mxu0 %vm419_vm2, %v375_v6 }
  0x8f   : > { %3647 = vmatprep.mubr.msk.bf16.mxu0 %vm3810_vm0, %v3809_v1 }
  0x94   : > { %v4179_v10 = vpop.permute.xlu0 %982  ;;  %v4181_v11 = vpop.permute.xlu1 %992 }
  0x96   : > { %3648 = vmatmul.mubr.msk.bf16.gmra.mrb[60].mxu0 %vm419_vm2, %v376_v9 }
  0x97   : > { %3651 = vmatprep.mubr.msk.bf16.mxu0 %vm3810_vm0, %v3809_v1 }
  0x98   : > { %v4191_v15 = vpop.permute.xlu0 %987  ;;  %v4193_v16 = vpop.permute.xlu1 %997 }
  0x9c   : > { %v4198_v19 = vpop.permute.xlu0 %1002  ;;  %v4200_v20 = vpop.permute.xlu1 %1007 }
  0x9e   : > { %3652 = vmatmul.mubr.msk.bf16.gmra.mrb[64].mxu0 %vm419_vm2, %v377_v18 }
  0x9f   : > { %3655 = vmatprep.mubr.msk.bf16.mxu0 %vm3810_vm0, %v3809_v1  ;;  %v3773_v1 = vld [vmem:[%s6247_s6 + $0x20] sm:$0xff]  }
  0xa0   : > { %v4210_v24 = vpop.permute.xlu0 %1012  ;;  %v4212_v25 = vpop.permute.xlu1 %1017  ;;  %3703 = vmatprep.subr.bf16.mxu1 %v3773_v1 }
  0xa1   : > { %3704 = vmatpush3.bf16.msra.mxu1 %v3773_v1 }
  0xa2   : > { %3705 = vmatprep.subr.bf16.mxu1 %v3774_v32 }
  0xa4   : > { %v4217_v28 = vpop.permute.xlu0 %1022  ;;  %v4219_v29 = vpop.permute.xlu1 %1027 }
  0xa5   : > { %3706 = vmatpush3.bf16.msra.mxu1 %v3774_v32 }
  0xa6   : > { %3656 = vmatmul.mubr.msk.bf16.gmra.mrb[68].mxu0 %vm419_vm2, %v378_v27  ;;  %3707 = vmatprep.subr.bf16.mxu1 %v3775_v41 }
  0xa8   : > { %v4225_v30 = vpop.permute.xlu0 %1032  ;;  %v4227_v31 = vpop.permute.xlu1 %1037 }
  0xa9   : > { %3708 = vmatpush3.bf16.msra.mxu1 %v3775_v41 }
  0xaa   : > { %3709 = vmatprep.subr.bf16.mxu1 %v3776_v42 }
  0xac   : > { %v4232_v33 = vpop.permute.xlu0 %1042  ;;  %v4234_v34 = vpop.permute.xlu1 %1047 }
  0xad   : > { %3710 = vmatpush3.bf16.msra.mxu1 %v3776_v42  ;;  %v4318_v42 = vld [vmem:[%s6245_s4] ss:$0 sm:$0xff] }
  0xb0   : > { %v4236_v35 = vpop.permute.xlu0 %1052  ;;  %v4238_v36 = vpop.permute.xlu1 %1057 }
  0xb4   : > { %v4240_v37 = vpop.permute.xlu0 %1062  ;;  %v4242_v38 = vpop.permute.xlu1 %1067 }
  0xb8   : > { %v4244_v39 = vpop.permute.xlu0 %1072  ;;  %v4246_v40 = vpop.permute.xlu1 %1077 }
  0xb9   : > { %6304 = vst [vmem:[#allocation2_spill] sm:$0xff] %v4244_v39  ;;  %6305 = vst [vmem:[#allocation3_spill] sm:$0xff] %v4246_v40 }
  0xbc   : > { %v4254_v43 = vpop.permute.xlu0 %1082  ;;  %v4256_v44 = vpop.permute.xlu1 %1087 }
  0xbd   : > { %6306 = vst [vmem:[#allocation4_spill] sm:$0xff] %v4254_v43  ;;  %6307 = vst [vmem:[#allocation5_spill] sm:$0xff] %v4256_v44 }
  0xc0   : > { %v4258_v45 = vpop.permute.xlu0 %1092  ;;  %v4260_v46 = vpop.permute.xlu1 %1097 }
  0xc1   : > { %6308 = vst [vmem:[#allocation6_spill] sm:$0xff] %v4258_v45  ;;  %6309 = vst [vmem:[#allocation7_spill] sm:$0xff] %v4260_v46 }
  0xc4   : > { %v4262_v47 = vpop.permute.xlu0 %1102  ;;  %v4264_v48 = vpop.permute.xlu1 %1107 }
  0xc5   : > { %6310 = vst [vmem:[#allocation8_spill] sm:$0xff] %v4262_v47  ;;  %6311 = vst [vmem:[#allocation9_spill] sm:$0xff] %v4264_v48 }
  0xc8   : > { %v4266_v49 = vpop.permute.xlu0 %1112  ;;  %v4268_v50 = vpop.permute.xlu1 %1117 }
  0xc9   : > { %6312 = vst [vmem:[#allocation10_spill] sm:$0xff] %v4266_v49  ;;  %6313 = vst [vmem:[#allocation11_spill] sm:$0xff] %v4268_v50 }
  0xcc   : > { %v4270_v51 = vpop.permute.xlu0 %1122  ;;  %v4272_v52 = vpop.permute.xlu1 %1127 }
  0xcd   : > { %6314 = vst [vmem:[#allocation12_spill] sm:$0xff] %v4270_v51  ;;  %6315 = vst [vmem:[#allocation13_spill] sm:$0xff] %v4272_v52 }
  0xd0   : > { %v4274_v53 = vpop.permute.xlu0 %1132  ;;  %v4276_v54 = vpop.permute.xlu1 %1137 }
  0xd1   : > { %6316 = vst [vmem:[#allocation14_spill] sm:$0xff] %v4274_v53  ;;  %6317 = vst [vmem:[#allocation15_spill] sm:$0xff] %v4276_v54 }
  0xd4   : > { %v4278_v55 = vpop.permute.xlu0 %1142  ;;  %v4280_v56 = vpop.permute.xlu1 %1147 }
  0xd5   : > { %6318 = vst [vmem:[#allocation16_spill] sm:$0xff] %v4278_v55  ;;  %6319 = vst [vmem:[#allocation17_spill] sm:$0xff] %v4280_v56  ;;  %v4394_v55 = vld [vmem:[%s6245_s4 + $0x5] ss:$0 sm:$0xff] }
  0xd8   : > { %v4287_v58 = vpop.permute.xlu0 %1152  ;;  %v4289_v59 = vpop.permute.xlu1 %1157 }
  0xd9   : > { %6320 = vst [vmem:[#allocation18_spill] sm:$0xff] %v4287_v58  ;;  %6321 = vst [vmem:[#allocation19_spill] sm:$0xff] %v4289_v59 }
  0xdc   : > { %v1163_v27 = vpop.permute.xlu0 %1162  ;;  %v1168_v32 = vpop.permute.xlu1 %1167 }
  0xf1   : > { %v539_v60 = vpop.f32.mrb[0].mxu0  ;;  %v683_v62 = vpop.f32.mrb[0].mxu1 }
  0xf2   : > { %v759_v63 = vmul.f32 %v4285_v57, %v539_v60  ;;  %v3589_v0 = vpop.f32.mrb[1].mxu0  ;;  %v795_v2 = vmul.f32 %v4285_v57, %v683_v62  ;;  %v3661_v3 = vpop.f32.mrb[1].mxu1 }
  0xf3   : > { %v542_v4 = vpop.f32.mrb[2].mxu0  ;;  %v686_v5 = vpop.f32.mrb[2].mxu1 }
  0xf4   : > { %v818_v6 = vadd.f32 %v4294_v61, %v759_v63  ;;  %v760_v7 = vmul.f32 %v4285_v57, %v542_v4  ;;  %v3590_v8 = vpop.f32.mrb[3].mxu0  ;;  %v854_v9 = vadd.f32 %v4294_v61, %v795_v2  ;;  %v796_v12 = vmul.f32 %v4285_v57, %v686_v5  ;;  %v3662_v13 = vpop.f32.mrb[3].mxu1 }
  0xf6   : > { %v872_v14 = vmax.f32 %v818_v6, 0.0  ;;  %v819_v17 = vadd.f32 %v4294_v61, %v760_v7  ;;  %v855_v18 = vadd.f32 %v4294_v61, %v796_v12  ;;  %v908_v1 = vmax.f32 %v854_v9, 0.0 }
  0xf8   : > { %v1250_v23 = vmul.f32 %v4179_v10, %v872_v14  ;;  %v873_v26 = vmax.f32 %v819_v17, 0.0  ;;  %v909_v41 = vmax.f32 %v855_v18, 0.0  ;;  %v4329_v17 = vmul.f32 %v1163_v27, %v908_v1 }
  0xf9   : > { %v547_v60 = vpop.f32.mrb[4].mxu0  ;;  %v691_v62 = vpop.f32.mrb[4].mxu1 }
  0xfa   : > { %v1346_v63 = vmul.f32 %v4307_v21, %v1250_v23  ;;  %v1592_v0 = vmul.f32 %v4312_v22, %v1250_v23  ;;  %v1251_v2 = vmul.f32 %v4191_v15, %v873_v26  ;;  %v3593_v10 = vpop.f32.mrb[5].mxu0  ;;  %v3665_v3 = vpop.f32.mrb[5].mxu1  ;;  %v761_v4 = vmul.f32 %v4285_v57, %v547_v60  ;;  %6323 = vst [vmem:[#allocation21_spill] sm:$0xff] %v4329_v17 }
  0xfb   : > { %v550_v5 = vpop.f32.mrb[6].mxu0  ;;  %v797_v6 = vmul.f32 %v4285_v57, %v691_v62  ;;  %v694_v7 = vpop.f32.mrb[6].mxu1  ;;  %v4325_v8 = vmul.f32 %v1168_v32, %v909_v41  ;;  %v1309_v9 = vmul.f32 %v4318_v42, %v1250_v23 }
  0xfc   : > { %v1443_v12 = vrot.slane %v1346_v63, 1  ;;  %v1347_v13 = vmul.f32 %v4307_v21, %v1251_v2  ;;  %v3594_v14 = vpop.f32.mrb[7].mxu0  ;;  %v3666_v15 = vpop.f32.mrb[7].mxu1  ;;  %v1593_v18 = vmul.f32 %v4312_v22, %v1251_v2  ;;  %v820_v26 = vadd.f32 %v4294_v61, %v761_v4 }
  0xfd   : > { %6322 = vst [vmem:[#allocation20_spill] sm:$0xff] %v4325_v8  ;;  %v762_v60 = vmul.f32 %v4285_v57, %v550_v5  ;;  %v856_v62 = vadd.f32 %v4294_v61, %v797_v6  ;;  %v1689_v10 = vrot.slane %v1592_v0, 2  ;;  %v798_v41 = vmul.f32 %v4285_v57, %v694_v7  ;;  %v1173_v0 = vpop.permute.xlu0 %1172 }
  0xfe   : > { %v1444_v32 = vrot.slane %v1347_v13, 1  ;;  %v4338_v23 = vmul.f32 %v4307_v21, %v4325_v8  ;;  %v1690_v63 = vrot.slane %v1593_v18, 2  ;;  %v874_v27 = vmax.f32 %v820_v26, 0.0 }
  0xff   : > { %v821_v1 = vadd.f32 %v4294_v61, %v762_v60  ;;  %v910_v3 = vmax.f32 %v856_v62, 0.0  ;;  %v1310_v14 = vmul.f32 %v4318_v42, %v1251_v2  ;;  %v4344_v5 = vadd.f32 %v4294_v61, %v798_v41 }
 0x100   : > { %6324 = vst [vmem:[#allocation22_spill] sm:$0xff] %v4338_v23  ;;  %v1445_v4 = vsel %vm1442_vm3, %v1443_v12, %v1444_v32  ;;  %v1691_v13 = vsel %vm1688_vm4, %v1689_v10, %v1690_v63  ;;  %v1252_v15 = vmul.f32 %v4181_v11, %v874_v27  ;;  %v4364_v27 = vld [vmem:[%s6245_s4 + $0x4] ss:$0 sm:$0xff] }
 0x101   : > { %v1555_v7 = vadd.f32 %v1445_v4, %v1309_v9  ;;  %v875_v18 = vmax.f32 %v821_v1, 0.0  ;;  %v555_v26 = vpop.f32.mrb[8].mxu0  ;;  %v699_v8 = vpop.f32.mrb[8].mxu1  ;;  %v4351_v12 = vmul.f32 %v1173_v0, %v910_v3 }
 0x102   : > { %v763_v60 = vmul.f32 %v4285_v57, %v555_v26  ;;  %v3597_v62 = vpop.f32.mrb[9].mxu0  ;;  %v799_v2 = vmul.f32 %v4285_v57, %v699_v8  ;;  %v3669_v41 = vpop.f32.mrb[9].mxu1  ;;  %v1348_v9 = vmul.f32 %v4307_v21, %v1252_v15  ;;  %v1594_v10 = vmul.f32 %v4312_v22, %v1252_v15 }
 0x103   : > { %6325 = vst [vmem:[#allocation23_spill] sm:$0xff] %v4351_v12  ;;  %v4354_v59 = vadd.f32 %v1691_v13, %v1555_v7  ;;  %v4359_v11 = vmul.f32 %v4193_v16, %v875_v18  ;;  %v558_v8 = vpop.f32.mrb[10].mxu0  ;;  %v4366_v1 = vpop.f32.mrb[10].mxu1  ;;  %v1384_v16 = vmul.f32 %v4307_v21, %v4351_v12 }
 0x104   : > { %v822_v3 = vadd.f32 %v4294_v61, %v763_v60  ;;  %v764_v4 = vmul.f32 %v4285_v57, %v558_v8  ;;  %v3598_v0 = vpop.f32.mrb[11].mxu0  ;;  %v4371_v7 = vadd.f32 %v4294_v61, %v799_v2  ;;  %v3670_v13 = vpop.f32.mrb[11].mxu1  ;;  %v1446_v15 = vrot.slane %v1348_v9, 1 }
 0x105   : > { %v1692_v18 = vrot.slane %v1594_v10, 2  ;;  %v1311_v26 = vmul.f32 %v4318_v42, %v4359_v11  ;;  %v1349_v62 = vmul.f32 %v4307_v21, %v4359_v11  ;;  %v1595_v60 = vmul.f32 %v4312_v22, %v4359_v11 }
 0x106   : > { %v4383_v41 = vmul.f32 %v4364_v27, %v4359_v11  ;;  %v876_v2 = vmax.f32 %v822_v3, 0.0  ;;  %v823_v8 = vadd.f32 %v4294_v61, %v764_v4  ;;  %v1447_v0 = vsel %vm1442_vm3, %v1444_v32, %v1446_v15  ;;  %v1178_v3 = vpop.permute.xlu1 %1177 }
 0x107   : > { %v1693_v9 = vsel %vm1688_vm4, %v1690_v63, %v1692_v18  ;;  %v1448_v10 = vrot.slane %v1349_v62, 1  ;;  %v1506_v13 = vrot.slane %v1384_v16, 1  ;;  %v1556_v17 = vadd.f32 %v1447_v0, %v1310_v14 }
 0x108   : > { %v1694_v6 = vrot.slane %v1595_v60, 2  ;;  %v4389_v58 = vmul.f32 %v4198_v19, %v876_v2  ;;  %v877_v56 = vmax.f32 %v823_v8, 0.0  ;;  %v6326_v4 = vrot.slane %v4338_v23, 1 }
 0x109   : > { %v563_v54 = vpop.f32.mrb[12].mxu0  ;;  %v4403_v63 = vmul.f32 %v4312_v22, %v4351_v12  ;;  %v4407_v19 = vmul.f32 %v4364_v27, %v4351_v12  ;;  %v4411_v14 = vmul.f32 %v4394_v55, %v4351_v12  ;;  %v707_v16 = vpop.f32.mrb[12].mxu1  ;;  %v4413_v15 = vadd.f32 %v1693_v9, %v1556_v17 }
 0x10a   : > { %v4399_v32 = vsel %vm1442_vm3, %v6326_v4, %v1506_v13  ;;  %v1255_v18 = vmul.f32 %v4200_v20, %v877_v56  ;;  %v1312_v62 = vmul.f32 %v4318_v42, %v4389_v58  ;;  %v1350_v60 = vmul.f32 %v4307_v21, %v4389_v58  ;;  %v3601_v2 = vpop.f32.mrb[13].mxu0  ;;  %v3673_v8 = vpop.f32.mrb[13].mxu1 }
 0x10b   : > { %6327 = vst [vmem:[#allocation24_spill] sm:$0xff] %v4399_v32  ;;  %6328 = vst [vmem:[#allocation25_spill] sm:$0xff] %v4403_v63  ;;  %v1596_v0 = vmul.f32 %v4312_v22, %v4389_v58  ;;  %v4424_v13 = vmul.f32 %v4364_v27, %v4389_v58  ;;  %v765_v17 = vmul.f32 %v4285_v57, %v563_v54  ;;  %v566_v9 = vpop.f32.mrb[14].mxu0  ;;  %v710_v56 = vpop.f32.mrb[14].mxu1 }
 0x10c   : > { %6329 = vst [vmem:[#allocation26_spill] sm:$0xff] %v4407_v19  ;;  %6330 = vst [vmem:[#allocation27_spill] sm:$0xff] %v4411_v14  ;;  %v1351_v4 = vmul.f32 %v4307_v21, %v1255_v18  ;;  %v1449_v23 = vrot.slane %v1350_v60, 1  ;;  %v1597_v32 = vmul.f32 %v4312_v22, %v1255_v18  ;;  %v1909_v2 = vmul.f32 %v4364_v27, %v1255_v18  ;;  %v3602_v8 = vpop.f32.mrb[15].mxu0  ;;  %v3674_v12 = vpop.f32.mrb[15].mxu1 }
 0x10d   : > { %v1695_v53 = vrot.slane %v1596_v0, 2  ;;  %v6257_v52 = vrot.slane %v4424_v13, 1  ;;  %v4433_v51 = vmul.f32 %v4394_v55, %v1255_v18  ;;  %v824_v54 = vadd.f32 %v4294_v61, %v765_v17  ;;  %v1183_v17 = vpop.permute.xlu0 %1182 }
 0x10e   : > { %v1450_v20 = vsel %vm1442_vm3, %v1448_v10, %v1449_v23  ;;  %v1451_v63 = vrot.slane %v1351_v4, 1  ;;  %v1697_v50 = vrot.slane %v1597_v32, 2  ;;  %v2006_v49 = vrot.slane %v1909_v2, 1  ;;  %v1188_v32 = vpop.permute.xlu1 %1187 }
 0x10f   : > { %v1557_v60 = vadd.f32 %v1450_v20, %v1311_v26  ;;  %v1696_v48 = vsel %vm1688_vm4, %v1694_v6, %v1695_v53  ;;  %v878_v8 = vmax.f32 %v824_v54, 0.0  ;;  %v766_v10 = vmul.f32 %v4285_v57, %v566_v9 }
 0x110   : > { %v1452_v12 = vsel %vm1442_vm3, %v1449_v23, %v1451_v63  ;;  %v1698_v0 = vsel %vm1688_vm4, %v1695_v53, %v1697_v50  ;;  %v4444_v18 = vsel %vm1442_vm3, %v6257_v52, %v2006_v49  ;;  %v800_v9 = vmul.f32 %v4285_v57, %v4366_v1 }
 0x111   : > { %v1558_v4 = vadd.f32 %v1452_v12, %v1312_v62  ;;  %v4447_v26 = vadd.f32 %v1696_v48, %v1557_v60  ;;  %v4450_v6 = vmul.f32 %v4210_v24, %v878_v8  ;;  %v571_v20 = vpop.f32.mrb[16].mxu0  ;;  %v715_v63 = vpop.f32.mrb[16].mxu1  ;;  %v825_v50 = vadd.f32 %v4294_v61, %v766_v10 }
 0x112   : > { %v767_v53 = vmul.f32 %v4285_v57, %v571_v20  ;;  %v3605_v49 = vpop.f32.mrb[17].mxu0  ;;  %v3677_v62 = vpop.f32.mrb[17].mxu1  ;;  %v6331_v24 = vmax.f32 %v4344_v5, 0.0  ;;  %v801_v8 = vmul.f32 %v4285_v57, %v707_v16  ;;  %v912_v12 = vmax.f32 %v4371_v7, 0.0 }
 0x113   : > { %v4458_v48 = vadd.f32 %v1698_v0, %v1558_v4  ;;  %v574_v54 = vpop.f32.mrb[18].mxu0  ;;  %v718_v10 = vpop.f32.mrb[18].mxu1  ;;  %v879_v20 = vmax.f32 %v825_v50, 0.0  ;;  %v859_v1 = vadd.f32 %v4294_v61, %v800_v9  ;;  %v802_v5 = vmul.f32 %v4285_v57, %v710_v56 }
 0x114   : > { %v4462_v60 = vmul.f32 %v1178_v3, %v6331_v24  ;;  %v826_v49 = vadd.f32 %v4294_v61, %v767_v53  ;;  %v768_v2 = vmul.f32 %v4285_v57, %v574_v54  ;;  %v3606_v23 = vpop.f32.mrb[19].mxu0  ;;  %v3678_v0 = vpop.f32.mrb[19].mxu1  ;;  %v860_v4 = vadd.f32 %v4294_v61, %v801_v8 }
 0x115   : > { %v4470_v62 = vmul.f32 %v1183_v17, %v912_v12  ;;  %v803_v3 = vmul.f32 %v4285_v57, %v715_v63  ;;  %v4475_v7 = vmul.f32 %v4212_v25, %v879_v20  ;;  %v913_v53 = vmax.f32 %v859_v1, 0.0  ;;  %v1193_v25 = vpop.permute.xlu0 %1192 }
 0x116   : > { %6332 = vst [vmem:[#allocation28_spill] sm:$0xff] %v4462_v60  ;;  %v880_v16 = vmax.f32 %v826_v49, 0.0  ;;  %v827_v50 = vadd.f32 %v4294_v61, %v768_v2  ;;  %v861_v23 = vadd.f32 %v4294_v61, %v802_v5  ;;  %v914_v54 = vmax.f32 %v860_v4, 0.0  ;;  %v1198_v2 = vpop.permute.xlu1 %1197 }
 0x117   : > { %6333 = vst [vmem:[#allocation29_spill] sm:$0xff] %v4470_v62  ;;  %v4481_v9 = vmul.f32 %v4307_v21, %v4470_v62  ;;  %v862_v17 = vadd.f32 %v4294_v61, %v803_v3  ;;  %v4487_v24 = vmul.f32 %v1188_v32, %v913_v53  ;;  %v804_v8 = vmul.f32 %v4285_v57, %v718_v10  ;;  %v4621_v62 = vld [vmem:[%s6245_s4 + $0x3] ss:$0 sm:$0xff] }
 0x118   : > { %v4485_v56 = vmul.f32 %v4217_v28, %v880_v16  ;;  %v881_v63 = vmax.f32 %v827_v50, 0.0  ;;  %v4491_v49 = vmul.f32 %v1193_v25, %v914_v54  ;;  %v915_v1 = vmax.f32 %v861_v23, 0.0 }
 0x119   : > { %6334 = vst [vmem:[#allocation30_spill] sm:$0xff] %v4481_v9  ;;  %6335 = vst [vmem:[#allocation31_spill] sm:$0xff] %v4487_v24  ;;  %v579_v12 = vpop.f32.mrb[20].mxu0  ;;  %v723_v0 = vpop.f32.mrb[20].mxu1  ;;  %v916_v5 = vmax.f32 %v862_v17, 0.0  ;;  %v1387_v17 = vmul.f32 %v4307_v21, %v4487_v24  ;;  %v4517_v54 = vmul.f32 %v4312_v22, %v4487_v24  ;;  %v4528_v19 = vmul.f32 %v4364_v27, %v4487_v24 }
 0x11a   : > { %6336 = vst [vmem:[#allocation32_spill] sm:$0xff] %v4491_v49  ;;  %v4495_v4 = vmul.f32 %v4307_v21, %v4485_v56  ;;  %v4499_v28 = vmul.f32 %v4312_v22, %v4485_v56  ;;  %v4503_v32 = vmul.f32 %v4364_v27, %v4485_v56  ;;  %v4507_v10 = vmul.f32 %v4394_v55, %v4485_v56  ;;  %v3609_v3 = vpop.f32.mrb[21].mxu0  ;;  %v3681_v16 = vpop.f32.mrb[21].mxu1 }
 0x11b   : > { %v4510_v50 = vmul.f32 %v4219_v29, %v881_v63  ;;  %v769_v53 = vmul.f32 %v4285_v57, %v579_v12  ;;  %v582_v23 = vpop.f32.mrb[22].mxu0  ;;  %6339 = vst [vmem:[#allocation35_spill] sm:$0xff] %v4517_v54  ;;  %v726_v25 = vpop.f32.mrb[22].mxu1  ;;  %v1511_v49 = vrot.slane %v1387_v17, 1  ;;  %6340 = vst [vmem:[#allocation36_spill] sm:$0xff] %v4528_v19  ;;  %v4532_v52 = vmul.f32 %v4394_v55, %v4487_v24 }
 0x11c   : > { %6337 = vst [vmem:[#allocation33_spill] sm:$0xff] %v4495_v4  ;;  %6338 = vst [vmem:[#allocation34_spill] sm:$0xff] %v4499_v28  ;;  %v3610_v63 = vpop.f32.mrb[23].mxu0  ;;  %v3682_v16 = vpop.f32.mrb[23].mxu1  ;;  %v770_v20 = vmul.f32 %v4285_v57, %v582_v23  ;;  %v4535_v47 = vadd.f32 %v4294_v61, %v804_v8  ;;  %v6343_v23 = vrot.slane %v4481_v9, 1  ;;  %v805_v14 = vmul.f32 %v4285_v57, %v723_v0 }
 0x11d   : > { %v828_v12 = vadd.f32 %v4294_v61, %v769_v53  ;;  %6341 = vst [vmem:[#allocation37_spill] sm:$0xff] %v4532_v52  ;;  %v4537_v63 = vmul.f32 %v1198_v2, %v915_v1  ;;  %v1203_v29 = vpop.permute.xlu0 %1202  ;;  %v1208_v2 = vpop.permute.xlu1 %1207  ;;  %v806_v0 = vmul.f32 %v4285_v57, %v726_v25  ;;  %v1838_v45 = vmul.f32 %v4621_v62, %v4359_v11 }
 0x11e   : > { %v829_v53 = vadd.f32 %v4294_v61, %v770_v20  ;;  %v4543_v17 = vsel %vm1442_vm3, %v6343_v23, %v1511_v49  ;;  %v4548_v24 = vmul.f32 %v1203_v29, %v916_v5  ;;  %v4582_v29 = vld [vmem:[%s6245_s4 + $0x7] ss:$0 sm:$0xff] }
 0x11f   : > { %6342 = vst [vmem:[#allocation38_spill] sm:$0xff] %v4537_v63  ;;  %v882_v16 = vmax.f32 %v828_v12, 0.0  ;;  %6344 = vst [vmem:[#allocation39_spill] sm:$0xff] %v4543_v17  ;;  %v4552_v8 = vmul.f32 %v4307_v21, %v4537_v63  ;;  %v864_v12 = vadd.f32 %v4294_v61, %v805_v14 }
 0x120   : > { %6345 = vst [vmem:[#allocation40_spill] sm:$0xff] %v4548_v24  ;;  %v883_v1 = vmax.f32 %v829_v53, 0.0  ;;  %v1390_v5 = vmul.f32 %v4307_v21, %v4548_v24  ;;  %v4565_v9 = vmul.f32 %v4312_v22, %v4548_v24  ;;  %v4572_v14 = vmul.f32 %v4364_v27, %v4548_v24 }
 0x121   : > { %6346 = vst [vmem:[#allocation41_spill] sm:$0xff] %v4552_v8  ;;  %v4555_v20 = vmul.f32 %v4225_v30, %v882_v16  ;;  %v587_v49 = vpop.f32.mrb[24].mxu0  ;;  %v731_v23 = vpop.f32.mrb[24].mxu1  ;;  %v865_v53 = vadd.f32 %v4294_v61, %v806_v0  ;;  %v918_v44 = vmax.f32 %v864_v12, 0.0 }
 0x122   : > { %v771_v3 = vmul.f32 %v4285_v57, %v587_v49  ;;  %v3613_v54 = vpop.f32.mrb[25].mxu0  ;;  %6347 = vst [vmem:[#allocation42_spill] sm:$0xff] %v4565_v9  ;;  %v3685_v30 = vpop.f32.mrb[25].mxu1  ;;  %v4568_v16 = vmul.f32 %v4227_v31, %v883_v1  ;;  %6349 = vst [vmem:[#allocation44_spill] sm:$0xff] %v4572_v14  ;;  %v1516_v1 = vrot.slane %v1390_v5, 1  ;;  %v807_v9 = vmul.f32 %v4285_v57, %v731_v23 }
 0x123   : > { %v4576_v54 = vmul.f32 %v4394_v55, %v4548_v24  ;;  %v590_v25 = vpop.f32.mrb[26].mxu0  ;;  %v734_v49 = vpop.f32.mrb[26].mxu1 }
 0x124   : > { %6348 = vst [vmem:[#allocation43_spill] sm:$0xff] %v4568_v16  ;;  %v830_v31 = vadd.f32 %v4294_v61, %v771_v3  ;;  %v772_v17 = vmul.f32 %v4285_v57, %v590_v25  ;;  %v3614_v52 = vpop.f32.mrb[27].mxu0  ;;  %v3686_v63 = vpop.f32.mrb[27].mxu1  ;;  %v4589_v24 = vmul.f32 %v4307_v21, %v4568_v16  ;;  %v4593_v0 = vmul.f32 %v4312_v22, %v4568_v16 }
 0x125   : > { %6350 = vst [vmem:[#allocation45_spill] sm:$0xff] %v4576_v54  ;;  %v4597_v19 = vmul.f32 %v4364_v27, %v4568_v16  ;;  %v4601_v3 = vmul.f32 %v4582_v29, %v4568_v16  ;;  %v4606_v52 = vld [vmem:[%s6245_s4 + $0x8] ss:$0 sm:$0xff]  ;;  %v6354_v25 = vrot.slane %v4552_v8, 1  ;;  %v1218_v14 = vpop.permute.xlu1 %1217  ;;  %v808_v60 = vmul.f32 %v4285_v57, %v734_v49 }
 0x126   : > { %6351 = vst [vmem:[#allocation46_spill] sm:$0xff] %v4589_v24  ;;  %6352 = vst [vmem:[#allocation47_spill] sm:$0xff] %v4593_v0  ;;  %v4610_v63 = vmul.f32 %v4606_v52, %v4568_v16  ;;  %v884_v5 = vmax.f32 %v830_v31, 0.0  ;;  %v919_v24 = vmax.f32 %v865_v53, 0.0  ;;  %v1839_v0 = vmul.f32 %v4621_v62, %v4389_v58 }
 0x127   : > { %6353 = vst [vmem:[#allocation48_spill] sm:$0xff] %v4597_v19  ;;  %v4615_v30 = vsel %vm1442_vm3, %v6354_v25, %v1516_v1  ;;  %v831_v1 = vadd.f32 %v4294_v61, %v772_v17  ;;  %v917_v25 = vmax.f32 %v4535_v47, 0.0  ;;  %v4641_v17 = vadd.f32 %v4294_v61, %v807_v9 }
 0x128   : > { %6355 = vst [vmem:[#allocation49_spill] sm:$0xff] %v4615_v30  ;;  %v4628_v8 = vmul.f32 %v4232_v33, %v884_v5  ;;  %v1213_v30 = vpop.permute.xlu0 %1212  ;;  %v4647_v53 = vadd.f32 %v4294_v61, %v808_v60  ;;  %v4649_v49 = vmul.f32 %v1218_v14, %v919_v24  ;;  %v2712_v39 = vmul.f32 %v4606_v52, %v4475_v7 }
 0x129   : > { %v595_v46 = vpop.f32.mrb[28].mxu0  ;;  %v4636_v31 = vpop.f32.mrb[28].mxu1  ;;  %v885_v33 = vmax.f32 %v831_v1, 0.0  ;;  %v4638_v5 = vmul.f32 %v1208_v2, %v917_v25  ;;  %v4644_v12 = vmul.f32 %v1213_v30, %v918_v44  ;;  %v1870_v44 = vadd.f32 %v1838_v45, %v4354_v59 }
 0x12a   : > { %6356 = vst [vmem:[#allocation50_spill] sm:$0xff] %v4628_v8  ;;  %v773_v47 = vmul.f32 %v4285_v57, %v595_v46  ;;  %v3617_v23 = vpop.f32.mrb[29].mxu0  ;;  %v3689_v54 = vpop.f32.mrb[29].mxu1  ;;  %6359 = vst [vmem:[#allocation53_spill] sm:$0xff] %v4649_v49  ;;  %v4665_v24 = vmul.f32 %v4307_v21, %v4649_v49  ;;  %v4669_v14 = vmul.f32 %v4312_v22, %v4649_v49 }
 0x12b   : > { %6357 = vst [vmem:[#allocation51_spill] sm:$0xff] %v4638_v5  ;;  %6358 = vst [vmem:[#allocation52_spill] sm:$0xff] %v4644_v12  ;;  %v4653_v1 = vpop.f32.mrb[30].mxu0  ;;  %v4655_v2 = vpop.f32.mrb[30].mxu1  ;;  %v4658_v9 = vmul.f32 %v4234_v34, %v885_v33  ;;  %v2003_v54 = vrot.slane %v4383_v41, 1  ;;  %v4673_v34 = vmul.f32 %v4364_v27, %v4649_v49  ;;  %v4677_v25 = vmul.f32 %v4394_v55, %v4649_v49 }
 0x12c   : > { %v832_v46 = vadd.f32 %v4294_v61, %v773_v47  ;;  %v3618_v60 = vpop.f32.mrb[31].mxu0  ;;  %v3690_v30 = vpop.f32.mrb[31].mxu1  ;;  %v1871_v59 = vadd.f32 %v1839_v0, %v4413_v15  ;;  %v6363_v41 = vrot.slane %v4424_v13, 1  ;;  %v2152_v47 = vmul.f32 %v4394_v55, %v4359_v11  ;;  %v4688_v23 = vld [vmem:[%s6245_s4 + $0x6] ss:$0 sm:$0xff] }
 0x12d   : > { %6360 = vst [vmem:[#allocation54_spill] sm:$0xff] %v4658_v9  ;;  %6361 = vst [vmem:[#allocation55_spill] sm:$0xff] %v4673_v34  ;;  %v2153_v11 = vmul.f32 %v4394_v55, %v4389_v58  ;;  %v2397_v60 = vmul.f32 %v4688_v23, %v4450_v6  ;;  %v2398_v30 = vmul.f32 %v4688_v23, %v4475_v7 }
 0x12e   : > { %6362 = vst [vmem:[#allocation56_spill] sm:$0xff] %v4677_v25  ;;  %v886_v45 = vmax.f32 %v832_v46, 0.0  ;;  %v2005_v33 = vsel %vm1442_vm3, %v2003_v54, %v6363_v41  ;;  %v2116_v54 = vadd.f32 %v4444_v18, %v1871_v59  ;;  %v1223_v41 = vpop.permute.xlu0 %1222  ;;  %v2248_v49 = vrot.slane %v2152_v47, 2 }
 0x12f   : > { %v2115_v0 = vadd.f32 %v2005_v33, %v1870_v44  ;;  %v2466_v15 = vmul.f32 %v4582_v29, %v4450_v6  ;;  %v2467_v47 = vmul.f32 %v4582_v29, %v4475_v7  ;;  %v2468_v25 = vmul.f32 %v4582_v29, %v4485_v56 }
 0x130   : > { %v4695_v13 = vmul.f32 %v4236_v35, %v886_v45  ;;  %v2249_v45 = vrot.slane %v2153_v11, 2  ;;  %v2711_v9 = vmul.f32 %v4606_v52, %v4450_v6 }
 0x131   : > { %v4706_v46 = vpop.f32.mrb[32].mxu0  ;;  %v4708_v35 = vpop.f32.mrb[32].mxu1  ;;  %v2562_v34 = vrot.slane %v2466_v15, 1  ;;  %v2563_v43 = vrot.slane %v2467_v47, 1  ;;  %v2565_v40 = vrot.slane %v2468_v25, 1 }
 0x132   : > { %6364 = vst [vmem:[#allocation57_spill] sm:$0xff] %v4695_v13  ;;  %v4712_v18 = vmul.f32 %v4307_v21, %v4695_v13  ;;  %v4716_v58 = vmul.f32 %v4312_v22, %v4695_v13  ;;  %v4720_v44 = vmul.f32 %v4364_v27, %v4695_v13  ;;  %v3621_v59 = vpop.f32.mrb[33].mxu0  ;;  %v3693_v33 = vpop.f32.mrb[33].mxu1  ;;  %v2713_v13 = vmul.f32 %v4606_v52, %v4485_v56 }
 0x133   : > { %v4728_v8 = vpop.f32.mrb[34].mxu0  ;;  %v4730_v16 = vpop.f32.mrb[34].mxu1  ;;  %v2250_v59 = vsel %vm1688_vm4, %v2248_v49, %v2249_v45  ;;  %v6368_v33 = vrot.slane %v4433_v51, 2  ;;  %v809_v49 = vmul.f32 %v4285_v57, %v4636_v31  ;;  %v774_v56 = vmul.f32 %v4285_v57, %v4653_v1 }
 0x134   : > { %6365 = vst [vmem:[#allocation58_spill] sm:$0xff] %v4712_v18  ;;  %6366 = vst [vmem:[#allocation59_spill] sm:$0xff] %v4716_v58  ;;  %v3622_v19 = vpop.f32.mrb[35].mxu0  ;;  %v3694_v28 = vpop.f32.mrb[35].mxu1  ;;  %v2360_v15 = vadd.f32 %v2250_v59, %v2115_v0  ;;  %v2807_v18 = vrot.slane %v2711_v9, 2  ;;  %v2810_v0 = vrot.slane %v2713_v13, 2 }
 0x135   : > { %6367 = vst [vmem:[#allocation60_spill] sm:$0xff] %v4720_v44  ;;  %v2252_v44 = vsel %vm1688_vm4, %v2249_v45, %v6368_v33  ;;  %v2564_v45 = vsel %vm1442_vm3, %v2562_v34, %v2563_v43  ;;  %v2566_v19 = vsel %vm1442_vm3, %v2563_v43, %v2565_v40  ;;  %v2808_v28 = vrot.slane %v2712_v39, 2  ;;  %v1233_v9 = vpop.permute.xlu0 %1232  ;;  %v4758_v40 = vld [vmem:[%s6246_s5] ss:$0 sm:$0xff] }
 0x136   : > { %v2361_v4 = vadd.f32 %v2252_v44, %v2116_v54  ;;  %v2429_v11 = vadd.f32 %v2397_v60, %v2360_v15  ;;  %v868_v25 = vadd.f32 %v4294_v61, %v809_v49  ;;  %v920_v54 = vmax.f32 %v4641_v17, 0.0  ;;  %v1228_v44 = vpop.permute.xlu1 %1227 }
 0x137   : > { %v921_v31 = vmax.f32 %v4647_v53, 0.0  ;;  %v2809_v34 = vsel %vm1688_vm4, %v2807_v18, %v2808_v28  ;;  %v2811_v39 = vsel %vm1688_vm4, %v2808_v28, %v2810_v0  ;;  %v833_v53 = vadd.f32 %v4294_v61, %v774_v56  ;;  %v4770_v18 = vld [vmem:[%s6246_s5 + $0x1] ss:$0 sm:$0xff] }
 0x138   : > { %v2430_v51 = vadd.f32 %v2398_v30, %v2361_v4  ;;  %v2674_v47 = vadd.f32 %v2564_v45, %v2429_v11  ;;  %v4760_v43 = vmul.f32 %v1223_v41, %v920_v54  ;;  %v922_v17 = vmax.f32 %v868_v25, 0.0 }
 0x139   : > { %v4751_v4 = vpop.f32.mrb[36].mxu0  ;;  %v4763_v13 = vmul.f32 %v1228_v44, %v921_v31  ;;  %v810_v41 = vmul.f32 %v4285_v57, %v4655_v2  ;;  %v1339_v15 = vmul.f32 %v4318_v42, %v4638_v5  ;;  %v1391_v49 = vmul.f32 %v4307_v21, %v4638_v5 }
 0x13a   : > { %v2675_v59 = vadd.f32 %v2566_v19, %v2430_v51  ;;  %6369 = vst [vmem:[#allocation61_spill] sm:$0xff] %v4760_v43  ;;  %v3625_v60 = vpop.f32.mrb[37].mxu0  ;;  %v2919_v30 = vadd.f32 %v2809_v34, %v2674_v47  ;;  %v1300_v33 = vmul.f32 %v1233_v9, %v922_v17  ;;  %v887_v28 = vmax.f32 %v833_v53, 0.0 }
 0x13b   : > { %6370 = vst [vmem:[#allocation62_spill] sm:$0xff] %v4763_v13  ;;  %v4765_v11 = vpop.f32.mrb[38].mxu0  ;;  %v1392_v0 = vmul.f32 %v4307_v21, %v4644_v12  ;;  %v869_v31 = vadd.f32 %v4294_v61, %v810_v41  ;;  %v1638_v41 = vmul.f32 %v4312_v22, %v4644_v12 }
 0x13c   : > { %v2920_v1 = vadd.f32 %v2811_v39, %v2675_v59  ;;  %v3626_v51 = vpop.f32.mrb[39].mxu0  ;;  %v2956_v45 = vmul.f32 %v4758_v40, %v2919_v30  ;;  %v4783_v25 = vmul.f32 %v4364_v27, %v1300_v33  ;;  %v4786_v2 = vmul.f32 %v4394_v55, %v1300_v33 }
 0x13d   : > { %v4789_v54 = vmul.f32 %v4582_v29, %v1300_v33  ;;  %v4792_v44 = vmul.f32 %v4606_v52, %v1300_v33  ;;  %v4797_v56 = vmul.f32 %v4238_v36, %v887_v28  ;;  %v923_v30 = vmax.f32 %v869_v31, 0.0  ;;  %v1238_v51 = vpop.permute.xlu1 %1237 }
 0x13e   : > { %v2957_v19 = vmul.f32 %v4758_v40, %v2920_v1  ;;  %v2993_v47 = vadd.f32 %v4770_v18, %v2956_v45  ;;  %v2081_v9 = vrot.slane %v4783_v25, 1  ;;  %v2326_v34 = vrot.slane %v4786_v2, 2 }
 0x13f   : > { %6371 = vst [vmem:[#allocation63_spill] sm:$0xff] %v4789_v54  ;;  %6372 = vst [vmem:[#allocation64_spill] sm:$0xff] %v4792_v44  ;;  %v1518_v1 = vrot.slane %v1391_v49, 1  ;;  %v1519_v53 = vrot.slane %v1392_v0, 1  ;;  %v1637_v36 = vmul.f32 %v4312_v22, %v4638_v5  ;;  %v1868_v45 = vmul.f32 %v4621_v62, %v4760_v43 }
 0x140   : > { %v2994_v59 = vadd.f32 %v4770_v18, %v2957_v19  ;;  %v1952_v19 = vmul.f32 %v4364_v27, %v4760_v43  ;;  %v1301_v25 = vmul.f32 %v1238_v51, %v923_v30  ;;  %v1953_v0 = vmul.f32 %v4364_v27, %v4763_v13 }
 0x141   : > { %v4804_v33 = vpop.f32.mrb[40].mxu0  ;;  %v1520_v49 = vsel %vm1442_vm3, %v1518_v1, %v1519_v53  ;;  %v2197_v2 = vmul.f32 %v4394_v55, %v4760_v43  ;;  %v1764_v31 = vrot.slane %v1637_v36, 2  ;;  %v1765_v17 = vrot.slane %v1638_v41, 2 }
 0x142   : > { %v3025_v60 = vpack.c.bf16 %v2994_v59, %v2993_v47  ;;  %v3629_v28 = vpop.f32.mrb[41].mxu0  ;;  %v1585_v59 = vadd.f32 %v1520_v49, %v1339_v15  ;;  %v2078_v39 = vrot.slane %v1952_v19, 1  ;;  %v2079_v54 = vrot.slane %v1953_v0, 1 }
 0x143   : > { %v4819_v47 = vpop.f32.mrb[42].mxu0  ;;  %v2323_v30 = vrot.slane %v2197_v2, 2  ;;  %v2427_v1 = vmul.f32 %v4688_v23, %v1301_v25  ;;  %v1766_v51 = vsel %vm1688_vm4, %v1764_v31, %v1765_v17  ;;  %v2511_v28 = vmul.f32 %v4582_v29, %v1301_v25 }
 0x144   : > { %3711 = vmatprep.mubr.bf16.mxu1 %v3025_v60  ;;  %v3630_v44 = vpop.f32.mrb[43].mxu0  ;;  %v2198_v60 = vmul.f32 %v4394_v55, %v4763_v13  ;;  %v2756_v43 = vmul.f32 %v4606_v52, %v1301_v25  ;;  %v775_v15 = vmul.f32 %v4285_v57, %v4706_v46  ;;  %v1831_v36 = vadd.f32 %v1766_v51, %v1585_v59 }
 0x145   : > { %v2080_v41 = vsel %vm1442_vm3, %v2078_v39, %v2079_v54  ;;  %v811_v19 = vmul.f32 %v4285_v57, %v4708_v35  ;;  %v2637_v49 = vrot.slane %v2511_v28, 1  ;;  %v1340_v31 = vmul.f32 %v4318_v42, %v4644_v12 }
 0x146   : > { %v2324_v44 = vrot.slane %v2198_v60, 2  ;;  %v2882_v0 = vrot.slane %v2756_v43, 2  ;;  %v834_v2 = vadd.f32 %v4294_v61, %v775_v15  ;;  %v1900_v5 = vadd.f32 %v1868_v45, %v1831_v36 }
 0x147   : > { %v870_v58 = vadd.f32 %v4294_v61, %v811_v19  ;;  %v6373_v46 = vrot.slane %v4665_v24, 1  ;;  %v6374_v43 = vrot.slane %v4669_v14, 2  ;;  %v1869_v42 = vmul.f32 %v4621_v62, %v4763_v13  ;;  %v1243_v19 = vpop.permute.xlu0 %1242 }
 0x148   : > { %v2325_v25 = vsel %vm1688_vm4, %v2323_v30, %v2324_v44  ;;  %v888_v60 = vmax.f32 %v834_v2, 0.0  ;;  %v2145_v28 = vadd.f32 %v2080_v41, %v1900_v5  ;;  %v2082_v15 = vsel %vm1442_vm3, %v2079_v54, %v2081_v9 }
 0x149   : > { %v1522_v39 = vsel %vm1442_vm3, %v1519_v53, %v6373_v46  ;;  %v4840_v59 = vpop.f32.mrb[44].mxu0  ;;  %v1768_v51 = vsel %vm1688_vm4, %v1765_v17, %v6374_v43  ;;  %v924_v30 = vmax.f32 %v870_v58, 0.0  ;;  %v2327_v24 = vsel %vm1688_vm4, %v2324_v44, %v2326_v34 }
 0x14a   : > { %v1586_v35 = vadd.f32 %v1522_v39, %v1340_v31  ;;  %v3633_v45 = vpop.f32.mrb[45].mxu0  ;;  %v4852_v53 = vmul.f32 %v4240_v37, %v888_v60  ;;  %v776_v14 = vmul.f32 %v4285_v57, %v4728_v8  ;;  %v812_v17 = vmul.f32 %v4285_v57, %v4730_v16 }
 0x14b   : > { %v4849_v36 = vpop.f32.mrb[46].mxu0  ;;  %v2390_v5 = vadd.f32 %v2325_v25, %v2145_v28  ;;  %v1302_v58 = vmul.f32 %v1243_v19, %v924_v30  ;;  %v1840_v54 = vmul.f32 %v4621_v62, %v4450_v6  ;;  %v1841_v9 = vmul.f32 %v4621_v62, %v4475_v7 }
 0x14c   : > { %v1832_v2 = vadd.f32 %v1768_v51, %v1586_v35  ;;  %v3634_v31 = vpop.f32.mrb[47].mxu0  ;;  %v835_v37 = vadd.f32 %v4294_v61, %v776_v14  ;;  %v871_v41 = vadd.f32 %v4294_v61, %v812_v17  ;;  %v1910_v8 = vmul.f32 %v4364_v27, %v4450_v6 }
 0x14d   : > { %v2459_v44 = vadd.f32 %v2427_v1, %v2390_v5  ;;  %v2428_v57 = vmul.f32 %v4688_v23, %v1302_v58  ;;  %v4868_v16 = vmul.f32 %v4582_v29, %v1302_v58  ;;  %v4871_v25 = vmul.f32 %v4606_v52, %v1302_v58 }
 0x14e   : > { %v1901_v34 = vadd.f32 %v1869_v42, %v1832_v2  ;;  %v889_v39 = vmax.f32 %v835_v37, 0.0  ;;  %v1872_v60 = vadd.f32 %v1840_v54, %v4447_v26  ;;  %v1873_v35 = vadd.f32 %v1841_v9, %v4458_v48 }
 0x14f   : > { %v2638_v61 = vrot.slane %v4868_v16, 1  ;;  %v2883_v43 = vrot.slane %v4871_v25, 2  ;;  %v1911_v1 = vmul.f32 %v4364_v27, %v4475_v7  ;;  %v2008_v51 = vrot.slane %v1910_v8, 1  ;;  %v4997_v25 = vld [vmem:[%s6245_s4 + $0x1] ss:$0 sm:$0xff] }
 0x150   : > { %v2146_v46 = vadd.f32 %v2082_v15, %v1901_v34  ;;  %v4882_v28 = vmul.f32 %v4242_v38, %v889_v39  ;;  %v2155_v30 = vmul.f32 %v4394_v55, %v4450_v6  ;;  %v2156_v26 = vmul.f32 %v4394_v55, %v4475_v7 }
 0x151   : > { %v4879_v42 = vpop.f32.mrb[48].mxu0  ;;  %v2639_v15 = vsel %vm1442_vm3, %v2637_v49, %v2638_v61  ;;  %v4894_v19 = vsel %vm1688_vm4, %v2882_v0, %v2883_v43  ;;  %v2399_v38 = vmul.f32 %v4688_v23, %v4510_v50  ;;  %v6377_v54 = vrot.slane %v4503_v32, 1 }
 0x152   : > { %v2391_v45 = vadd.f32 %v2327_v24, %v2146_v46  ;;  %v3637_v48 = vpop.f32.mrb[49].mxu0  ;;  %6375 = vst [vmem:[#allocation65_spill] sm:$0xff] %v4894_v19  ;;  %v2009_v24 = vrot.slane %v1911_v1, 1  ;;  %v4902_v17 = vadd.f32 %v2639_v15, %v2459_v44  ;;  %v4906_v31 = vmul.f32 %v4307_v21, %v4882_v28 }
 0x153   : > { %v4898_v2 = vpop.f32.mrb[50].mxu0  ;;  %v4910_v49 = vmul.f32 %v4312_v22, %v4882_v28  ;;  %v4914_v5 = vmul.f32 %v4364_v27, %v4882_v28  ;;  %v2253_v34 = vrot.slane %v2155_v30, 2  ;;  %v2254_v22 = vrot.slane %v2156_v26, 2 }
 0x154   : > { %v4900_v14 = vadd.f32 %v2428_v57, %v2391_v45  ;;  %6376 = vst [vmem:[#allocation66_spill] sm:$0xff] %v4902_v17  ;;  %v3638_v0 = vpop.f32.mrb[51].mxu0  ;;  %v2010_v58 = vsel %vm1442_vm3, %v2008_v51, %v2009_v24  ;;  %v2012_v9 = vsel %vm1442_vm3, %v2009_v24, %v6377_v54  ;;  %v2400_v57 = vmul.f32 %v4688_v23, %v4555_v20 }
 0x155   : > { %v2117_v8 = vadd.f32 %v2010_v58, %v1872_v60  ;;  %v2118_v44 = vadd.f32 %v2012_v9, %v1873_v35  ;;  %v2469_v46 = vmul.f32 %v4582_v29, %v4510_v50  ;;  %v2470_v39 = vmul.f32 %v4582_v29, %v4555_v20  ;;  %v1248_v9 = vpop.permute.xlu1 %1247 }
 0x156   : > { %v2714_v32 = vmul.f32 %v4606_v52, %v4510_v50  ;;  %v2715_v1 = vmul.f32 %v4606_v52, %v4555_v20  ;;  %v2815_v51 = vrot.slane %v4610_v63, 2  ;;  %v925_v60 = vmax.f32 %v871_v41, 0.0 }
 0x157   : > { %v2255_v35 = vsel %vm1688_vm4, %v2253_v34, %v2254_v22  ;;  %v6378_v45 = vrot.slane %v4507_v10, 2  ;;  %v2567_v26 = vrot.slane %v2469_v46, 1  ;;  %v2568_v48 = vrot.slane %v2470_v39, 1  ;;  %v4946_v10 = vld [vmem:[%s6244_s3] ss:$0 sm:$0xff] }
 0x158   : > { %v2362_v24 = vadd.f32 %v2255_v35, %v2117_v8  ;;  %v2812_v58 = vrot.slane %v2714_v32, 2  ;;  %v2813_v54 = vrot.slane %v2715_v1, 2  ;;  %v6379_v63 = vrot.slane %v4601_v3, 1 }
 0x159   : > { %v2257_v30 = vsel %vm1688_vm4, %v2254_v22, %v6378_v45  ;;  %v4937_v15 = vpop.f32.mrb[52].mxu0  ;;  %v2569_v37 = vsel %vm1442_vm3, %v2567_v26, %v2568_v48  ;;  %v1303_v34 = vmul.f32 %v1248_v9, %v925_v60  ;;  %v777_v8 = vmul.f32 %v4946_v10, %v4751_v4  ;;  %v4959_v60 = vld [vmem:[%s6244_s3 + $0x1] ss:$0 sm:$0xff]  ;;  %v4969_v45 = vld [vmem:[%s6245_s4] ss:$0 sm:$0xff] }
 0x15a   : > { %v2363_v0 = vadd.f32 %v2257_v30, %v2118_v44  ;;  %v3641_v21 = vpop.f32.mrb[53].mxu0  ;;  %v2571_v41 = vsel %vm1442_vm3, %v2568_v48, %v6379_v63  ;;  %v2431_v22 = vadd.f32 %v2399_v38, %v2362_v24  ;;  %v2816_v39 = vsel %vm1688_vm4, %v2813_v54, %v2815_v51  ;;  %v6380_v63 = vld [vmem:[#allocation2_spill] sm:$0xff] }
 0x15b   : > { %v4950_v44 = vpop.f32.mrb[54].mxu0  ;;  %v2814_v21 = vsel %vm1688_vm4, %v2812_v58, %v2813_v54  ;;  %v2513_v32 = vmul.f32 %v4582_v29, %v1303_v34  ;;  %v2758_v1 = vmul.f32 %v4606_v52, %v1303_v34  ;;  %v836_v4 = vadd.f32 %v4959_v60, %v777_v8 }
 0x15c   : > { %v2432_v46 = vadd.f32 %v2400_v57, %v2363_v0  ;;  %v3642_v3 = vpop.f32.mrb[55].mxu0  ;;  %v778_v38 = vmul.f32 %v4946_v10, %v4765_v11  ;;  %v2676_v57 = vadd.f32 %v2569_v37, %v2431_v22  ;;  %v779_v51 = vmul.f32 %v4946_v10, %v4804_v33 }
 0x15d   : > { %v1313_v30 = vmul.f32 %v4969_v45, %v4450_v6  ;;  %v2640_v26 = vrot.slane %v2513_v32, 1  ;;  %v2885_v48 = vrot.slane %v2758_v1, 2  ;;  %v890_v24 = vmax.f32 %v836_v4, 0.0  ;;  %v6381_v3 = vld [vmem:[#allocation3_spill] sm:$0xff] }
 0x15e   : > { %v2677_v35 = vadd.f32 %v2571_v41, %v2432_v46  ;;  %v837_v0 = vadd.f32 %v4959_v60, %v778_v38  ;;  %v2921_v58 = vadd.f32 %v2814_v21, %v2676_v57  ;;  %v838_v37 = vadd.f32 %v4959_v60, %v779_v51  ;;  %v6383_v51 = vld [vmem:[#allocation4_spill] sm:$0xff] }
 0x15f   : > { %v1314_v33 = vmul.f32 %v4969_v45, %v4475_v7  ;;  %v2641_v54 = vsel %vm1442_vm3, %v2638_v61, %v2640_v26  ;;  %v2886_v9 = vsel %vm1688_vm4, %v2883_v43, %v2885_v48  ;;  %v4984_v41 = vmul.f32 %v6380_v63, %v890_v24 }
 0x160   : > { %v2922_v11 = vadd.f32 %v2816_v39, %v2677_v35  ;;  %v891_v34 = vmax.f32 %v837_v0, 0.0  ;;  %v2958_v22 = vmul.f32 %v4758_v40, %v2921_v58  ;;  %v2705_v21 = vadd.f32 %v2641_v54, %v4900_v14  ;;  %v5006_v14 = vld [vmem:[%s6245_s4 + $0x2] ss:$0 sm:$0xff] }
 0x161   : > { %v4986_v8 = vpop.f32.mrb[56].mxu0  ;;  %v892_v39 = vmax.f32 %v838_v37, 0.0  ;;  %v1352_v43 = vmul.f32 %v4997_v25, %v4450_v6  ;;  %v1353_v32 = vmul.f32 %v4997_v25, %v4475_v7  ;;  %v1598_v1 = vmul.f32 %v5006_v14, %v4450_v6 }
 0x162   : > { %v2959_v46 = vmul.f32 %v4758_v40, %v2922_v11  ;;  %v3645_v16 = vpop.f32.mrb[57].mxu0  ;;  %v4992_v61 = vmul.f32 %v6381_v3, %v891_v34  ;;  %v2995_v38 = vadd.f32 %v4770_v18, %v2958_v22  ;;  %v5014_v35 = vadd.f32 %v2886_v9, %v2705_v21  ;;  %v6384_v34 = vld [vmem:[#allocation33_spill] sm:$0xff] }
 0x163   : > { %v5010_v4 = vpop.f32.mrb[58].mxu0  ;;  %v5017_v26 = vmul.f32 %v6383_v51, %v892_v39  ;;  %v1453_v24 = vrot.slane %v1352_v43, 1  ;;  %v1454_v0 = vrot.slane %v1353_v32, 1  ;;  %v1599_v58 = vmul.f32 %v5006_v14, %v4475_v7  ;;  %v6391_v39 = vld [vmem:[#allocation54_spill] sm:$0xff] }
 0x164   : > { %v2996_v57 = vadd.f32 %v4770_v18, %v2959_v46  ;;  %6382 = vst [vmem:[#allocation2_spill] sm:$0xff] %v5014_v35  ;;  %v3646_v48 = vpop.f32.mrb[59].mxu0  ;;  %v1699_v11 = vrot.slane %v1598_v1, 2  ;;  %v6385_v22 = vrot.slane %v6384_v34, 1  ;;  %v1842_v21 = vmul.f32 %v4621_v62, %v4510_v50  ;;  %v6386_v1 = vld [vmem:[#allocation34_spill] sm:$0xff] }
 0x165   : > { %v5023_v6 = vmul.f32 %v4997_v25, %v5017_v26  ;;  %v5027_v54 = vmul.f32 %v5006_v14, %v5017_v26  ;;  %v5031_v9 = vmul.f32 %v4364_v27, %v5017_v26  ;;  %v1455_v63 = vsel %vm1442_vm3, %v1453_v24, %v1454_v0 }
 0x166   : > { %v3026_v37 = vpack.c.bf16 %v2996_v57, %v2995_v38  ;;  %v1457_v7 = vsel %vm1442_vm3, %v1454_v0, %v6385_v22  ;;  %v1700_v46 = vrot.slane %v1599_v58, 2  ;;  %v1559_v3 = vadd.f32 %v1455_v63, %v1313_v30  ;;  %v5054_v30 = vld [vmem:[%s6245_s4 + $0x4] ss:$0 sm:$0xff] }
 0x167   : > { %v1560_v43 = vadd.f32 %v1457_v7, %v1314_v33  ;;  %v6387_v38 = vrot.slane %v6386_v1, 2  ;;  %v1843_v51 = vmul.f32 %v4621_v62, %v4555_v20  ;;  %v1913_v48 = vmul.f32 %v4364_v27, %v4510_v50  ;;  %v6389_v7 = vld [vmem:[#allocation43_spill] sm:$0xff] }
 0x168   : > { %3712 = vmatmul.mubr.bf16.vlgmr.msra.gmra.mrb[36].mxu1 %v3026_v37  ;;  %v1701_v32 = vsel %vm1688_vm4, %v1699_v11, %v1700_v46  ;;  %v1914_v33 = vmul.f32 %v5054_v30, %v4555_v20  ;;  %v6388_v11 = vld [vmem:[#allocation48_spill] sm:$0xff]  ;;  %v2158_v22 = vmul.f32 %v4394_v55, %v4510_v50  ;;  %v2159_v27 = vmul.f32 %v4394_v55, %v4555_v20 }
 0x169   : > { %v1703_v57 = vsel %vm1688_vm4, %v1700_v46, %v6387_v38  ;;  %v5049_v24 = vpop.f32.mrb[60].mxu0  ;;  %v1805_v0 = vadd.f32 %v1701_v32, %v1559_v3  ;;  %v2016_v37 = vrot.slane %v6388_v11, 1  ;;  %v2013_v34 = vrot.slane %v1913_v48, 1  ;;  %v6390_v38 = vld [vmem:[#allocation50_spill] sm:$0xff] }
 0x16a   : > { %v1806_v58 = vadd.f32 %v1703_v57, %v1560_v43  ;;  %v3649_v63 = vpop.f32.mrb[61].mxu0  ;;  %v2160_v46 = vmul.f32 %v4394_v55, %v6389_v7  ;;  %v2014_v1 = vrot.slane %v1914_v33, 1  ;;  %v2401_v57 = vmul.f32 %v4688_v23, %v6390_v38 }
 0x16b   : > { %v5065_v3 = vpop.f32.mrb[62].mxu0  ;;  %v1874_v43 = vadd.f32 %v1842_v21, %v1805_v0  ;;  %v2258_v63 = vrot.slane %v2158_v22, 2  ;;  %v2259_v48 = vrot.slane %v2159_v27, 2  ;;  %v2402_v35 = vmul.f32 %v4688_v23, %v6391_v39  ;;  %v6392_v22 = vld [vmem:[#allocation57_spill] sm:$0xff] }
 0x16c   : > { %v1875_v32 = vadd.f32 %v1843_v51, %v1806_v58  ;;  %v3650_v11 = vpop.f32.mrb[63].mxu0  ;;  %v2261_v16 = vrot.slane %v2160_v46, 2  ;;  %v2015_v19 = vsel %vm1442_vm3, %v2013_v34, %v2014_v1  ;;  %v2017_v17 = vsel %vm1442_vm3, %v2014_v1, %v2016_v37 }
 0x16d   : > { %v2472_v55 = vmul.f32 %v4582_v29, %v6390_v38  ;;  %v2473_v21 = vmul.f32 %v4582_v29, %v6391_v39  ;;  %v2119_v51 = vadd.f32 %v2015_v19, %v1874_v43  ;;  %v2260_v58 = vsel %vm1688_vm4, %v2258_v63, %v2259_v48 }
 0x16e   : > { %v2120_v0 = vadd.f32 %v2017_v17, %v1875_v32  ;;  %v2262_v33 = vsel %vm1688_vm4, %v2259_v48, %v2261_v16  ;;  %v2474_v27 = vmul.f32 %v4582_v29, %v6392_v22  ;;  %v2717_v37 = vmul.f32 %v4606_v52, %v6390_v38 }
 0x16f   : > { %v2572_v7 = vrot.slane %v2472_v55, 1  ;;  %v2573_v46 = vrot.slane %v2473_v21, 1  ;;  %v2364_v34 = vadd.f32 %v2260_v58, %v2119_v51  ;;  %v2718_v11 = vmul.f32 %v4606_v52, %v6391_v39 }
 0x170   : > { %v2365_v1 = vadd.f32 %v2262_v33, %v2120_v0  ;;  %v2719_v19 = vmul.f32 %v4606_v52, %v6392_v22  ;;  %v2575_v43 = vrot.slane %v2474_v27, 1  ;;  %v2817_v32 = vrot.slane %v2717_v37, 2 }
 0x171   : > { %v5087_v17 = vpop.f32.mrb[64].mxu0  ;;  %v2574_v16 = vsel %vm1442_vm3, %v2572_v7, %v2573_v46  ;;  %v780_v63 = vmul.f32 %v4946_v10, %v4819_v47  ;;  %v2433_v55 = vadd.f32 %v2401_v57, %v2364_v34  ;;  %v2818_v51 = vrot.slane %v2718_v11, 2 }
 0x172   : > { %v3653_v48 = vpop.f32.mrb[65].mxu0  ;;  %v2434_v21 = vadd.f32 %v2402_v35, %v2365_v1  ;;  %v2820_v0 = vrot.slane %v2719_v19, 2  ;;  %v2576_v33 = vsel %vm1442_vm3, %v2573_v46, %v2575_v43  ;;  %v781_v12 = vmul.f32 %v4946_v10, %v4840_v59  ;;  %v6394_v43 = vld [vmem:[#allocation5_spill] sm:$0xff] }
 0x173   : > { %v5092_v58 = vpop.f32.mrb[66].mxu0  ;;  %v839_v13 = vadd.f32 %v4959_v60, %v780_v63  ;;  %v782_v27 = vmul.f32 %v4946_v10, %v4849_v36  ;;  %v2678_v37 = vadd.f32 %v2574_v16, %v2433_v55  ;;  %v2819_v57 = vsel %vm1688_vm4, %v2817_v32, %v2818_v51 }
 0x174   : > { %6393 = vst [vmem:[#allocation3_spill] sm:$0xff] %v5092_v58  ;;  %v3654_v7 = vpop.f32.mrb[67].mxu0  ;;  %v2679_v47 = vadd.f32 %v2576_v33, %v2434_v21  ;;  %v2821_v35 = vsel %vm1688_vm4, %v2818_v51, %v2820_v0  ;;  %v840_v1 = vadd.f32 %v4959_v60, %v781_v12  ;;  %v1315_v11 = vmul.f32 %v4969_v45, %v4510_v50  ;;  %v6396_v33 = vld [vmem:[#allocation6_spill] sm:$0xff] }
 0x175   : > { %v893_v34 = vmax.f32 %v839_v13, 0.0  ;;  %v841_v46 = vadd.f32 %v4959_v60, %v782_v27  ;;  %v2923_v19 = vadd.f32 %v2819_v57, %v2678_v37  ;;  %v1316_v36 = vmul.f32 %v4969_v45, %v4555_v20  ;;  %v6397_v7 = vld [vmem:[#allocation7_spill] sm:$0xff] }
 0x176   : > { %v2924_v59 = vadd.f32 %v2821_v35, %v2679_v47  ;;  %v1355_v16 = vmul.f32 %v4997_v25, %v4510_v50  ;;  %v894_v63 = vmax.f32 %v840_v1, 0.0  ;;  %v1356_v12 = vmul.f32 %v4997_v25, %v4555_v20 }
 0x177   : > { %v5111_v32 = vmul.f32 %v6394_v43, %v893_v34  ;;  %v895_v13 = vmax.f32 %v841_v46, 0.0  ;;  %v2960_v48 = vmul.f32 %v4758_v40, %v2923_v19  ;;  %v1601_v51 = vmul.f32 %v5006_v14, %v4510_v50 }
 0x178   : > { %v2961_v55 = vmul.f32 %v4758_v40, %v2924_v59  ;;  %v1458_v21 = vrot.slane %v1355_v16, 1  ;;  %v5122_v27 = vmul.f32 %v6396_v33, %v894_v63  ;;  %v1459_v47 = vrot.slane %v1356_v12, 1  ;;  %v6399_v12 = vld [vmem:[#allocation46_spill] sm:$0xff] }
 0x179   : > { %v5119_v0 = vpop.f32.mrb[68].mxu0  ;;  %v5125_v37 = vmul.f32 %v6397_v7, %v895_v13  ;;  %v1602_v57 = vmul.f32 %v5006_v14, %v4555_v20  ;;  %v2997_v34 = vadd.f32 %v4770_v18, %v2960_v48  ;;  %v1704_v46 = vrot.slane %v1601_v51, 2 }
 0x17a   : > { %6395 = vst [vmem:[#allocation4_spill] sm:$0xff] %v5119_v0  ;;  %v3657_v35 = vpop.f32.mrb[69].mxu0  ;;  %v2998_v1 = vadd.f32 %v4770_v18, %v2961_v55  ;;  %v1844_v50 = vmul.f32 %v4621_v62, %v6390_v38  ;;  %v1460_v43 = vsel %vm1442_vm3, %v1458_v21, %v1459_v47  ;;  %v6400_v48 = vrot.slane %v6399_v12, 1  ;;  %v6401_v21 = vld [vmem:[#allocation47_spill] sm:$0xff] }
 0x17b   : > { %v5133_v19 = vpop.f32.mrb[70].mxu0  ;;  %v5137_v59 = vmul.f32 %v4997_v25, %v5125_v37  ;;  %v5141_v16 = vmul.f32 %v5006_v14, %v5125_v37  ;;  %v5145_v20 = vmul.f32 %v5054_v30, %v5125_v37  ;;  %v1561_v51 = vadd.f32 %v1460_v43, %v1315_v11  ;;  %v6403_v43 = vld [vmem:[#allocation60_spill] sm:$0xff] }
 0x17c   : > { %6398 = vst [vmem:[#allocation33_spill] sm:$0xff] %v5133_v19  ;;  %v3658_v63 = vpop.f32.mrb[71].mxu0  ;;  %v3027_v13 = vpack.c.bf16 %v2998_v1, %v2997_v34  ;;  %v1462_v55 = vsel %vm1442_vm3, %v1459_v47, %v6400_v48  ;;  %v1705_v33 = vrot.slane %v1602_v57, 2  ;;  %v1845_v0 = vmul.f32 %v4621_v62, %v6391_v39 }
 0x17d   : > { %v1562_v19 = vadd.f32 %v1462_v55, %v1316_v36  ;;  %v6402_v63 = vrot.slane %v6401_v21, 2  ;;  %v1916_v47 = vmul.f32 %v5054_v30, %v6390_v38  ;;  %v1917_v11 = vmul.f32 %v5054_v30, %v6391_v39 }
 0x17e   : > { %3715 = vmatprep.mubr.bf16.mxu1 %v3027_v13  ;;  %v1706_v58 = vsel %vm1688_vm4, %v1704_v46, %v1705_v33  ;;  %v2021_v36 = vrot.slane %v6403_v43, 1  ;;  %v5167_v13 = vld [vmem:[%s6245_s4 + $0x5] ss:$0 sm:$0xff]  ;;  %v2403_v21 = vmul.f32 %v4688_v23, %v4797_v56  ;;  %v2404_v7 = vmul.f32 %v4688_v23, %v4852_v53 }
 0x17f   : > { %v1708_v34 = vsel %vm1688_vm4, %v1705_v33, %v6402_v63  ;;  %v1807_v57 = vadd.f32 %v1706_v58, %v1561_v51  ;;  %v2161_v46 = vmul.f32 %v5167_v13, %v6390_v38  ;;  %v2018_v12 = vrot.slane %v1916_v47, 1 }
 0x180   : > { %v1808_v1 = vadd.f32 %v1708_v34, %v1562_v19  ;;  %v2019_v48 = vrot.slane %v1917_v11, 1  ;;  %v2162_v55 = vmul.f32 %v5167_v13, %v6391_v39  ;;  %v2163_v33 = vmul.f32 %v5167_v13, %v6392_v22 }
 0x181   : > { %v1876_v58 = vadd.f32 %v1844_v50, %v1807_v57  ;;  %v2263_v51 = vrot.slane %v2161_v46, 2  ;;  %v2475_v22 = vmul.f32 %v4582_v29, %v4797_v56  ;;  %v2476_v57 = vmul.f32 %v4582_v29, %v4852_v53 }
 0x182   : > { %v1877_v19 = vadd.f32 %v1845_v0, %v1808_v1  ;;  %v2020_v63 = vsel %vm1442_vm3, %v2018_v12, %v2019_v48  ;;  %v2022_v34 = vsel %vm1442_vm3, %v2019_v48, %v2021_v36  ;;  %v2264_v43 = vrot.slane %v2162_v55, 2 }
 0x183   : > { %v2266_v35 = vrot.slane %v2163_v33, 2  ;;  %v2121_v47 = vadd.f32 %v2020_v63, %v1876_v58  ;;  %v2477_v1 = vmul.f32 %v4582_v29, %v4882_v28  ;;  %v2577_v12 = vrot.slane %v2475_v22, 1 }
 0x184   : > { %v2122_v11 = vadd.f32 %v2022_v34, %v1877_v19  ;;  %v2265_v0 = vsel %vm1688_vm4, %v2263_v51, %v2264_v43  ;;  %v2720_v48 = vmul.f32 %v4606_v52, %v4797_v56  ;;  %v2578_v55 = vrot.slane %v2476_v57, 1 }
 0x185   : > { %v2267_v50 = vsel %vm1688_vm4, %v2264_v43, %v2266_v35  ;;  %v2366_v36 = vadd.f32 %v2265_v0, %v2121_v47  ;;  %v2580_v33 = vrot.slane %v2477_v1, 1  ;;  %v2721_v58 = vmul.f32 %v4606_v52, %v4852_v53 }
 0x186   : > { %v2367_v46 = vadd.f32 %v2267_v50, %v2122_v11  ;;  %v2722_v35 = vmul.f32 %v4606_v52, %v4882_v28  ;;  %v2822_v63 = vrot.slane %v2720_v48, 2  ;;  %v783_v29 = vmul.f32 %v4946_v10, %v4879_v42 }
 0x187   : > { %v2435_v19 = vadd.f32 %v2403_v21, %v2366_v36  ;;  %v2579_v34 = vsel %vm1442_vm3, %v2577_v12, %v2578_v55  ;;  %v2581_v43 = vsel %vm1442_vm3, %v2578_v55, %v2580_v33  ;;  %v2823_v47 = vrot.slane %v2721_v58, 2 }
 0x188   : > { %v2436_v51 = vadd.f32 %v2404_v7, %v2367_v46  ;;  %v2825_v11 = vrot.slane %v2722_v35, 2  ;;  %v842_v50 = vadd.f32 %v4959_v60, %v783_v29  ;;  %v784_v57 = vmul.f32 %v4946_v10, %v4898_v2  ;;  %v6404_v35 = vld [vmem:[#allocation8_spill] sm:$0xff] }
 0x189   : > { %v2680_v22 = vadd.f32 %v2579_v34, %v2435_v19  ;;  %v2824_v52 = vsel %vm1688_vm4, %v2822_v63, %v2823_v47  ;;  %v785_v42 = vmul.f32 %v4946_v10, %v4937_v15  ;;  %v1317_v21 = vmul.f32 %v4969_v45, %v6390_v38 }
 0x18a   : > { %v2681_v0 = vadd.f32 %v2581_v43, %v2436_v51  ;;  %v2826_v7 = vsel %vm1688_vm4, %v2823_v47, %v2825_v11  ;;  %v896_v46 = vmax.f32 %v842_v50, 0.0  ;;  %v843_v12 = vadd.f32 %v4959_v60, %v784_v57  ;;  %v6406_v57 = vld [vmem:[#allocation10_spill] sm:$0xff] }
 0x18b   : > { %v2925_v1 = vadd.f32 %v2824_v52, %v2680_v22  ;;  %v844_v48 = vadd.f32 %v4959_v60, %v785_v42  ;;  %v1318_v2 = vmul.f32 %v4969_v45, %v6391_v39  ;;  %v1358_v55 = vmul.f32 %v4997_v25, %v6390_v38  ;;  %v6405_v22 = vld [vmem:[#allocation9_spill] sm:$0xff]  ;;  %v6407_v42 = vld [vmem:[#allocation58_spill] sm:$0xff] }
 0x18c   : > { %v2926_v36 = vadd.f32 %v2826_v7, %v2681_v0  ;;  %v1359_v33 = vmul.f32 %v4997_v25, %v6391_v39  ;;  %v5219_v19 = vmul.f32 %v6404_v35, %v896_v46  ;;  %v897_v51 = vmax.f32 %v843_v12, 0.0 }
 0x18d   : > { %v2962_v15 = vmul.f32 %v4758_v40, %v2925_v1  ;;  %v898_v63 = vmax.f32 %v844_v48, 0.0  ;;  %v1463_v29 = vrot.slane %v1358_v55, 1  ;;  %v1604_v43 = vmul.f32 %v5006_v14, %v6390_v38 }
 0x18e   : > { %v2963_v58 = vmul.f32 %v4758_v40, %v2926_v36  ;;  %v1464_v34 = vrot.slane %v1359_v33, 1  ;;  %v5226_v0 = vmul.f32 %v6405_v22, %v897_v51  ;;  %v1605_v50 = vmul.f32 %v5006_v14, %v6391_v39 }
 0x18f   : > { %v2999_v47 = vadd.f32 %v4770_v18, %v2962_v15  ;;  %v5231_v52 = vmul.f32 %v6406_v57, %v898_v63  ;;  %v6408_v1 = vrot.slane %v6407_v42, 1  ;;  %v1709_v38 = vrot.slane %v1604_v43, 2 }
 0x190   : > { %v3000_v11 = vadd.f32 %v4770_v18, %v2963_v58  ;;  %v1465_v7 = vsel %vm1442_vm3, %v1463_v29, %v1464_v34  ;;  %v1710_v55 = vrot.slane %v1605_v50, 2  ;;  %v1846_v58 = vmul.f32 %v4621_v62, %v4797_v56 }
 0x191   : > { %v1467_v36 = vsel %vm1442_vm3, %v1464_v34, %v6408_v1  ;;  %v1563_v12 = vadd.f32 %v1465_v7, %v1317_v21  ;;  %v5239_v33 = vmul.f32 %v4997_v25, %v5231_v52  ;;  %v5243_v39 = vmul.f32 %v5006_v14, %v5231_v52 }
 0x192   : > { %v3028_v46 = vpack.c.bf16 %v3000_v11, %v2999_v47  ;;  %v1564_v48 = vadd.f32 %v1467_v36, %v1318_v2  ;;  %v5247_v15 = vmul.f32 %v5054_v30, %v5231_v52  ;;  %v1711_v21 = vsel %vm1688_vm4, %v1709_v38, %v1710_v55  ;;  %v6410_v2 = vld [vmem:[#allocation59_spill] sm:$0xff] }
 0x193   : > { %6409 = vst [vmem:[#allocation34_spill] sm:$0xff] %v5243_v39  ;;  %v6411_v35 = vrot.slane %v6410_v2, 2  ;;  %v1847_v63 = vmul.f32 %v4621_v62, %v4852_v53  ;;  %v1919_v29 = vmul.f32 %v5054_v30, %v4797_v56  ;;  %v1809_v47 = vadd.f32 %v1711_v21, %v1563_v12 }
 0x194   : > { %3716 = vmatmul.mubr.bf16.gmra.mrb[40].mxu1 %v3028_v46  ;;  %v1920_v22 = vmul.f32 %v5054_v30, %v4852_v53  ;;  %v2026_v57 = vrot.slane %v4914_v5, 1  ;;  %v2164_v7 = vmul.f32 %v5167_v13, %v4797_v56  ;;  %v2165_v1 = vmul.f32 %v5167_v13, %v4852_v53 }
 0x195   : > { %v1713_v51 = vsel %vm1688_vm4, %v1710_v55, %v6411_v35  ;;  %v2023_v50 = vrot.slane %v1919_v29, 1  ;;  %v1878_v42 = vadd.f32 %v1846_v58, %v1809_v47  ;;  %v2166_v36 = vmul.f32 %v5167_v13, %v4882_v28  ;;  %v5277_v58 = vld [vmem:[%s6245_s4 + $0x7] ss:$0 sm:$0xff] }
 0x196   : > { %v1810_v11 = vadd.f32 %v1713_v51, %v1564_v48  ;;  %v2024_v38 = vrot.slane %v1920_v22, 1  ;;  %v2268_v46 = vrot.slane %v2164_v7, 2  ;;  %v2405_v12 = vmul.f32 %v4688_v23, %v4984_v41  ;;  %v5290_v51 = vld [vmem:[%s6245_s4 + $0x8] ss:$0 sm:$0xff] }
 0x197   : > { %v2406_v48 = vmul.f32 %v4688_v23, %v4992_v61  ;;  %v2269_v5 = vrot.slane %v2165_v1, 2  ;;  %v2271_v55 = vrot.slane %v2166_v36, 2  ;;  %v2478_v21 = vmul.f32 %v5277_v58, %v4984_v41 }
 0x198   : > { %v1879_v62 = vadd.f32 %v1847_v63, %v1810_v11  ;;  %v2479_v28 = vmul.f32 %v5277_v58, %v4992_v61  ;;  %v2025_v2 = vsel %vm1442_vm3, %v2023_v50, %v2024_v38  ;;  %v2027_v35 = vsel %vm1442_vm3, %v2024_v38, %v2026_v57 }
 0x199   : > { %v2480_v23 = vmul.f32 %v5277_v58, %v5017_v26  ;;  %v2723_v63 = vmul.f32 %v5290_v51, %v4984_v41  ;;  %v2123_v29 = vadd.f32 %v2025_v2, %v1878_v42  ;;  %v2270_v11 = vsel %vm1688_vm4, %v2268_v46, %v2269_v5 }
 0x19a   : > { %v2124_v47 = vadd.f32 %v2027_v35, %v1879_v62  ;;  %v2272_v22 = vsel %vm1688_vm4, %v2269_v5, %v2271_v55  ;;  %v2582_v50 = vrot.slane %v2478_v21, 1  ;;  %v2583_v7 = vrot.slane %v2479_v28, 1 }
 0x19b   : > { %v2585_v57 = vrot.slane %v2480_v23, 1  ;;  %v2724_v1 = vmul.f32 %v5290_v51, %v4992_v61  ;;  %v2368_v36 = vadd.f32 %v2270_v11, %v2123_v29  ;;  %v2725_v43 = vmul.f32 %v5290_v51, %v5017_v26 }
 0x19c   : > { %v2369_v38 = vadd.f32 %v2272_v22, %v2124_v47  ;;  %v2827_v34 = vrot.slane %v2723_v63, 2  ;;  %v2584_v39 = vsel %vm1442_vm3, %v2582_v50, %v2583_v7  ;;  %v786_v46 = vmul.f32 %v4946_v10, %v4950_v44  ;;  %v6412_v50 = vld [vmem:[#allocation11_spill] sm:$0xff] }
 0x19d   : > { %v2586_v42 = vsel %vm1442_vm3, %v2583_v7, %v2585_v57  ;;  %v2828_v62 = vrot.slane %v2724_v1, 2  ;;  %v2437_v5 = vadd.f32 %v2405_v12, %v2368_v36  ;;  %v2830_v21 = vrot.slane %v2725_v43, 2 }
 0x19e   : > { %v2438_v55 = vadd.f32 %v2406_v48, %v2369_v38  ;;  %v787_v28 = vmul.f32 %v4946_v10, %v4986_v8  ;;  %v845_v35 = vadd.f32 %v4959_v60, %v786_v46  ;;  %v788_v23 = vmul.f32 %v4946_v10, %v5010_v4 }
 0x19f   : > { %v2829_v2 = vsel %vm1688_vm4, %v2827_v34, %v2828_v62  ;;  %v1319_v63 = vmul.f32 %v4969_v45, %v4797_v56  ;;  %v2682_v29 = vadd.f32 %v2584_v39, %v2437_v5  ;;  %v2831_v44 = vsel %vm1688_vm4, %v2828_v62, %v2830_v21  ;;  %v6413_v62 = vld [vmem:[#allocation12_spill] sm:$0xff] }
 0x1a0   : > { %v2683_v47 = vadd.f32 %v2586_v42, %v2438_v55  ;;  %v846_v12 = vadd.f32 %v4959_v60, %v787_v28  ;;  %v899_v43 = vmax.f32 %v845_v35, 0.0  ;;  %v847_v48 = vadd.f32 %v4959_v60, %v788_v23  ;;  %v6414_v55 = vld [vmem:[#allocation13_spill] sm:$0xff]  ;;  %v5339_v35 = vld [vmem:[%s6245_s4 + $0x3] ss:$0 sm:$0xff] }
 0x1a1   : > { %v1320_v8 = vmul.f32 %v4969_v45, %v4852_v53  ;;  %v1361_v34 = vmul.f32 %v4997_v25, %v4797_v56  ;;  %v2927_v11 = vadd.f32 %v2829_v2, %v2682_v29  ;;  %v1362_v39 = vmul.f32 %v4997_v25, %v4852_v53 }
 0x1a2   : > { %v2928_v4 = vadd.f32 %v2831_v44, %v2683_v47  ;;  %v900_v22 = vmax.f32 %v846_v12, 0.0  ;;  %v5322_v7 = vmul.f32 %v6412_v50, %v899_v43  ;;  %v901_v57 = vmax.f32 %v847_v48, 0.0 }
 0x1a3   : > { %v1468_v1 = vrot.slane %v1361_v34, 1  ;;  %v1607_v36 = vmul.f32 %v5006_v14, %v4797_v56  ;;  %v2964_v38 = vmul.f32 %v4758_v40, %v2927_v11  ;;  %v1469_v5 = vrot.slane %v1362_v39, 1 }
 0x1a4   : > { %v2965_v42 = vmul.f32 %v4758_v40, %v2928_v4  ;;  %v5329_v46 = vmul.f32 %v6413_v62, %v900_v22  ;;  %v5332_v21 = vmul.f32 %v6414_v55, %v901_v57  ;;  %v1608_v28 = vmul.f32 %v5006_v14, %v4852_v53 }
 0x1a5   : > { %v1714_v2 = vrot.slane %v1607_v36, 2  ;;  %v1848_v56 = vmul.f32 %v5339_v35, %v4984_v41  ;;  %v3001_v40 = vadd.f32 %v4770_v18, %v2964_v38  ;;  %v1470_v29 = vsel %vm1442_vm3, %v1468_v1, %v1469_v5 }
 0x1a6   : > { %v3002_v23 = vadd.f32 %v4770_v18, %v2965_v42  ;;  %v6415_v47 = vrot.slane %v4906_v31, 1  ;;  %v5351_v53 = vmul.f32 %v4997_v25, %v5332_v21  ;;  %v5355_v12 = vmul.f32 %v5006_v14, %v5332_v21 }
 0x1a7   : > { %v5359_v43 = vmul.f32 %v5054_v30, %v5332_v21  ;;  %v1565_v48 = vadd.f32 %v1470_v29, %v1319_v63  ;;  %v1715_v11 = vrot.slane %v1608_v28, 2  ;;  %v1849_v31 = vmul.f32 %v5339_v35, %v4992_v61 }
 0x1a8   : > { %v1472_v44 = vsel %vm1442_vm3, %v1469_v5, %v6415_v47  ;;  %v3029_v18 = vpack.c.bf16 %v3002_v23, %v3001_v40  ;;  %v1491_v4 = vrot.slane %v5351_v53, 1  ;;  %v1737_v22 = vrot.slane %v5355_v12, 2 }
 0x1a9   : > { %v1566_v34 = vadd.f32 %v1472_v44, %v1320_v8  ;;  %v1922_v39 = vmul.f32 %v5054_v30, %v4984_v41  ;;  %v1923_v50 = vmul.f32 %v5054_v30, %v4992_v61  ;;  %v1716_v57 = vsel %vm1688_vm4, %v1714_v2, %v1715_v11 }
 0x1aa   : > { %3719 = vmatprep.mubr.bf16.mxu1 %v3029_v18  ;;  %v6416_v63 = vrot.slane %v4910_v49, 2  ;;  %v2031_v1 = vrot.slane %v5031_v9, 1  ;;  %v2167_v36 = vmul.f32 %v5167_v13, %v4984_v41  ;;  %v1811_v38 = vadd.f32 %v1716_v57, %v1565_v48  ;;  %v5383_v49 = vld [vmem:[%s6245_s4 + $0x6] ss:$0 sm:$0xff] }
 0x1ab   : > { %v2028_v62 = vrot.slane %v1922_v39, 1  ;;  %v2029_v5 = vrot.slane %v1923_v50, 1  ;;  %v2168_v55 = vmul.f32 %v5167_v13, %v4992_v61  ;;  %v2169_v28 = vmul.f32 %v5167_v13, %v5017_v26 }
 0x1ac   : > { %v1718_v8 = vsel %vm1688_vm4, %v1715_v11, %v6416_v63  ;;  %v2273_v2 = vrot.slane %v2167_v36, 2  ;;  %v2407_v9 = vmul.f32 %v5383_v49, %v5111_v32  ;;  %v1880_v40 = vadd.f32 %v1848_v56, %v1811_v38 }
 0x1ad   : > { %v1812_v42 = vadd.f32 %v1718_v8, %v1566_v34  ;;  %v2030_v29 = vsel %vm1442_vm3, %v2028_v62, %v2029_v5  ;;  %v2032_v47 = vsel %vm1442_vm3, %v2029_v5, %v2031_v1  ;;  %v2274_v44 = vrot.slane %v2168_v55, 2 }
 0x1ae   : > { %v2276_v48 = vrot.slane %v2169_v28, 2  ;;  %v2408_v26 = vmul.f32 %v5383_v49, %v5122_v27  ;;  %v2481_v18 = vmul.f32 %v5277_v58, %v5111_v32  ;;  %v2125_v34 = vadd.f32 %v2030_v29, %v1880_v40 }
 0x1af   : > { %v1881_v23 = vadd.f32 %v1849_v31, %v1812_v42  ;;  %v2482_v39 = vmul.f32 %v5277_v58, %v5122_v27  ;;  %v2483_v56 = vmul.f32 %v5277_v58, %v5125_v37  ;;  %v2275_v31 = vsel %vm1688_vm4, %v2273_v2, %v2274_v44 }
 0x1b0   : > { %v2277_v50 = vsel %vm1688_vm4, %v2274_v44, %v2276_v48  ;;  %v2587_v57 = vrot.slane %v2481_v18, 1  ;;  %v2726_v63 = vmul.f32 %v5290_v51, %v5111_v32  ;;  %v2370_v8 = vadd.f32 %v2275_v31, %v2125_v34 }
 0x1b1   : > { %v2126_v11 = vadd.f32 %v2032_v47, %v1881_v23  ;;  %v2588_v36 = vrot.slane %v2482_v39, 1  ;;  %v2590_v38 = vrot.slane %v2483_v56, 1  ;;  %v2727_v42 = vmul.f32 %v5290_v51, %v5122_v27 }
 0x1b2   : > { %v2728_v62 = vmul.f32 %v5290_v51, %v5125_v37  ;;  %v2832_v5 = vrot.slane %v2726_v63, 2  ;;  %v789_v55 = vmul.f32 %v4946_v10, %v5049_v24  ;;  %v2439_v28 = vadd.f32 %v2407_v9, %v2370_v8  ;;  %v6417_v63 = vld [vmem:[#allocation14_spill] sm:$0xff] }
 0x1b3   : > { %v2371_v1 = vadd.f32 %v2277_v50, %v2126_v11  ;;  %v2589_v40 = vsel %vm1442_vm3, %v2587_v57, %v2588_v36  ;;  %v2591_v23 = vsel %vm1442_vm3, %v2588_v36, %v2590_v38  ;;  %v2833_v29 = vrot.slane %v2727_v42, 2  ;;  %v5432_v38 = vld [vmem:[%s6246_s5] ss:$0 sm:$0xff] }
 0x1b4   : > { %v2835_v47 = vrot.slane %v2728_v62, 2  ;;  %v848_v44 = vadd.f32 %v4959_v60, %v789_v55  ;;  %v790_v48 = vmul.f32 %v4946_v10, %v5065_v3  ;;  %v2684_v18 = vadd.f32 %v2589_v40, %v2439_v28  ;;  %v6418_v28 = vld [vmem:[#allocation15_spill] sm:$0xff] }
 0x1b5   : > { %v2440_v2 = vadd.f32 %v2408_v26, %v2371_v1  ;;  %v791_v11 = vmul.f32 %v4946_v10, %v5087_v17  ;;  %v1321_v24 = vmul.f32 %v4969_v45, %v4984_v41  ;;  %v2834_v9 = vsel %vm1688_vm4, %v2832_v5, %v2833_v29 }
 0x1b6   : > { %v2836_v26 = vsel %vm1688_vm4, %v2833_v29, %v2835_v47  ;;  %v902_v39 = vmax.f32 %v848_v44, 0.0  ;;  %v849_v56 = vadd.f32 %v4959_v60, %v790_v48  ;;  %v2929_v31 = vadd.f32 %v2834_v9, %v2684_v18  ;;  %v5446_v47 = vld [vmem:[%s6246_s5 + $0x1] ss:$0 sm:$0xff]  ;;  %v6419_v18 = vld [vmem:[#allocation16_spill] sm:$0xff] }
 0x1b7   : > { %v2685_v34 = vadd.f32 %v2591_v23, %v2440_v2  ;;  %v850_v57 = vadd.f32 %v4959_v60, %v791_v11  ;;  %v1322_v3 = vmul.f32 %v4969_v45, %v4992_v61  ;;  %v1364_v1 = vmul.f32 %v4997_v25, %v4984_v41 }
 0x1b8   : > { %v5423_v8 = vmul.f32 %v6417_v63, %v902_v39  ;;  %v903_v17 = vmax.f32 %v849_v56, 0.0  ;;  %v1365_v36 = vmul.f32 %v4997_v25, %v4992_v61  ;;  %v2966_v42 = vmul.f32 %v5432_v38, %v2929_v31 }
 0x1b9   : > { %v2930_v50 = vadd.f32 %v2836_v26, %v2685_v34  ;;  %v904_v5 = vmax.f32 %v850_v57, 0.0  ;;  %v1610_v55 = vmul.f32 %v5006_v14, %v4984_v41  ;;  %v1473_v40 = vrot.slane %v1364_v1, 1 }
 0x1ba   : > { %v5439_v2 = vmul.f32 %v6418_v28, %v903_v17  ;;  %v1474_v23 = vrot.slane %v1365_v36, 1  ;;  %v1611_v29 = vmul.f32 %v5006_v14, %v4992_v61  ;;  %v3003_v44 = vadd.f32 %v5446_v47, %v2966_v42 }
 0x1bb   : > { %v2967_v62 = vmul.f32 %v5432_v38, %v2930_v50  ;;  %v5451_v34 = vmul.f32 %v6419_v18, %v904_v5  ;;  %v1719_v41 = vrot.slane %v1610_v55, 2  ;;  %v6420_v9 = vrot.slane %v5023_v6, 1 }
 0x1bc   : > { %v1475_v11 = vsel %vm1442_vm3, %v1473_v40, %v1474_v23  ;;  %v1720_v61 = vrot.slane %v1611_v29, 2  ;;  %v1850_v39 = vmul.f32 %v5339_v35, %v5111_v32  ;;  %v6421_v1 = vrot.slane %v5027_v54, 2 }
 0x1bd   : > { %v3004_v48 = vadd.f32 %v5446_v47, %v2967_v62  ;;  %v1477_v26 = vsel %vm1442_vm3, %v1474_v23, %v6420_v9  ;;  %v5461_v31 = vmul.f32 %v4997_v25, %v5451_v34  ;;  %v5465_v50 = vmul.f32 %v5006_v14, %v5451_v34 }
 0x1be   : > { %v5469_v57 = vmul.f32 %v5054_v30, %v5451_v34  ;;  %v1567_v6 = vadd.f32 %v1475_v11, %v1321_v24  ;;  %v1568_v63 = vadd.f32 %v1477_v26, %v1322_v3  ;;  %v1721_v17 = vsel %vm1688_vm4, %v1719_v41, %v1720_v61 }
 0x1bf   : > { %v3030_v56 = vpack.c.bf16 %v3004_v48, %v3003_v44  ;;  %v1723_v36 = vsel %vm1688_vm4, %v1720_v61, %v6421_v1  ;;  %v1496_v42 = vrot.slane %v5461_v31, 1  ;;  %v1742_v62 = vrot.slane %v5465_v50, 2 }
 0x1c0   : > { %v1851_v5 = vmul.f32 %v5339_v35, %v5122_v27  ;;  %v1925_v55 = vmul.f32 %v5054_v30, %v5111_v32  ;;  %v1813_v28 = vadd.f32 %v1721_v17, %v1567_v6  ;;  %v1814_v24 = vadd.f32 %v1723_v36, %v1568_v63 }
 0x1c1   : > { %3720 = vmatmul.mubr.bf16.gmra.mrb[44].mxu1 %v3030_v56  ;;  %v1926_v3 = vmul.f32 %v5054_v30, %v5122_v27  ;;  %v2036_v54 = vrot.slane %v5145_v20, 1  ;;  %v2170_v23 = vmul.f32 %v5167_v13, %v5111_v32  ;;  %v2171_v29 = vmul.f32 %v5167_v13, %v5122_v27 }
 0x1c2   : > { %v2033_v40 = vrot.slane %v1925_v55, 1  ;;  %v2172_v44 = vmul.f32 %v5167_v13, %v5125_v37  ;;  %v1882_v48 = vadd.f32 %v1850_v39, %v1813_v28  ;;  %v1883_v18 = vadd.f32 %v1851_v5, %v1814_v24 }
 0x1c3   : > { %v2034_v41 = vrot.slane %v1926_v3, 1  ;;  %v2409_v11 = vmul.f32 %v5383_v49, %v5219_v19  ;;  %v2278_v9 = vrot.slane %v2170_v23, 2  ;;  %v2279_v26 = vrot.slane %v2171_v29, 2 }
 0x1c4   : > { %v2281_v61 = vrot.slane %v2172_v44, 2  ;;  %v2410_v20 = vmul.f32 %v5383_v49, %v5226_v0  ;;  %v2484_v63 = vmul.f32 %v5277_v58, %v5219_v19  ;;  %v2485_v37 = vmul.f32 %v5277_v58, %v5226_v0 }
 0x1c5   : > { %v2035_v56 = vsel %vm1442_vm3, %v2033_v40, %v2034_v41  ;;  %v2037_v6 = vsel %vm1442_vm3, %v2034_v41, %v2036_v54  ;;  %v2280_v1 = vsel %vm1688_vm4, %v2278_v9, %v2279_v26  ;;  %v2486_v5 = vmul.f32 %v5277_v58, %v5231_v52 }
 0x1c6   : > { %v2127_v39 = vadd.f32 %v2035_v56, %v1882_v48  ;;  %v2128_v17 = vadd.f32 %v2037_v6, %v1883_v18  ;;  %v2282_v36 = vsel %vm1688_vm4, %v2279_v26, %v2281_v61  ;;  %v2592_v55 = vrot.slane %v2484_v63, 1  ;;  %v6422_v18 = vld [vmem:[#allocation3_spill] sm:$0xff] }
 0x1c7   : > { %v2593_v28 = vrot.slane %v2485_v37, 1  ;;  %v2729_v24 = vmul.f32 %v5290_v51, %v5219_v19  ;;  %v2730_v40 = vmul.f32 %v5290_v51, %v5226_v0  ;;  %v2731_v23 = vmul.f32 %v5290_v51, %v5231_v52  ;;  %v6423_v37 = vld [vmem:[#allocation4_spill] sm:$0xff] }
 0x1c8   : > { %v2372_v3 = vadd.f32 %v2280_v1, %v2127_v39  ;;  %v2373_v54 = vadd.f32 %v2282_v36, %v2128_v17  ;;  %v2595_v44 = vrot.slane %v2486_v5, 1  ;;  %v792_v41 = vmul.f32 %v4946_v10, %v6422_v18  ;;  %v6424_v17 = vld [vmem:[#allocation33_spill] sm:$0xff] }
 0x1c9   : > { %v2594_v29 = vsel %vm1442_vm3, %v2592_v55, %v2593_v28  ;;  %v2837_v48 = vrot.slane %v2729_v24, 2  ;;  %v2838_v61 = vrot.slane %v2730_v40, 2  ;;  %v2840_v56 = vrot.slane %v2731_v23, 2 }
 0x1ca   : > { %v2441_v9 = vadd.f32 %v2409_v11, %v2372_v3  ;;  %v2442_v26 = vadd.f32 %v2410_v20, %v2373_v54  ;;  %v2596_v6 = vsel %vm1442_vm3, %v2593_v28, %v2595_v44  ;;  %v851_v63 = vadd.f32 %v4959_v60, %v792_v41 }
 0x1cb   : > { %v793_v39 = vmul.f32 %v4946_v10, %v6423_v37  ;;  %v794_v1 = vmul.f32 %v4946_v10, %v6424_v17  ;;  %v2839_v55 = vsel %vm1688_vm4, %v2837_v48, %v2838_v61  ;;  %v2841_v24 = vsel %vm1688_vm4, %v2838_v61, %v2840_v56 }
 0x1cc   : > { %v2686_v36 = vadd.f32 %v2594_v29, %v2441_v9  ;;  %v2687_v5 = vadd.f32 %v2596_v6, %v2442_v26  ;;  %v905_v11 = vmax.f32 %v851_v63, 0.0  ;;  %v1323_v28 = vmul.f32 %v4969_v45, %v5111_v32  ;;  %v6425_v29 = vld [vmem:[#allocation17_spill] sm:$0xff]  ;;  %v6427_v6 = vld [vmem:[#allocation19_spill] sm:$0xff] }
 0x1cd   : > { %v852_v20 = vadd.f32 %v4959_v60, %v793_v39  ;;  %v853_v3 = vadd.f32 %v4959_v60, %v794_v1  ;;  %v1324_v23 = vmul.f32 %v4969_v45, %v5122_v27  ;;  %v1367_v10 = vmul.f32 %v4997_v25, %v5111_v32  ;;  %v6426_v45 = vld [vmem:[#allocation18_spill] sm:$0xff] }
 0x1ce   : > { %v2931_v54 = vadd.f32 %v2839_v55, %v2686_v36  ;;  %v2932_v40 = vadd.f32 %v2841_v24, %v2687_v5  ;;  %v5530_v44 = vmul.f32 %v6425_v29, %v905_v11  ;;  %v1368_v41 = vmul.f32 %v4997_v25, %v5122_v27 }
 0x1cf   : > { %v906_v48 = vmax.f32 %v852_v20, 0.0  ;;  %v907_v18 = vmax.f32 %v853_v3, 0.0  ;;  %v1478_v26 = vrot.slane %v1367_v10, 1  ;;  %v1613_v61 = vmul.f32 %v5006_v14, %v5111_v32 }
 0x1d0   : > { %v2968_v60 = vmul.f32 %v5432_v38, %v2931_v54  ;;  %v2969_v9 = vmul.f32 %v5432_v38, %v2932_v40  ;;  %v1479_v37 = vrot.slane %v1368_v41, 1  ;;  %v1614_v39 = vmul.f32 %v5006_v14, %v5122_v27 }
 0x1d1   : > { %v5539_v56 = vmul.f32 %v6426_v45, %v906_v48  ;;  %v5542_v63 = vmul.f32 %v6427_v6, %v907_v18  ;;  %v1724_v36 = vrot.slane %v1613_v61, 2  ;;  %v1852_v5 = vmul.f32 %v5339_v35, %v5219_v19 }
 0x1d2   : > { %v3005_v17 = vadd.f32 %v5446_v47, %v2968_v60  ;;  %v3006_v1 = vadd.f32 %v5446_v47, %v2969_v9  ;;  %v1480_v27 = vsel %vm1442_vm3, %v1478_v26, %v1479_v37  ;;  %v6428_v20 = vrot.slane %v5137_v59, 1 }
 0x1d3   : > { %v5552_v32 = vmul.f32 %v4997_v25, %v5542_v63  ;;  %v5556_v55 = vmul.f32 %v5006_v14, %v5542_v63  ;;  %v5560_v24 = vmul.f32 %v5054_v30, %v5542_v63  ;;  %v1569_v54 = vadd.f32 %v1480_v27, %v1323_v28 }
 0x1d4   : > { %v3031_v11 = vpack.c.bf16 %v3006_v1, %v3005_v17  ;;  %v1482_v3 = vsel %vm1442_vm3, %v1479_v37, %v6428_v20  ;;  %v1725_v40 = vrot.slane %v1614_v39, 2  ;;  %v1853_v14 = vmul.f32 %v5339_v35, %v5226_v0 }
 0x1d5   : > { %v1501_v25 = vrot.slane %v5552_v32, 1  ;;  %v1747_v10 = vrot.slane %v5556_v55, 2  ;;  %v1570_v29 = vadd.f32 %v1482_v3, %v1324_v23  ;;  %v6429_v18 = vrot.slane %v5141_v16, 2 }
 0x1d6   : > { %3723 = vmatprep.mubr.bf16.mxu1 %v3031_v11  ;;  %v1726_v48 = vsel %vm1688_vm4, %v1724_v36, %v1725_v40  ;;  %v1928_v59 = vmul.f32 %v5054_v30, %v5219_v19  ;;  %v1929_v28 = vmul.f32 %v5054_v30, %v5226_v0  ;;  %v2041_v23 = vrot.slane %v5247_v15, 1 }
 0x1d7   : > { %v1728_v41 = vsel %vm1688_vm4, %v1725_v40, %v6429_v18  ;;  %v1815_v60 = vadd.f32 %v1726_v48, %v1569_v54  ;;  %v2173_v26 = vmul.f32 %v5167_v13, %v5219_v19  ;;  %v2174_v16 = vmul.f32 %v5167_v13, %v5226_v0 }
 0x1d8   : > { %v1816_v9 = vadd.f32 %v1728_v41, %v1570_v29  ;;  %v2038_v61 = vrot.slane %v1928_v59, 1  ;;  %v2039_v45 = vrot.slane %v1929_v28, 1  ;;  %v2175_v6 = vmul.f32 %v5167_v13, %v5231_v52 }
 0x1d9   : > { %v1884_v37 = vadd.f32 %v1852_v5, %v1815_v60  ;;  %v2283_v17 = vrot.slane %v2173_v26, 2  ;;  %v2411_v1 = vmul.f32 %v5383_v49, %v5322_v7  ;;  %v2284_v27 = vrot.slane %v2174_v16, 2  ;;  %v5608_v16 = vld [vmem:[%s6245_s4] ss:$0 sm:$0xff] }
 0x1da   : > { %v1885_v39 = vadd.f32 %v1853_v14, %v1816_v9  ;;  %v2040_v36 = vsel %vm1442_vm3, %v2038_v61, %v2039_v45  ;;  %v2042_v15 = vsel %vm1442_vm3, %v2039_v45, %v2041_v23  ;;  %v2286_v11 = vrot.slane %v2175_v6, 2 }
 0x1db   : > { %v2129_v20 = vadd.f32 %v2040_v36, %v1884_v37  ;;  %v2412_v54 = vmul.f32 %v5383_v49, %v5329_v46  ;;  %v2487_v52 = vmul.f32 %v5277_v58, %v5322_v7  ;;  %v2285_v5 = vsel %vm1688_vm4, %v2283_v17, %v2284_v27 }
 0x1dc   : > { %v2130_v3 = vadd.f32 %v2042_v15, %v1885_v39  ;;  %v2287_v40 = vsel %vm1688_vm4, %v2284_v27, %v2286_v11  ;;  %v2488_v29 = vmul.f32 %v5277_v58, %v5329_v46  ;;  %v2489_v14 = vmul.f32 %v5277_v58, %v5332_v21  ;;  %v5619_v11 = vld [vmem:[%s6245_s4 + $0x1] ss:$0 sm:$0xff] }
 0x1dd   : > { %v2374_v48 = vadd.f32 %v2285_v5, %v2129_v20  ;;  %v2597_v41 = vrot.slane %v2487_v52, 1  ;;  %v2732_v59 = vmul.f32 %v5290_v51, %v5322_v7  ;;  %v2733_v9 = vmul.f32 %v5290_v51, %v5329_v46  ;;  %v5630_v5 = vld [vmem:[%s6245_s4 + $0x2] ss:$0 sm:$0xff] }
 0x1de   : > { %v2375_v18 = vadd.f32 %v2287_v40, %v2130_v3  ;;  %v2598_v28 = vrot.slane %v2488_v29, 1  ;;  %v2600_v60 = vrot.slane %v2489_v14, 1  ;;  %v2734_v23 = vmul.f32 %v5290_v51, %v5332_v21 }
 0x1df   : > { %v2443_v26 = vadd.f32 %v2411_v1, %v2374_v48  ;;  %v2842_v45 = vrot.slane %v2732_v59, 2  ;;  %v1325_v6 = vmul.f32 %v5608_v16, %v5219_v19  ;;  %v2843_v17 = vrot.slane %v2733_v9, 2 }
 0x1e0   : > { %v2444_v61 = vadd.f32 %v2412_v54, %v2375_v18  ;;  %v2599_v37 = vsel %vm1442_vm3, %v2597_v41, %v2598_v28  ;;  %v2601_v39 = vsel %vm1442_vm3, %v2598_v28, %v2600_v60  ;;  %v2845_v36 = vrot.slane %v2734_v23, 2 }
 0x1e1   : > { %v2688_v15 = vadd.f32 %v2599_v37, %v2443_v26  ;;  %v1326_v1 = vmul.f32 %v5608_v16, %v5226_v0  ;;  %v1370_v20 = vmul.f32 %v5619_v11, %v5219_v19  ;;  %v2844_v3 = vsel %vm1688_vm4, %v2842_v45, %v2843_v17  ;;  %v5651_v37 = vld [vmem:[%s6245_s4 + $0x4] ss:$0 sm:$0xff] }
 0x1e2   : > { %v2689_v27 = vadd.f32 %v2601_v39, %v2444_v61  ;;  %v2846_v54 = vsel %vm1688_vm4, %v2843_v17, %v2845_v36  ;;  %v1371_v52 = vmul.f32 %v5619_v11, %v5226_v0  ;;  %v1616_v40 = vmul.f32 %v5630_v5, %v5219_v19 }
 0x1e3   : > { %v2933_v29 = vadd.f32 %v2844_v3, %v2688_v15  ;;  %v1483_v48 = vrot.slane %v1370_v20, 1  ;;  %v1617_v18 = vmul.f32 %v5630_v5, %v5226_v0  ;;  %v1854_v28 = vmul.f32 %v5339_v35, %v5322_v7  ;;  %v6431_v20 = vld [vmem:[#allocation34_spill] sm:$0xff] }
 0x1e4   : > { %v2934_v14 = vadd.f32 %v2846_v54, %v2689_v27  ;;  %v1484_v41 = vrot.slane %v1371_v52, 1  ;;  %v1729_v59 = vrot.slane %v1616_v40, 2  ;;  %v1855_v60 = vmul.f32 %v5339_v35, %v5329_v46 }
 0x1e5   : > { %v2970_v9 = vmul.f32 %v5432_v38, %v2933_v29  ;;  %v1730_v26 = vrot.slane %v1617_v18, 2  ;;  %v1931_v19 = vmul.f32 %v5054_v30, %v5322_v7  ;;  %v6430_v0 = vrot.slane %v5239_v33, 1 }
 0x1e6   : > { %v2971_v23 = vmul.f32 %v5432_v38, %v2934_v14  ;;  %v1485_v61 = vsel %vm1442_vm3, %v1483_v48, %v1484_v41  ;;  %v1932_v39 = vmul.f32 %v5651_v37, %v5329_v46  ;;  %v2046_v17 = vrot.slane %v5359_v43, 1 }
 0x1e7   : > { %v1487_v45 = vsel %vm1442_vm3, %v1484_v41, %v6430_v0  ;;  %v3007_v36 = vadd.f32 %v5446_v47, %v2970_v9  ;;  %v1571_v15 = vadd.f32 %v1485_v61, %v1325_v6  ;;  %v1731_v33 = vsel %vm1688_vm4, %v1729_v59, %v1730_v26 }
 0x1e8   : > { %v3008_v30 = vadd.f32 %v5446_v47, %v2971_v23  ;;  %v1572_v27 = vadd.f32 %v1487_v45, %v1326_v1  ;;  %v6432_v3 = vrot.slane %v6431_v20, 2  ;;  %v2043_v52 = vrot.slane %v1931_v19, 1 }
 0x1e9   : > { %v2044_v40 = vrot.slane %v1932_v39, 1  ;;  %v1817_v14 = vadd.f32 %v1731_v33, %v1571_v15  ;;  %v2176_v43 = vmul.f32 %v5167_v13, %v5322_v7  ;;  %v2177_v6 = vmul.f32 %v5167_v13, %v5329_v46 }
 0x1ea   : > { %v1733_v54 = vsel %vm1688_vm4, %v1730_v26, %v6432_v3  ;;  %v3032_v29 = vpack.c.bf16 %v3008_v30, %v3007_v36  ;;  %v2178_v1 = vmul.f32 %v5167_v13, %v5332_v21  ;;  %v2413_v26 = vmul.f32 %v5383_v49, %v5423_v8 }
 0x1eb   : > { %v1818_v48 = vadd.f32 %v1733_v54, %v1572_v27  ;;  %v2045_v18 = vsel %vm1442_vm3, %v2043_v52, %v2044_v40  ;;  %v2047_v41 = vsel %vm1442_vm3, %v2044_v40, %v2046_v17  ;;  %v1886_v59 = vadd.f32 %v1854_v28, %v1817_v14 }
 0x1ec   : > { %3724 = vmatmul.mubr.bf16.gmra.mrb[48].mxu1 %v3032_v29  ;;  %v2288_v23 = vrot.slane %v2176_v43, 2  ;;  %v2289_v19 = vrot.slane %v2177_v6, 2  ;;  %v2291_v61 = vrot.slane %v2178_v1, 2  ;;  %v2414_v0 = vmul.f32 %v5383_v49, %v5439_v2 }
 0x1ed   : > { %v1887_v9 = vadd.f32 %v1855_v60, %v1818_v48  ;;  %v2490_v45 = vmul.f32 %v5277_v58, %v5423_v8  ;;  %v2131_v39 = vadd.f32 %v2045_v18, %v1886_v59  ;;  %v2491_v21 = vmul.f32 %v5277_v58, %v5439_v2 }
 0x1ee   : > { %v2492_v28 = vmul.f32 %v5277_v58, %v5451_v34  ;;  %v2290_v60 = vsel %vm1688_vm4, %v2288_v23, %v2289_v19  ;;  %v2292_v36 = vsel %vm1688_vm4, %v2289_v19, %v2291_v61  ;;  %v2735_v15 = vmul.f32 %v5290_v51, %v5423_v8 }
 0x1ef   : > { %v2132_v17 = vadd.f32 %v2047_v41, %v1887_v9  ;;  %v2602_v30 = vrot.slane %v2490_v45, 1  ;;  %v2376_v27 = vadd.f32 %v2290_v60, %v2131_v39  ;;  %v2603_v20 = vrot.slane %v2491_v21, 1 }
 0x1f0   : > { %v2605_v3 = vrot.slane %v2492_v28, 1  ;;  %v2736_v54 = vmul.f32 %v5290_v51, %v5439_v2  ;;  %v2737_v52 = vmul.f32 %v5290_v51, %v5451_v34  ;;  %v2847_v40 = vrot.slane %v2735_v15, 2 }
 0x1f1   : > { %v2377_v33 = vadd.f32 %v2292_v36, %v2132_v17  ;;  %v1327_v29 = vmul.f32 %v5608_v16, %v5322_v7  ;;  %v2445_v14 = vadd.f32 %v2413_v26, %v2376_v27  ;;  %v2604_v43 = vsel %vm1442_vm3, %v2602_v30, %v2603_v20 }
 0x1f2   : > { %v2606_v18 = vsel %vm1442_vm3, %v2603_v20, %v2605_v3  ;;  %v2848_v41 = vrot.slane %v2736_v54, 2  ;;  %v2850_v6 = vrot.slane %v2737_v52, 2  ;;  %v1328_v1 = vmul.f32 %v5608_v16, %v5329_v46 }
 0x1f3   : > { %v2446_v48 = vadd.f32 %v2414_v0, %v2377_v33  ;;  %v1373_v59 = vmul.f32 %v5619_v11, %v5322_v7  ;;  %v2690_v9 = vadd.f32 %v2604_v43, %v2445_v14  ;;  %v1374_v19 = vmul.f32 %v5619_v11, %v5329_v46 }
 0x1f4   : > { %v1619_v26 = vmul.f32 %v5630_v5, %v5322_v7  ;;  %v2849_v61 = vsel %vm1688_vm4, %v2847_v40, %v2848_v41  ;;  %v2851_v0 = vsel %vm1688_vm4, %v2848_v41, %v2850_v6  ;;  %v1620_v39 = vmul.f32 %v5630_v5, %v5329_v46 }
 0x1f5   : > { %v2691_v23 = vadd.f32 %v2606_v18, %v2446_v48  ;;  %v1488_v45 = vrot.slane %v1373_v59, 1  ;;  %v2935_v17 = vadd.f32 %v2849_v61, %v2690_v9  ;;  %v1489_v28 = vrot.slane %v1374_v19, 1 }
 0x1f6   : > { %v1734_v60 = vrot.slane %v1619_v26, 2  ;;  %v1735_v36 = vrot.slane %v1620_v39, 2  ;;  %v1856_v30 = vmul.f32 %v5339_v35, %v5423_v8  ;;  %v1857_v15 = vmul.f32 %v5339_v35, %v5439_v2 }
 0x1f7   : > { %v2936_v21 = vadd.f32 %v2851_v0, %v2691_v23  ;;  %v1934_v7 = vmul.f32 %v5651_v37, %v5423_v8  ;;  %v2972_v27 = vmul.f32 %v5432_v38, %v2935_v17  ;;  %v1490_v46 = vsel %vm1442_vm3, %v1488_v45, %v1489_v28 }
 0x1f8   : > { %v1492_v20 = vsel %vm1442_vm3, %v1489_v28, %v1491_v4  ;;  %v1573_v3 = vadd.f32 %v1490_v46, %v1327_v29  ;;  %v1736_v52 = vsel %vm1688_vm4, %v1734_v60, %v1735_v36  ;;  %v1738_v40 = vsel %vm1688_vm4, %v1735_v36, %v1737_v22 }
 0x1f9   : > { %v2973_v33 = vmul.f32 %v5432_v38, %v2936_v21  ;;  %v1574_v54 = vadd.f32 %v1492_v20, %v1328_v1  ;;  %v3009_v14 = vadd.f32 %v5446_v47, %v2972_v27  ;;  %v1935_v43 = vmul.f32 %v5651_v37, %v5439_v2 }
 0x1fa   : > { %v2048_v18 = vrot.slane %v1934_v7, 1  ;;  %v1819_v41 = vadd.f32 %v1736_v52, %v1573_v3  ;;  %v2051_v4 = vrot.slane %v5469_v57, 1  ;;  %v2179_v29 = vmul.f32 %v5167_v13, %v5423_v8 }
 0x1fb   : > { %v3010_v48 = vadd.f32 %v5446_v47, %v2973_v33  ;;  %v1820_v53 = vadd.f32 %v1738_v40, %v1574_v54  ;;  %v2049_v1 = vrot.slane %v1935_v43, 1  ;;  %v2180_v12 = vmul.f32 %v5167_v13, %v5439_v2 }
 0x1fc   : > { %v2181_v22 = vmul.f32 %v5167_v13, %v5451_v34  ;;  %v1888_v59 = vadd.f32 %v1856_v30, %v1819_v41  ;;  %v2293_v23 = vrot.slane %v2179_v29, 2  ;;  %v2415_v19 = vmul.f32 %v5383_v49, %v5530_v44 }
 0x1fd   : > { %v3033_v6 = vpack.c.bf16 %v3010_v48, %v3009_v14  ;;  %v1889_v9 = vadd.f32 %v1857_v15, %v1820_v53  ;;  %v2050_v57 = vsel %vm1442_vm3, %v2048_v18, %v2049_v1  ;;  %v2052_v26 = vsel %vm1442_vm3, %v2049_v1, %v2051_v4 }
 0x1fe   : > { %v2294_v61 = vrot.slane %v2180_v12, 2  ;;  %v2296_v0 = vrot.slane %v2181_v22, 2  ;;  %v2133_v45 = vadd.f32 %v2050_v57, %v1888_v59  ;;  %v2416_v17 = vmul.f32 %v5383_v49, %v5539_v56 }
 0x1ff   : > { %3727 = vmatprep.mubr.bf16.mxu1 %v3033_v6  ;;  %v2134_v39 = vadd.f32 %v2052_v26, %v1889_v9  ;;  %v2493_v13 = vmul.f32 %v5277_v58, %v5530_v44  ;;  %v2494_v28 = vmul.f32 %v5277_v58, %v5539_v56  ;;  %v2495_v60 = vmul.f32 %v5277_v58, %v5542_v63 }
 0x200   : > { %v2295_v34 = vsel %vm1688_vm4, %v2293_v23, %v2294_v61  ;;  %v2297_v21 = vsel %vm1688_vm4, %v2294_v61, %v2296_v0  ;;  %v2738_v7 = vmul.f32 %v5290_v51, %v5530_v44  ;;  %v2739_v46 = vmul.f32 %v5290_v51, %v5539_v56 }
 0x201   : > { %v2378_v36 = vadd.f32 %v2295_v34, %v2133_v45  ;;  %v2379_v30 = vadd.f32 %v2297_v21, %v2134_v39  ;;  %v2607_v15 = vrot.slane %v2493_v13, 1  ;;  %v2608_v27 = vrot.slane %v2494_v28, 1 }
 0x202   : > { %v2610_v33 = vrot.slane %v2495_v60, 1  ;;  %v2740_v20 = vmul.f32 %v5290_v51, %v5542_v63  ;;  %v2852_v52 = vrot.slane %v2738_v7, 2  ;;  %v1329_v40 = vmul.f32 %v5608_v16, %v5423_v8 }
 0x203   : > { %v2447_v3 = vadd.f32 %v2415_v19, %v2378_v36  ;;  %v2448_v54 = vadd.f32 %v2416_v17, %v2379_v30  ;;  %v2609_v14 = vsel %vm1442_vm3, %v2607_v15, %v2608_v27  ;;  %v2853_v43 = vrot.slane %v2739_v46, 2 }
 0x204   : > { %v2611_v48 = vsel %vm1442_vm3, %v2608_v27, %v2610_v33  ;;  %v2855_v18 = vrot.slane %v2740_v20, 2  ;;  %v1330_v4 = vmul.f32 %v5608_v16, %v5439_v2  ;;  %v1376_v29 = vmul.f32 %v5619_v11, %v5423_v8 }
 0x205   : > { %v2692_v41 = vadd.f32 %v2609_v14, %v2447_v3  ;;  %v2693_v53 = vadd.f32 %v2611_v48, %v2448_v54  ;;  %v2854_v6 = vsel %vm1688_vm4, %v2852_v52, %v2853_v43  ;;  %v1377_v12 = vmul.f32 %v5619_v11, %v5439_v2  ;;  %v6433_v48 = vld [vmem:[#allocation21_spill] sm:$0xff] }
 0x206   : > { %v2856_v1 = vsel %vm1688_vm4, %v2853_v43, %v2855_v18  ;;  %v1622_v22 = vmul.f32 %v5630_v5, %v5423_v8  ;;  %v1493_v23 = vrot.slane %v1376_v29, 1  ;;  %v1623_v19 = vmul.f32 %v5630_v5, %v5439_v2 }
 0x207   : > { %v2937_v59 = vadd.f32 %v2854_v6, %v2692_v41  ;;  %v2938_v9 = vadd.f32 %v2856_v1, %v2693_v53  ;;  %v1494_v57 = vrot.slane %v1377_v12, 1  ;;  %v1858_v61 = vmul.f32 %v5339_v35, %v5530_v44  ;;  %v6434_v53 = vld [vmem:[#allocation20_spill] sm:$0xff]  ;;  %v6435_v12 = vld [vmem:[#allocation23_spill] sm:$0xff] }
 0x208   : > { %v1739_v26 = vrot.slane %v1622_v22, 2  ;;  %v1859_v0 = vmul.f32 %v5339_v35, %v5539_v56  ;;  %v1740_v17 = vrot.slane %v1623_v19, 2  ;;  %v1937_v8 = vmul.f32 %v5651_v37, %v5530_v44 }
 0x209   : > { %v2974_v45 = vmul.f32 %v5432_v38, %v2937_v59  ;;  %v2975_v39 = vmul.f32 %v5432_v38, %v2938_v9  ;;  %v1495_v13 = vsel %vm1442_vm3, %v1493_v23, %v1494_v57  ;;  %v1497_v2 = vsel %vm1442_vm3, %v1494_v57, %v1496_v42 }
 0x20a   : > { %v1938_v34 = vmul.f32 %v5651_v37, %v5539_v56  ;;  %v2056_v21 = vrot.slane %v5560_v24, 1  ;;  %v1575_v36 = vadd.f32 %v1495_v13, %v1329_v40  ;;  %v1576_v30 = vadd.f32 %v1497_v2, %v1330_v4  ;;  %v5791_v24 = vld [vmem:[%s6245_s4 + $0x5] ss:$0 sm:$0xff] }
 0x20b   : > { %v3011_v28 = vadd.f32 %v5446_v47, %v2974_v45  ;;  %v3012_v60 = vadd.f32 %v5446_v47, %v2975_v39  ;;  %v1741_v15 = vsel %vm1688_vm4, %v1739_v26, %v1740_v17  ;;  %v1743_v7 = vsel %vm1688_vm4, %v1740_v17, %v1742_v62 }
 0x20c   : > { %v2053_v31 = vrot.slane %v1937_v8, 1  ;;  %v2054_v27 = vrot.slane %v1938_v34, 1  ;;  %v1821_v33 = vadd.f32 %v1741_v15, %v1575_v36  ;;  %v1822_v46 = vadd.f32 %v1743_v7, %v1576_v30 }
 0x20d   : > { %v3034_v42 = vpack.c.bf16 %v3012_v60, %v3011_v28  ;;  %v2182_v20 = vmul.f32 %v5791_v24, %v5530_v44  ;;  %v2183_v50 = vmul.f32 %v5791_v24, %v5539_v56  ;;  %v2184_v62 = vmul.f32 %v5791_v24, %v5542_v63 }
 0x20e   : > { %v2055_v3 = vsel %vm1442_vm3, %v2053_v31, %v2054_v27  ;;  %v2057_v54 = vsel %vm1442_vm3, %v2054_v27, %v2056_v21  ;;  %v1890_v52 = vadd.f32 %v1858_v61, %v1821_v33  ;;  %v1891_v40 = vadd.f32 %v1859_v0, %v1822_v46 }
 0x20f   : > { %3728 = vmatmul.mubr.bf16.gmra.mrb[52].mxu1 %v3034_v42  ;;  %v2298_v14 = vrot.slane %v2182_v20, 2  ;;  %v2417_v43 = vmul.f32 %v5383_v49, %v6433_v48  ;;  %v2299_v18 = vrot.slane %v2183_v50, 2  ;;  %v2301_v41 = vrot.slane %v2184_v62, 2 }
 0x210   : > { %v2418_v4 = vmul.f32 %v5383_v49, %v6434_v53  ;;  %v2496_v29 = vmul.f32 %v5277_v58, %v6433_v48  ;;  %v2135_v6 = vadd.f32 %v2055_v3, %v1890_v52  ;;  %v2136_v1 = vadd.f32 %v2057_v54, %v1891_v40 }
 0x211   : > { %v2497_v63 = vmul.f32 %v5277_v58, %v6434_v53  ;;  %v2498_v22 = vmul.f32 %v5277_v58, %v6435_v12  ;;  %v2300_v59 = vsel %vm1688_vm4, %v2298_v14, %v2299_v18  ;;  %v2302_v9 = vsel %vm1688_vm4, %v2299_v18, %v2301_v41 }
 0x212   : > { %v2612_v23 = vrot.slane %v2496_v29, 1  ;;  %v2741_v19 = vmul.f32 %v5290_v51, %v6433_v48  ;;  %v2380_v57 = vadd.f32 %v2300_v59, %v2135_v6  ;;  %v2381_v26 = vadd.f32 %v2302_v9, %v2136_v1  ;;  %v6436_v9 = vld [vmem:[#allocation28_spill] sm:$0xff] }
 0x213   : > { %v2613_v61 = vrot.slane %v2497_v63, 1  ;;  %v2615_v0 = vrot.slane %v2498_v22, 1  ;;  %v2742_v45 = vmul.f32 %v5290_v51, %v6434_v53  ;;  %v2743_v39 = vmul.f32 %v5290_v51, %v6435_v12 }
 0x214   : > { %v2857_v17 = vrot.slane %v2741_v19, 2  ;;  %v1331_v58 = vmul.f32 %v5608_v16, %v5530_v44  ;;  %v2449_v8 = vadd.f32 %v2417_v43, %v2380_v57  ;;  %v2450_v13 = vadd.f32 %v2418_v4, %v2381_v26 }
 0x215   : > { %v2614_v2 = vsel %vm1442_vm3, %v2612_v23, %v2613_v61  ;;  %v2616_v34 = vsel %vm1442_vm3, %v2613_v61, %v2615_v0  ;;  %v2858_v21 = vrot.slane %v2742_v45, 2  ;;  %v2860_v28 = vrot.slane %v2743_v39, 2  ;;  %v6437_v23 = vld [vmem:[#allocation29_spill] sm:$0xff]  ;;  %v6438_v39 = vld [vmem:[#allocation26_spill] sm:$0xff] }
 0x216   : > { %v1332_v60 = vmul.f32 %v5608_v16, %v5539_v56  ;;  %v1379_v36 = vmul.f32 %v5619_v11, %v5530_v44  ;;  %v2694_v30 = vadd.f32 %v2614_v2, %v2449_v8  ;;  %v2695_v51 = vadd.f32 %v2616_v34, %v2450_v13  ;;  %v5870_v8 = vld [vmem:[%s6245_s4 + $0x7] ss:$0 sm:$0xff] }
 0x217   : > { %v1380_v15 = vmul.f32 %v5619_v11, %v5539_v56  ;;  %v1625_v7 = vmul.f32 %v5630_v5, %v5530_v44  ;;  %v2859_v31 = vsel %vm1688_vm4, %v2857_v17, %v2858_v21  ;;  %v2861_v27 = vsel %vm1688_vm4, %v2858_v21, %v2860_v28  ;;  %v6440_v28 = vld [vmem:[#allocation27_spill] sm:$0xff] }
 0x218   : > { %v1498_v42 = vrot.slane %v1379_v36, 1  ;;  %v1626_v33 = vmul.f32 %v5630_v5, %v5539_v56  ;;  %v2939_v46 = vadd.f32 %v2859_v31, %v2694_v30  ;;  %v2940_v20 = vadd.f32 %v2861_v27, %v2695_v51  ;;  %v6442_v30 = vld [vmem:[#allocation31_spill] sm:$0xff] }
 0x219   : > { %v1499_v3 = vrot.slane %v1380_v15, 1  ;;  %v1744_v54 = vrot.slane %v1625_v7, 2  ;;  %v1860_v62 = vmul.f32 %v5339_v35, %v6433_v48  ;;  %v1861_v52 = vmul.f32 %v5339_v35, %v6434_v53  ;;  %v5885_v31 = vld [vmem:[%s6245_s4 + $0x8] ss:$0 sm:$0xff] }
 0x21a   : > { %v1745_v50 = vrot.slane %v1626_v33, 2  ;;  %v1940_v44 = vmul.f32 %v5651_v37, %v6433_v48  ;;  %v2976_v40 = vmul.f32 %v5432_v38, %v2939_v46  ;;  %v2977_v14 = vmul.f32 %v5432_v38, %v2940_v20 }
 0x21b   : > { %v1500_v56 = vsel %vm1442_vm3, %v1498_v42, %v1499_v3  ;;  %v1502_v43 = vsel %vm1442_vm3, %v1499_v3, %v1501_v25  ;;  %v1941_v1 = vmul.f32 %v5651_v37, %v6434_v53  ;;  %v2185_v25 = vmul.f32 %v5791_v24, %v6433_v48 }
 0x21c   : > { %v1577_v18 = vadd.f32 %v1500_v56, %v1331_v58  ;;  %v1578_v41 = vadd.f32 %v1502_v43, %v1332_v60  ;;  %v1746_v4 = vsel %vm1688_vm4, %v1744_v54, %v1745_v50  ;;  %v1748_v35 = vsel %vm1688_vm4, %v1745_v50, %v1747_v10 }
 0x21d   : > { %v3013_v29 = vadd.f32 %v5446_v47, %v2976_v40  ;;  %v3014_v6 = vadd.f32 %v5446_v47, %v2977_v14  ;;  %v2058_v63 = vrot.slane %v1940_v44, 1  ;;  %v2186_v22 = vmul.f32 %v5791_v24, %v6434_v53 }
 0x21e   : > { %v1823_v12 = vadd.f32 %v1746_v4, %v1577_v18  ;;  %v1824_v32 = vadd.f32 %v1748_v35, %v1578_v41  ;;  %v2059_v55 = vrot.slane %v1941_v1, 1  ;;  %v2419_v10 = vmul.f32 %v5383_v49, %v6436_v9 }
 0x21f   : > { %v3035_v59 = vpack.c.bf16 %v3014_v6, %v3013_v29  ;;  %v2420_v19 = vmul.f32 %v5383_v49, %v6437_v23  ;;  %v2303_v61 = vrot.slane %v2185_v25, 2  ;;  %v2304_v0 = vrot.slane %v2186_v22, 2 }
 0x220   : > { %v1892_v57 = vadd.f32 %v1860_v62, %v1823_v12  ;;  %v1893_v26 = vadd.f32 %v1861_v52, %v1824_v32  ;;  %v2060_v45 = vsel %vm1442_vm3, %v2058_v63, %v2059_v55  ;;  %v6439_v17 = vrot.slane %v6438_v39, 1  ;;  %v6443_v63 = vld [vmem:[#allocation24_spill] sm:$0xff] }
 0x221   : > { %3731 = vmatprep.mubr.bf16.mxu1 %v3035_v59  ;;  %v2499_v13 = vmul.f32 %v5870_v8, %v6436_v9  ;;  %v2500_v49 = vmul.f32 %v5870_v8, %v6437_v23  ;;  %v2305_v21 = vsel %vm1688_vm4, %v2303_v61, %v2304_v0  ;;  %v6441_v60 = vrot.slane %v6440_v28, 2 }
 0x222   : > { %v2062_v58 = vsel %vm1442_vm3, %v2059_v55, %v6439_v17  ;;  %v2137_v2 = vadd.f32 %v2060_v45, %v1892_v57  ;;  %v2501_v51 = vmul.f32 %v5870_v8, %v6442_v30  ;;  %v2744_v27 = vmul.f32 %v5885_v31, %v6436_v9  ;;  %v5911_v55 = vld [vmem:[%s6245_s4 + $0x3] ss:$0 sm:$0xff] }
 0x223   : > { %v2138_v34 = vadd.f32 %v2062_v58, %v1893_v26  ;;  %v2307_v36 = vsel %vm1688_vm4, %v2304_v0, %v6441_v60  ;;  %v2617_v15 = vrot.slane %v2499_v13, 1  ;;  %v2618_v7 = vrot.slane %v2500_v49, 1  ;;  %v6446_v49 = vld [vmem:[#allocation25_spill] sm:$0xff] }
 0x224   : > { %v2382_v42 = vadd.f32 %v2305_v21, %v2137_v2  ;;  %v2745_v46 = vmul.f32 %v5885_v31, %v6437_v23  ;;  %v2746_v20 = vmul.f32 %v5885_v31, %v6442_v30  ;;  %v2620_v54 = vrot.slane %v2501_v51, 1 }
 0x225   : > { %v2383_v33 = vadd.f32 %v2307_v36, %v2138_v34  ;;  %v2619_v3 = vsel %vm1442_vm3, %v2617_v15, %v2618_v7  ;;  %v2862_v50 = vrot.slane %v2744_v27, 2  ;;  %v1333_v62 = vmul.f32 %v5608_v16, %v6433_v48  ;;  %v6448_v15 = vld [vmem:[#allocation36_spill] sm:$0xff] }
 0x226   : > { %v2451_v52 = vadd.f32 %v2419_v10, %v2382_v42  ;;  %v2863_v40 = vrot.slane %v2745_v46, 2  ;;  %v2865_v14 = vrot.slane %v2746_v20, 2  ;;  %v2621_v56 = vsel %vm1442_vm3, %v2618_v7, %v2620_v54  ;;  %v5943_v54 = vld [vmem:[%s6245_s4 + $0x6] ss:$0 sm:$0xff] }
 0x227   : > { %v2452_v44 = vadd.f32 %v2420_v19, %v2383_v33  ;;  %v1334_v43 = vmul.f32 %v5608_v16, %v6434_v53  ;;  %v1382_v18 = vmul.f32 %v5619_v11, %v6433_v48  ;;  %v1628_v41 = vmul.f32 %v5630_v5, %v6433_v48  ;;  %v6444_v19 = vld [vmem:[#allocation22_spill] sm:$0xff] }
 0x228   : > { %v2696_v4 = vadd.f32 %v2619_v3, %v2451_v52  ;;  %v2864_v29 = vsel %vm1688_vm4, %v2862_v50, %v2863_v40  ;;  %v2866_v6 = vsel %vm1688_vm4, %v2863_v40, %v2865_v14  ;;  %v1629_v32 = vmul.f32 %v5630_v5, %v6434_v53  ;;  %v6451_v52 = vld [vmem:[#allocation38_spill] sm:$0xff] }
 0x229   : > { %v2697_v35 = vadd.f32 %v2621_v56, %v2452_v44  ;;  %v1503_v1 = vrot.slane %v1382_v18, 1  ;;  %v1580_v12 = vadd.f32 %v6443_v63, %v1334_v43  ;;  %v1749_v25 = vrot.slane %v1628_v41, 2  ;;  %v6452_v18 = vld [vmem:[#allocation40_spill] sm:$0xff] }
 0x22a   : > { %v2941_v22 = vadd.f32 %v2864_v29, %v2696_v4  ;;  %v1862_v48 = vmul.f32 %v5911_v55, %v6436_v9  ;;  %v1863_v10 = vmul.f32 %v5911_v55, %v6437_v23  ;;  %v6445_v57 = vrot.slane %v6444_v19, 1  ;;  %v6453_v29 = vld [vmem:[#allocation37_spill] sm:$0xff] }
 0x22b   : > { %v2942_v59 = vadd.f32 %v2866_v6, %v2697_v35  ;;  %v1750_v61 = vrot.slane %v1629_v32, 2  ;;  %v1943_v53 = vmul.f32 %v5651_v37, %v6436_v9  ;;  %v1944_v0 = vmul.f32 %v5651_v37, %v6437_v23 }
 0x22c   : > { %v1505_v26 = vsel %vm1442_vm3, %v1503_v1, %v6445_v57  ;;  %v2978_v45 = vmul.f32 %v5432_v38, %v2941_v22  ;;  %v2188_v58 = vmul.f32 %v5791_v24, %v6436_v9  ;;  %v6447_v2 = vrot.slane %v6446_v49, 2 }
 0x22d   : > { %v2979_v39 = vmul.f32 %v5432_v38, %v2942_v59  ;;  %v1579_v17 = vadd.f32 %v1505_v26, %v1333_v62  ;;  %v1751_v13 = vsel %vm1688_vm4, %v1749_v25, %v1750_v61  ;;  %v2063_v21 = vrot.slane %v1943_v53, 1 }
 0x22e   : > { %v1753_v34 = vsel %vm1688_vm4, %v1750_v61, %v6447_v2  ;;  %v2064_v28 = vrot.slane %v1944_v0, 1  ;;  %v3015_v60 = vadd.f32 %v5446_v47, %v2978_v45  ;;  %v6449_v7 = vrot.slane %v6448_v15, 1 }
 0x22f   : > { %v3016_v36 = vadd.f32 %v5446_v47, %v2979_v39  ;;  %v1825_v30 = vadd.f32 %v1751_v13, %v1579_v17  ;;  %v1826_v51 = vadd.f32 %v1753_v34, %v1580_v12  ;;  %v2189_v42 = vmul.f32 %v5791_v24, %v6437_v23  ;;  %v6450_v47 = vld [vmem:[#allocation32_spill] sm:$0xff] }
 0x230   : > { %v2065_v38 = vsel %vm1442_vm3, %v2063_v21, %v2064_v28  ;;  %v2067_v27 = vsel %vm1442_vm3, %v2064_v28, %v6449_v7  ;;  %v2308_v33 = vrot.slane %v2188_v58, 2  ;;  %v2421_v50 = vmul.f32 %v5943_v54, %v6450_v47 }
 0x231   : > { %v3036_v46 = vpack.c.bf16 %v3016_v36, %v3015_v60  ;;  %v1894_v20 = vadd.f32 %v1862_v48, %v1825_v30  ;;  %v1895_v3 = vadd.f32 %v1863_v10, %v1826_v51  ;;  %v2309_v62 = vrot.slane %v2189_v42, 2  ;;  %v6455_v60 = vld [vmem:[#allocation39_spill] sm:$0xff] }
 0x232   : > { %v2422_v44 = vmul.f32 %v5943_v54, %v6451_v52  ;;  %v2502_v40 = vmul.f32 %v5870_v8, %v6450_v47  ;;  %v2503_v14 = vmul.f32 %v5870_v8, %v6451_v52  ;;  %v2504_v41 = vmul.f32 %v5870_v8, %v6452_v18 }
 0x233   : > { %3732 = vmatmul.mubr.bf16.gmra.mrb[56].mxu1 %v3036_v46  ;;  %v2139_v56 = vadd.f32 %v2065_v38, %v1894_v20  ;;  %v2140_v43 = vadd.f32 %v2067_v27, %v1895_v3  ;;  %v2747_v4 = vmul.f32 %v5885_v31, %v6450_v47  ;;  %v2310_v35 = vsel %vm1688_vm4, %v2308_v33, %v2309_v62  ;;  %v5994_v20 = vld [vmem:[%s6246_s5] ss:$0 sm:$0xff] }
 0x234   : > { %v6454_v6 = vrot.slane %v6453_v29, 2  ;;  %v2622_v63 = vrot.slane %v2502_v40, 1  ;;  %v2623_v12 = vrot.slane %v2503_v14, 1  ;;  %v2625_v22 = vrot.slane %v2504_v41, 1  ;;  %v6458_v14 = vld [vmem:[#allocation35_spill] sm:$0xff] }
 0x235   : > { %v2384_v32 = vadd.f32 %v2310_v35, %v2139_v56  ;;  %v2748_v59 = vmul.f32 %v5885_v31, %v6451_v52  ;;  %v2749_v10 = vmul.f32 %v5885_v31, %v6452_v18  ;;  %v2867_v19 = vrot.slane %v2747_v4, 2  ;;  %v6011_v29 = vld [vmem:[%s6246_s5 + $0x1] ss:$0 sm:$0xff] }
 0x236   : > { %v2312_v1 = vsel %vm1688_vm4, %v2309_v62, %v6454_v6  ;;  %v2624_v48 = vsel %vm1442_vm3, %v2622_v63, %v2623_v12  ;;  %v1335_v57 = vmul.f32 %v5608_v16, %v6436_v9  ;;  %v2626_v53 = vsel %vm1442_vm3, %v2623_v12, %v2625_v22  ;;  %v6460_v22 = vld [vmem:[#allocation44_spill] sm:$0xff] }
 0x237   : > { %v2385_v25 = vadd.f32 %v2312_v1, %v2140_v43  ;;  %v2453_v26 = vadd.f32 %v2421_v50, %v2384_v32  ;;  %v2868_v0 = vrot.slane %v2748_v59, 2  ;;  %v2870_v45 = vrot.slane %v2749_v10, 2 }
 0x238   : > { %v1336_v39 = vmul.f32 %v5608_v16, %v6437_v23  ;;  %v1385_v17 = vmul.f32 %v5619_v11, %v6436_v9  ;;  %v1631_v58 = vmul.f32 %v5630_v5, %v6436_v9  ;;  %v1632_v34 = vmul.f32 %v5630_v5, %v6437_v23  ;;  %v6456_v9 = vld [vmem:[#allocation30_spill] sm:$0xff] }
 0x239   : > { %v2454_v61 = vadd.f32 %v2422_v44, %v2385_v25  ;;  %v2698_v13 = vadd.f32 %v2624_v48, %v2453_v26  ;;  %v2869_v2 = vsel %vm1688_vm4, %v2867_v19, %v2868_v0  ;;  %v2871_v21 = vsel %vm1688_vm4, %v2868_v0, %v2870_v45  ;;  %v6462_v0 = vld [vmem:[#allocation51_spill] sm:$0xff] }
 0x23a   : > { %v1508_v28 = vrot.slane %v1385_v17, 1  ;;  %v1582_v36 = vadd.f32 %v6455_v60, %v1336_v39  ;;  %v1754_v30 = vrot.slane %v1631_v58, 2  ;;  %v1755_v15 = vrot.slane %v1632_v34, 2  ;;  %v6463_v17 = vld [vmem:[#allocation52_spill] sm:$0xff] }
 0x23b   : > { %v2699_v49 = vadd.f32 %v2626_v53, %v2454_v61  ;;  %v2943_v51 = vadd.f32 %v2869_v2, %v2698_v13  ;;  %v1864_v7 = vmul.f32 %v5911_v55, %v6450_v47  ;;  %v6457_v27 = vrot.slane %v6456_v9, 1  ;;  %v5999_v40 = vpop.f32.mrb[36].mxu1 }
 0x23c   : > { %v1865_v33 = vmul.f32 %v5911_v55, %v6451_v52  ;;  %v1946_v23 = vmul.f32 %v5651_v37, %v6450_v47  ;;  %v1947_v46 = vmul.f32 %v5651_v37, %v6451_v52  ;;  %v1756_v44 = vsel %vm1688_vm4, %v1754_v30, %v1755_v15  ;;  %v6006_v35 = vpop.f32.mrb[37].mxu1  ;;  %v6465_v30 = vld [vmem:[#allocation45_spill] sm:$0xff] }
 0x23d   : > { %v2944_v38 = vadd.f32 %v2871_v21, %v2699_v49  ;;  %v1510_v42 = vsel %vm1442_vm3, %v1508_v28, %v6457_v27  ;;  %v2980_v3 = vmul.f32 %v5994_v20, %v2943_v51  ;;  %v6459_v56 = vrot.slane %v6458_v14, 2  ;;  %v6015_v32 = vpop.f32.mrb[38].mxu1  ;;  %v6464_v21 = vld [vmem:[#allocation53_spill] sm:$0xff] }
 0x23e   : > { %v1581_v62 = vadd.f32 %v1510_v42, %v1335_v57  ;;  %v2068_v18 = vrot.slane %v1946_v23, 1  ;;  %v2069_v41 = vrot.slane %v1947_v46, 1  ;;  %v2191_v4 = vmul.f32 %v5791_v24, %v6450_v47  ;;  %v6023_v57 = vpop.f32.mrb[39].mxu1 }
 0x23f   : > { %v2981_v50 = vmul.f32 %v5994_v20, %v2944_v38  ;;  %v1758_v43 = vsel %vm1688_vm4, %v1755_v15, %v6459_v56  ;;  %v3017_v6 = vadd.f32 %v6011_v29, %v2980_v3  ;;  %v6461_v59 = vrot.slane %v6460_v22, 1 }
 0x240   : > { %v1827_v63 = vadd.f32 %v1756_v44, %v1581_v62  ;;  %v1828_v12 = vadd.f32 %v1758_v43, %v1582_v36  ;;  %v2070_v25 = vsel %vm1442_vm3, %v2068_v18, %v2069_v41  ;;  %v2192_v10 = vmul.f32 %v5791_v24, %v6451_v52 }
 0x241   : > { %v3018_v1 = vadd.f32 %v6011_v29, %v2981_v50  ;;  %v2072_v48 = vsel %vm1442_vm3, %v2069_v41, %v6461_v59  ;;  %v2313_v19 = vrot.slane %v2191_v4, 2  ;;  %v2423_v45 = vmul.f32 %v5943_v54, %v6462_v0  ;;  %v6467_v59 = vld [vmem:[#allocation49_spill] sm:$0xff] }
 0x242   : > { %v1896_v61 = vadd.f32 %v1864_v7, %v1827_v63  ;;  %v1897_v53 = vadd.f32 %v1865_v33, %v1828_v12  ;;  %v2314_v39 = vrot.slane %v2192_v10, 2  ;;  %v2424_v58 = vmul.f32 %v5943_v54, %v6463_v17 }
 0x243   : > { %v3037_v26 = vpack.c.bf16 %v3018_v1, %v3017_v6  ;;  %v2505_v13 = vmul.f32 %v5870_v8, %v6462_v0  ;;  %v2506_v49 = vmul.f32 %v5870_v8, %v6463_v17  ;;  %v2507_v28 = vmul.f32 %v5870_v8, %v6464_v21 }
 0x244   : > { %v2141_v2 = vadd.f32 %v2070_v25, %v1896_v61  ;;  %v2142_v34 = vadd.f32 %v2072_v48, %v1897_v53  ;;  %v2750_v60 = vmul.f32 %v5885_v31, %v6462_v0  ;;  %v2315_v36 = vsel %vm1688_vm4, %v2313_v19, %v2314_v39 }
 0x245   : > { %3735 = vmatprep.mubr.bf16.mxu1 %v3037_v26  ;;  %v6466_v51 = vrot.slane %v6465_v30, 2  ;;  %v2627_v15 = vrot.slane %v2505_v13, 1  ;;  %v2628_v7 = vrot.slane %v2506_v49, 1  ;;  %v2630_v42 = vrot.slane %v2507_v28, 1 }
 0x246   : > { %v2386_v9 = vadd.f32 %v2315_v36, %v2141_v2  ;;  %v2751_v33 = vmul.f32 %v5885_v31, %v6463_v17  ;;  %v2752_v46 = vmul.f32 %v5885_v31, %v6464_v21  ;;  %v2872_v3 = vrot.slane %v2750_v60, 2  ;;  %v6470_v2 = vld [vmem:[#allocation42_spill] sm:$0xff] }
 0x247   : > { %v2317_v38 = vsel %vm1688_vm4, %v2314_v39, %v6466_v51  ;;  %v2629_v23 = vsel %vm1442_vm3, %v2627_v15, %v2628_v7  ;;  %v1337_v50 = vmul.f32 %v5608_v16, %v6450_v47  ;;  %v2631_v14 = vsel %vm1442_vm3, %v2628_v7, %v2630_v42  ;;  %v6472_v15 = vld [vmem:[#allocation55_spill] sm:$0xff] }
 0x248   : > { %v2387_v27 = vadd.f32 %v2317_v38, %v2142_v34  ;;  %v2455_v62 = vadd.f32 %v2423_v45, %v2386_v9  ;;  %v2873_v56 = vrot.slane %v2751_v33, 2  ;;  %v2875_v43 = vrot.slane %v2752_v46, 2 }
 0x249   : > { %v1338_v18 = vmul.f32 %v5608_v16, %v6451_v52  ;;  %v1388_v41 = vmul.f32 %v5619_v11, %v6450_v47  ;;  %v1634_v4 = vmul.f32 %v5630_v5, %v6450_v47  ;;  %v1635_v12 = vmul.f32 %v5630_v5, %v6451_v52  ;;  %v6468_v47 = vld [vmem:[#allocation41_spill] sm:$0xff] }
 0x24a   : > { %v2456_v44 = vadd.f32 %v2424_v58, %v2387_v27  ;;  %v2700_v6 = vadd.f32 %v2629_v23, %v2455_v62  ;;  %v2874_v63 = vsel %vm1688_vm4, %v2872_v3, %v2873_v56  ;;  %v2876_v25 = vsel %vm1688_vm4, %v2873_v56, %v2875_v43  ;;  %v6475_v62 = vld [vmem:[#allocation62_spill] sm:$0xff] }
 0x24b   : > { %v1513_v22 = vrot.slane %v1388_v41, 1  ;;  %v1584_v48 = vadd.f32 %v6467_v59, %v1338_v18  ;;  %v1759_v10 = vrot.slane %v1634_v4, 2  ;;  %v1760_v26 = vrot.slane %v1635_v12, 2  ;;  %v6476_v4 = vld [vmem:[#allocation56_spill] sm:$0xff]  ;;  %v6106_v59 = vld [vmem:[%s6248_s7] ss:$0 sm:$0xff] }
 0x24c   : > { %v2701_v1 = vadd.f32 %v2631_v14, %v2456_v44  ;;  %v2945_v16 = vadd.f32 %v2874_v63, %v2700_v6  ;;  %v1866_v11 = vmul.f32 %v5911_v55, %v6462_v0  ;;  %v6469_v61 = vrot.slane %v6468_v47, 1  ;;  %v6482_v47 = vld [vmem:[#allocation2_spill] sm:$0xff] }
 0x24d   : > { %v1867_v45 = vmul.f32 %v5911_v55, %v6463_v17  ;;  %v1949_v5 = vmul.f32 %v5651_v37, %v6462_v0  ;;  %v1950_v52 = vmul.f32 %v5651_v37, %v6463_v17  ;;  %v1761_v49 = vsel %vm1688_vm4, %v1759_v10, %v1760_v26 }
 0x24e   : > { %v2946_v19 = vadd.f32 %v2876_v25, %v2701_v1  ;;  %v1515_v53 = vsel %vm1442_vm3, %v1513_v22, %v6469_v61  ;;  %v2982_v39 = vmul.f32 %v5994_v20, %v2945_v16  ;;  %v6471_v34 = vrot.slane %v6470_v2, 2 }
 0x24f   : > { %v1583_v13 = vadd.f32 %v1515_v53, %v1337_v50  ;;  %v2073_v28 = vrot.slane %v1949_v5, 1  ;;  %v2074_v60 = vrot.slane %v1950_v52, 1  ;;  %v2194_v55 = vmul.f32 %v5791_v24, %v6462_v0  ;;  %v6474_v0 = vld [vmem:[#allocation61_spill] sm:$0xff]  ;;  %v6483_v52 = vld [vmem:[#allocation64_spill] sm:$0xff] }
 0x250   : > { %v2983_v58 = vmul.f32 %v5994_v20, %v2946_v19  ;;  %v1763_v21 = vsel %vm1688_vm4, %v1760_v26, %v6471_v34  ;;  %v3019_v36 = vadd.f32 %v6011_v29, %v2982_v39  ;;  %v6473_v7 = vrot.slane %v6472_v15, 1  ;;  %v6480_v19 = vld [vmem:[#allocation66_spill] sm:$0xff]  ;;  %v6481_v26 = vld [vmem:[#allocation65_spill] sm:$0xff] }
 0x251   : > { %v1829_v30 = vadd.f32 %v1761_v49, %v1583_v13  ;;  %v1830_v51 = vadd.f32 %v1763_v21, %v1584_v48  ;;  %v2075_v38 = vsel %vm1442_vm3, %v2073_v28, %v2074_v60  ;;  %v2195_v27 = vmul.f32 %v5791_v24, %v6463_v17  ;;  %v6478_v48 = vld [vmem:[#allocation63_spill] sm:$0xff]  ;;  %v6123_v13 = vld [vmem:[%s6248_s7 + $0x1] ss:$0 sm:$0xff] }
 0x252   : > { %v3020_v37 = vadd.f32 %v6011_v29, %v2983_v58  ;;  %v2077_v9 = vsel %vm1442_vm3, %v2074_v60, %v6473_v7  ;;  %v2318_v42 = vrot.slane %v2194_v55, 2  ;;  %v2425_v3 = vmul.f32 %v5943_v54, %v6474_v0 }
 0x253   : > { %v1898_v23 = vadd.f32 %v1866_v11, %v1829_v30  ;;  %v1899_v46 = vadd.f32 %v1867_v45, %v1830_v51  ;;  %v2319_v50 = vrot.slane %v2195_v27, 2  ;;  %v2426_v44 = vmul.f32 %v5943_v54, %v6475_v62 }
 0x254   : > { %v3038_v33 = vpack.c.bf16 %v3020_v37, %v3019_v36  ;;  %v2508_v14 = vmul.f32 %v5870_v8, %v6474_v0  ;;  %v2509_v56 = vmul.f32 %v5870_v8, %v6475_v62  ;;  %v2753_v17 = vmul.f32 %v5885_v31, %v6474_v0 }
 0x255   : > { %v2143_v43 = vadd.f32 %v2075_v38, %v1898_v23  ;;  %v2144_v24 = vadd.f32 %v2077_v9, %v1899_v46  ;;  %v2754_v18 = vmul.f32 %v5885_v31, %v6475_v62  ;;  %v2320_v41 = vsel %vm1688_vm4, %v2318_v42, %v2319_v50 }
 0x256   : > { %3736 = vmatmul.mubr.bf16.gmra.mrb[60].mxu1 %v3038_v33  ;;  %v6477_v6 = vrot.slane %v6476_v4, 2  ;;  %v2632_v1 = vrot.slane %v2508_v14, 1  ;;  %v2633_v63 = vrot.slane %v2509_v56, 1  ;;  %v2877_v25 = vrot.slane %v2753_v17, 2 }
 0x257   : > { %v2388_v12 = vadd.f32 %v2320_v41, %v2143_v43  ;;  %v2878_v22 = vrot.slane %v2754_v18, 2  ;;  %v6479_v10 = vrot.slane %v6478_v48, 1  ;;  %v2949_v11 = vadd.f32 %v6481_v26, %v6480_v19 }
 0x258   : > { %v2322_v54 = vsel %vm1688_vm4, %v2319_v50, %v6477_v6  ;;  %v2634_v31 = vsel %vm1442_vm3, %v2632_v1, %v2633_v63  ;;  %v2987_v61 = vmul.f32 %v5994_v20, %v6482_v47  ;;  %v6484_v39 = vrot.slane %v6483_v52, 2 }
 0x259   : > { %v2389_v8 = vadd.f32 %v2322_v54, %v2144_v24  ;;  %v2636_v16 = vsel %vm1442_vm3, %v2633_v63, %v6479_v10  ;;  %v2457_v53 = vadd.f32 %v2425_v3, %v2388_v12  ;;  %v2879_v5 = vsel %vm1688_vm4, %v2877_v25, %v2878_v22 }
 0x25a   : > { %v2881_v58 = vsel %vm1688_vm4, %v2878_v22, %v6484_v39  ;;  %v2986_v49 = vmul.f32 %v5994_v20, %v2949_v11  ;;  %v3024_v2 = vadd.f32 %v6011_v29, %v2987_v61  ;;  %v3273_v34 = vmul.f32 %v5999_v40, %v6106_v59 }
 0x25b   : > { %v2458_v45 = vadd.f32 %v2426_v44, %v2389_v8  ;;  %v3271_v21 = vmul.f32 %v6106_v59, %v6006_v35  ;;  %v2702_v28 = vadd.f32 %v2634_v31, %v2457_v53  ;;  %v3274_v55 = vmul.f32 %v6015_v32, %v6106_v59 }
 0x25c   : > { %v3272_v36 = vmul.f32 %v6106_v59, %v6023_v57  ;;  %v3023_v37 = vadd.f32 %v6011_v29, %v2986_v49  ;;  %v3310_v30 = vadd.f32 %v6123_v13, %v3273_v34 }
 0x25d   : > { %v2703_v60 = vadd.f32 %v2636_v16, %v2458_v45  ;;  %v3308_v51 = vadd.f32 %v6123_v13, %v3271_v21  ;;  %v2947_v38 = vadd.f32 %v2879_v5, %v2702_v28  ;;  %v3311_v40 = vadd.f32 %v6123_v13, %v3274_v55 }
 0x25e   : > { %v3309_v35 = vadd.f32 %v6123_v13, %v3272_v36  ;;  %v3040_v32 = vpack.c.bf16 %v3024_v2, %v3023_v37  ;;  %v3342_v57 = vmax.f32 %v3310_v30, 0.0 }
 0x25f   : > { %v2948_v15 = vadd.f32 %v2881_v58, %v2703_v60  ;;  %v3340_v7 = vmax.f32 %v3308_v51, 0.0  ;;  %v2984_v9 = vmul.f32 %v5994_v20, %v2947_v38  ;;  %v3343_v42 = vmax.f32 %v3311_v40, 0.0 }
 0x260   : > { %v3341_v33 = vmax.f32 %v3309_v35, 0.0  ;;  %3374 = vst [vmem:[%s6142_s30 + $0x10] sm:$0xff] %v3342_v57 }
 0x261   : > { %v2985_v27 = vmul.f32 %v5994_v20, %v2948_v15  ;;  %3372 = vst [vmem:[%s6142_s30] sm:$0xff] %v3340_v7  ;;  %v3021_v23 = vadd.f32 %v6011_v29, %v2984_v9  ;;  %3375 = vst [vmem:[%s6142_s30 + $0x18] sm:$0xff] %v3343_v42 }
 0x262   : > { %3373 = vst [vmem:[%s6142_s30 + $0x8] sm:$0xff] %v3341_v33 }
 0x263   : > { %v3022_v46 = vadd.f32 %v6011_v29, %v2985_v27 }
 0x265   : > { %v3039_v0 = vpack.c.bf16 %v3022_v46, %v3021_v23 }
 0x267   : > { %3739 = vmatprep.mubr.bf16.mxu1 %v3039_v0  ;;  %v3717_v3 = vpop.f32.mrb[40].mxu1 }
 0x268   : > { %3740 = vmatmul.mubr.bf16.gmra.mrb[64].mxu1 %v3040_v32  ;;  %v3277_v50 = vmul.f32 %v3717_v3, %v6106_v59  ;;  %v3155_v62 = vpop.f32.mrb[41].mxu1 }
 0x269   : > { %v3275_v20 = vmul.f32 %v6106_v59, %v3155_v62  ;;  %v3718_v44 = vpop.f32.mrb[42].mxu1 }
 0x26a   : > { %v3314_v14 = vadd.f32 %v6123_v13, %v3277_v50  ;;  %v3278_v29 = vmul.f32 %v3718_v44, %v6106_v59  ;;  %v3158_v56 = vpop.f32.mrb[43].mxu1 }
 0x26b   : > { %v3312_v43 = vadd.f32 %v6123_v13, %v3275_v20  ;;  %v3276_v24 = vmul.f32 %v6106_v59, %v3158_v56 }
 0x26c   : > { %v3346_v17 = vmax.f32 %v3314_v14, 0.0  ;;  %v3315_v18 = vadd.f32 %v6123_v13, %v3278_v29 }
 0x26d   : > { %v3344_v41 = vmax.f32 %v3312_v43, 0.0  ;;  %v3313_v4 = vadd.f32 %v6123_v13, %v3276_v24 }
 0x26e   : > { %3378 = vst [vmem:[%s6142_s30 + $0x30] sm:$0xff] %v3346_v17  ;;  %v3347_v6 = vmax.f32 %v3315_v18, 0.0 }
 0x26f   : > { %3376 = vst [vmem:[%s6142_s30 + $0x20] sm:$0xff] %v3344_v41  ;;  %v3345_v54 = vmax.f32 %v3313_v4, 0.0 }
 0x270   : > { %3379 = vst [vmem:[%s6142_s30 + $0x38] sm:$0xff] %v3347_v6 }
 0x271   : > { %3377 = vst [vmem:[%s6142_s30 + $0x28] sm:$0xff] %v3345_v54 }
 0x294   : > { %v3721_v1 = vpop.f32.mrb[44].mxu1 }
 0x295   : > { %v3281_v63 = vmul.f32 %v3721_v1, %v6106_v59  ;;  %v3171_v12 = vpop.f32.mrb[45].mxu1 }
 0x296   : > { %v3279_v8 = vmul.f32 %v6106_v59, %v3171_v12  ;;  %v3722_v25 = vpop.f32.mrb[46].mxu1 }
 0x297   : > { %v3318_v22 = vadd.f32 %v6123_v13, %v3281_v63  ;;  %v3282_v31 = vmul.f32 %v3722_v25, %v6106_v59  ;;  %v3174_v48 = vpop.f32.mrb[47].mxu1 }
 0x298   : > { %v3316_v10 = vadd.f32 %v6123_v13, %v3279_v8  ;;  %v3280_v16 = vmul.f32 %v6106_v59, %v3174_v48 }
 0x299   : > { %v3350_v19 = vmax.f32 %v3318_v22, 0.0  ;;  %v3319_v26 = vadd.f32 %v6123_v13, %v3282_v31 }
 0x29a   : > { %v3348_v11 = vmax.f32 %v3316_v10, 0.0  ;;  %v3317_v47 = vadd.f32 %v6123_v13, %v3280_v16 }
 0x29b   : > { %3382 = vst [vmem:[%s6142_s30 + $0x50] sm:$0xff] %v3350_v19  ;;  %v3351_v61 = vmax.f32 %v3319_v26, 0.0 }
 0x29c   : > { %3380 = vst [vmem:[%s6142_s30 + $0x40] sm:$0xff] %v3348_v11  ;;  %v3349_v53 = vmax.f32 %v3317_v47, 0.0 }
 0x29d   : > { %3383 = vst [vmem:[%s6142_s30 + $0x58] sm:$0xff] %v3351_v61 }
 0x29e   : > { %3381 = vst [vmem:[%s6142_s30 + $0x48] sm:$0xff] %v3349_v53 }
 0x2bf   : > { %v3725_v45 = vpop.f32.mrb[48].mxu1 }
 0x2c0   : > { %v3285_v5 = vmul.f32 %v3725_v45, %v6106_v59  ;;  %v3187_v52 = vpop.f32.mrb[49].mxu1 }
 0x2c1   : > { %v3283_v39 = vmul.f32 %v6106_v59, %v3187_v52  ;;  %v3726_v58 = vpop.f32.mrb[50].mxu1 }
 0x2c2   : > { %v3322_v49 = vadd.f32 %v6123_v13, %v3285_v5  ;;  %v3286_v2 = vmul.f32 %v3726_v58, %v6106_v59  ;;  %v3190_v34 = vpop.f32.mrb[51].mxu1 }
 0x2c3   : > { %v3320_v21 = vadd.f32 %v6123_v13, %v3283_v39  ;;  %v3284_v28 = vmul.f32 %v6106_v59, %v3190_v34 }
 0x2c4   : > { %v3354_v60 = vmax.f32 %v3322_v49, 0.0  ;;  %v3323_v55 = vadd.f32 %v6123_v13, %v3286_v2 }
 0x2c5   : > { %v3352_v36 = vmax.f32 %v3320_v21, 0.0  ;;  %v3321_v37 = vadd.f32 %v6123_v13, %v3284_v28 }
 0x2c6   : > { %3386 = vst [vmem:[%s6142_s30 + $0x70] sm:$0xff] %v3354_v60  ;;  %v3355_v30 = vmax.f32 %v3323_v55, 0.0 }
 0x2c7   : > { %3384 = vst [vmem:[%s6142_s30 + $0x60] sm:$0xff] %v3352_v36  ;;  %v3353_v51 = vmax.f32 %v3321_v37, 0.0 }
 0x2c8   : > { %3387 = vst [vmem:[%s6142_s30 + $0x78] sm:$0xff] %v3355_v30 }
 0x2c9   : > { %3385 = vst [vmem:[%s6142_s30 + $0x68] sm:$0xff] %v3353_v51 }
 0x2e2   : > { %v3729_v38 = vpop.f32.mrb[52].mxu1 }
 0x2e3   : > { %v3289_v15 = vmul.f32 %v3729_v38, %v6106_v59  ;;  %v3203_v40 = vpop.f32.mrb[53].mxu1 }
 0x2e4   : > { %v3287_v35 = vmul.f32 %v6106_v59, %v3203_v40  ;;  %v3730_v32 = vpop.f32.mrb[54].mxu1 }
 0x2e5   : > { %v3326_v57 = vadd.f32 %v6123_v13, %v3289_v15  ;;  %v3290_v7 = vmul.f32 %v3730_v32, %v6106_v59  ;;  %v3206_v9 = vpop.f32.mrb[55].mxu1 }
 0x2e6   : > { %v3324_v27 = vadd.f32 %v6123_v13, %v3287_v35  ;;  %v3288_v42 = vmul.f32 %v6106_v59, %v3206_v9 }
 0x2e7   : > { %v3358_v33 = vmax.f32 %v3326_v57, 0.0  ;;  %v3327_v23 = vadd.f32 %v6123_v13, %v3290_v7 }
 0x2e8   : > { %v3356_v46 = vmax.f32 %v3324_v27, 0.0  ;;  %v3325_v0 = vadd.f32 %v6123_v13, %v3288_v42 }
 0x2e9   : > { %3390 = vst [vmem:[%s6142_s30 + $0x90] sm:$0xff] %v3358_v33  ;;  %v3359_v3 = vmax.f32 %v3327_v23, 0.0 }
 0x2ea   : > { %3388 = vst [vmem:[%s6142_s30 + $0x80] sm:$0xff] %v3356_v46  ;;  %v3357_v50 = vmax.f32 %v3325_v0, 0.0 }
 0x2eb   : > { %3391 = vst [vmem:[%s6142_s30 + $0x98] sm:$0xff] %v3359_v3 }
 0x2ec   : > { %3389 = vst [vmem:[%s6142_s30 + $0x88] sm:$0xff] %v3357_v50 }
 0x306   : > { %v3733_v62 = vpop.f32.mrb[56].mxu1 }
 0x307   : > { %v3293_v20 = vmul.f32 %v3733_v62, %v6106_v59  ;;  %v3219_v44 = vpop.f32.mrb[57].mxu1 }
 0x308   : > { %v3291_v14 = vmul.f32 %v6106_v59, %v3219_v44  ;;  %v3734_v29 = vpop.f32.mrb[58].mxu1 }
 0x309   : > { %v3330_v56 = vadd.f32 %v6123_v13, %v3293_v20  ;;  %v3294_v43 = vmul.f32 %v3734_v29, %v6106_v59  ;;  %v3222_v24 = vpop.f32.mrb[59].mxu1 }
 0x30a   : > { %v3328_v17 = vadd.f32 %v6123_v13, %v3291_v14  ;;  %v3292_v18 = vmul.f32 %v6106_v59, %v3222_v24 }
 0x30b   : > { %v3362_v41 = vmax.f32 %v3330_v56, 0.0  ;;  %v3331_v4 = vadd.f32 %v6123_v13, %v3294_v43 }
 0x30c   : > { %v3360_v6 = vmax.f32 %v3328_v17, 0.0  ;;  %v3329_v54 = vadd.f32 %v6123_v13, %v3292_v18 }
 0x30d   : > { %3394 = vst [vmem:[%s6142_s30 + $0xb0] sm:$0xff] %v3362_v41  ;;  %v3363_v1 = vmax.f32 %v3331_v4, 0.0 }
 0x30e   : > { %3392 = vst [vmem:[%s6142_s30 + $0xa0] sm:$0xff] %v3360_v6  ;;  %v3361_v63 = vmax.f32 %v3329_v54, 0.0 }
 0x30f   : > { %3395 = vst [vmem:[%s6142_s30 + $0xb8] sm:$0xff] %v3363_v1 }
 0x310   : > { %3393 = vst [vmem:[%s6142_s30 + $0xa8] sm:$0xff] %v3361_v63 }
 0x329   : > { %v3737_v12 = vpop.f32.mrb[60].mxu1 }
 0x32a   : > { %v3297_v8 = vmul.f32 %v3737_v12, %v6106_v59  ;;  %v3235_v25 = vpop.f32.mrb[61].mxu1 }
 0x32b   : > { %v3295_v22 = vmul.f32 %v6106_v59, %v3235_v25  ;;  %v3738_v31 = vpop.f32.mrb[62].mxu1 }
 0x32c   : > { %v3334_v48 = vadd.f32 %v6123_v13, %v3297_v8  ;;  %v3298_v10 = vmul.f32 %v3738_v31, %v6106_v59  ;;  %v3238_v16 = vpop.f32.mrb[63].mxu1 }
 0x32d   : > { %v3332_v19 = vadd.f32 %v6123_v13, %v3295_v22  ;;  %v3296_v26 = vmul.f32 %v6106_v59, %v3238_v16 }
 0x32e   : > { %v3366_v11 = vmax.f32 %v3334_v48, 0.0  ;;  %v3335_v47 = vadd.f32 %v6123_v13, %v3298_v10 }
 0x32f   : > { %v3364_v61 = vmax.f32 %v3332_v19, 0.0  ;;  %v3333_v53 = vadd.f32 %v6123_v13, %v3296_v26 }
 0x330   : > { %3398 = vst [vmem:[%s6142_s30 + $0xd0] sm:$0xff] %v3366_v11  ;;  %v3367_v45 = vmax.f32 %v3335_v47, 0.0 }
 0x331   : > { %3396 = vst [vmem:[%s6142_s30 + $0xc0] sm:$0xff] %v3364_v61  ;;  %v3365_v5 = vmax.f32 %v3333_v53, 0.0 }
 0x332   : > { %3399 = vst [vmem:[%s6142_s30 + $0xd8] sm:$0xff] %v3367_v45 }
 0x333   : > { %3397 = vst [vmem:[%s6142_s30 + $0xc8] sm:$0xff] %v3365_v5 }
 0x33b   : > { %v3741_v52 = vpop.f32.mrb[64].mxu1 }
 0x33c   : > { %v3301_v39 = vmul.f32 %v3741_v52, %v6106_v59  ;;  %v3251_v58 = vpop.f32.mrb[65].mxu1 }
 0x33d   : > { %v3299_v49 = vmul.f32 %v6106_v59, %v3251_v58  ;;  %v3742_v2 = vpop.f32.mrb[66].mxu1 }
 0x33e   : > { %v3338_v34 = vadd.f32 %v6123_v13, %v3301_v39  ;;  %v3302_v21 = vmul.f32 %v3742_v2, %v6106_v59  ;;  %v3254_v28 = vpop.f32.mrb[67].mxu1 }
 0x33f   : > { %v3336_v60 = vadd.f32 %v6123_v13, %v3299_v49  ;;  %v3300_v55 = vmul.f32 %v6106_v59, %v3254_v28 }
 0x340   : > { %v3370_v36 = vmax.f32 %v3338_v34, 0.0  ;;  %v3339_v37 = vadd.f32 %v6123_v13, %v3302_v21 }
 0x341   : > { %v3368_v30 = vmax.f32 %v3336_v60, 0.0  ;;  %v3337_v51 = vadd.f32 %v6123_v13, %v3300_v55 }
 0x342   : > { %3402 = vst [vmem:[%s6142_s30 + $0xf0] sm:$0xff] %v3370_v36  ;;  %v3371_v38 = vmax.f32 %v3339_v37, 0.0 }
 0x343   : > { %3400 = vst [vmem:[%s6142_s30 + $0xe0] sm:$0xff] %v3368_v30  ;;  %v3369_v15 = vmax.f32 %v3337_v51, 0.0 }
 0x344   : > { %3403 = vst [vmem:[%s6142_s30 + $0xf8] sm:$0xff] %v3371_v38 }
 0x345   : > { %3401 = vst [vmem:[%s6142_s30 + $0xe8] sm:$0xff] %v3369_v15 }
 0x346 PF: > { %s18_s27 = sadd.s32 1, %s3807_s27  }
 0x347   : > { %p15_p4 = scmp.ge.s32.totalorder %s18_s27, 4  }
 0x349   :  { %17 = sbr.rel (!%p15_p4) target bundleno = 1 (0x1), region = 82 }

</bundles_post_ra>
